<compile_context>
chip_gen: v7x
topology: tpu7x:2x2x1
jax: 0.10.0
libtpu: 0.0.40
codegen_flags: <defaults>
</compile_context>

<pallas_src>
from functools import partial

import jax
import jax.numpy as jnp
from jax.experimental import pallas as pl
from jax.experimental.pallas import tpu as pltpu


# ----------------------------------------------------------------------------
# small layout helpers (trace-time; einshape preferred, transpose fallback)
# ----------------------------------------------------------------------------
def _bnhd_to_bhnd(x):
    try:
        return pltpu.einshape("bnhd->bhnd", x)
    except Exception:
        return jnp.transpose(x, (0, 2, 1, 3))


def _bhnd_to_bnhd(x):
    try:
        return pltpu.einshape("bhnd->bnhd", x)
    except Exception:
        return jnp.transpose(x, (0, 2, 1, 3))


# ----------------------------------------------------------------------------
# kernel
# ----------------------------------------------------------------------------
def _cross_attention_kernel(*refs, heads, dim_head, rotary_q, rotary_k, return_attn):
    it = iter(refs)
    tgt_ref = next(it)            # (bb, Nt, dim)        bf16
    src_ref = next(it)            # (bb, Ns, dim)        bf16
    sin_t_ref = cos_t_ref = sin_s_ref = cos_s_ref = None
    if rotary_q:
        sin_t_ref, cos_t_ref = next(it), next(it)   # (bb, Nt, dim_head) bf16
    if rotary_k:
        sin_s_ref, cos_s_ref = next(it), next(it)   # (bb, Ns, dim_head) bf16
    wq_ref = next(it)             # (dim, inner)  bf16 (softmax scale pre-folded)
    wk_ref = next(it)             # (dim, inner)  bf16
    wv_ref = next(it)             # (dim, inner)  bf16
    wo_ref = next(it)             # (inner, dim)  bf16
    bo_ref = next(it)             # (1, dim)      f32
    out_ref = next(it)            # (bb, Nt, dim)
    attn_ref = next(it) if return_attn else None    # (bb, heads, Nt, Ns) f32

    bb, nt, dim = tgt_ref.shape
    _, ns, _ = src_ref.shape
    inner = heads * dim_head

    x_t = tgt_ref[...].reshape(bb * nt, dim)
    x_s = src_ref[...].reshape(bb * ns, dim)

    # --- projections: bf16 operands, f32 accumulation on the MXU ------------
    q = jnp.dot(x_t, wq_ref[...], preferred_element_type=jnp.float32)   # (bb*nt, inner)
    k = jnp.dot(x_s, wk_ref[...], preferred_element_type=jnp.float32)   # (bb*ns, inner)
    v = jnp.dot(x_s, wv_ref[...], preferred_element_type=jnp.float32)   # (bb*ns, inner)

    # --- rotary (f32 elementwise). Sign of rotate_every_two is pre-folded into
    #     host-prepared sin, so here it's just a lane-pair swap: 2 XLU rolls + 1
    #     select + 2 muls + 1 add. Parity mask built once per call.
    parity = jax.lax.broadcasted_iota(jnp.int32, (1, inner), 1) & 1

    def apply_rotary(x, sin_ref, cos_ref, n):
        sin = jnp.tile(sin_ref[...].astype(jnp.float32).reshape(bb * n, dim_head), (1, heads))
        cos = jnp.tile(cos_ref[...].astype(jnp.float32).reshape(bb * n, dim_head), (1, heads))
        nxt = pltpu.roll(x, shift=inner - 1, axis=1)   # nxt[:, j] = x[:, j+1]
        prv = pltpu.roll(x, shift=1, axis=1)           # prv[:, j] = x[:, j-1]
        swapped = jnp.where(parity == 0, nxt, prv)     # wrap values discarded by parity
        return x * cos + swapped * sin

    if rotary_q:
        q = apply_rotary(q, sin_t_ref, cos_t_ref, nt)
    if rotary_k:
        k = apply_rotary(k, sin_s_ref, cos_s_ref, ns)

    # --- attention: ONE batched contraction over (bb*heads) ------------------
    q_h = _bnhd_to_bhnd(q.astype(jnp.bfloat16).reshape(bb, nt, heads, dim_head)
                        ).reshape(bb * heads, nt, dim_head)
    k_h = _bnhd_to_bhnd(k.astype(jnp.bfloat16).reshape(bb, ns, heads, dim_head)
                        ).reshape(bb * heads, ns, dim_head)
    v_h = _bnhd_to_bhnd(v.astype(jnp.bfloat16).reshape(bb, ns, heads, dim_head)
                        ).reshape(bb * heads, ns, dim_head)

    dots = jnp.einsum("bqd,bkd->bqk", q_h, k_h,
                      preferred_element_type=jnp.float32)        # (bb*heads, nt, ns)

    m = jnp.max(dots, axis=-1, keepdims=True)
    # TODO(synk): on v6e/v7x a bf16 exp roughly doubles EUP throughput; kept f32 for
    #             v5e compatibility and because attn may be returned to the caller.
    e = jnp.exp(dots - m)
    s = jnp.sum(e, axis=-1, keepdims=True)

    if return_attn:
        attn = e / s                                   # exact: returned rows sum to 1
        attn_ref[...] = attn.reshape(bb, heads, nt, ns).astype(attn_ref.dtype)
    else:
        attn = e * pl.reciprocal(s, approx=True)       # EUP slot, otherwise idle

    ctx = jnp.einsum("bqk,bkd->bqd", attn.astype(jnp.bfloat16), v_h,
                     preferred_element_type=jnp.float32)         # (bb*heads, nt, d)
    ctx = _bhnd_to_bnhd(ctx.reshape(bb, heads, nt, dim_head)).reshape(bb * nt, inner)

    # --- output projection (+ bias) ------------------------------------------
    y = jnp.dot(ctx.astype(jnp.bfloat16), wo_ref[...],
                preferred_element_type=jnp.float32) + bo_ref[...]
    out_ref[...] = y.reshape(bb, nt, dim).astype(out_ref.dtype)


# ----------------------------------------------------------------------------
# wrapper
# ----------------------------------------------------------------------------
def _per_batch_vmem_bytes(Nt, Ns, dim, heads, dim_head, out_itemsize,
                          rotary_q, rotary_k, return_attn):
    """Rough per-batch-element VMEM footprint (double-buffered I/O + f32 temps)."""
    inner = heads * dim_head
    b = 2 * 2 * (Nt + Ns) * dim                        # tgt/src bf16, x2 buffers
    if rotary_q:
        b += 2 * 2 * 2 * Nt * dim_head                 # sin+cos bf16, x2 buffers
    if rotary_k:
        b += 2 * 2 * 2 * Ns * dim_head
    b += 2 * Nt * dim * out_itemsize                   # out, x2 buffers
    if return_attn:
        b += 2 * heads * Nt * Ns * 4                   # attn f32, x2 buffers
    # f32 intermediates: q, k, v, dots/e/attn, ctx, y
    b += 4 * ((Nt + 2 * Ns) * inner + 3 * heads * Nt * Ns + 2 * Nt * inner + Nt * dim)
    return b


def _const_spec(shape):
    """BlockSpec for a constant (grid-invariant) operand, single-buffered if possible."""
    imap = lambda *_: (0,) * len(shape)
    buffered = getattr(pl, "Buffered", None)
    if buffered is not None:
        try:
            return pl.BlockSpec(shape, imap, pipeline_mode=buffered(1))
        except TypeError:
            pass
    return pl.BlockSpec(shape, imap)


def cross_attention_pallas(src, src_pos_emb, tgt, tgt_pos_emb, params, *,
                           heads, dim_head, use_rotary=True, return_attn=True,
                           block_b=None):
    """src: (B, Ns, dim), tgt: (B, Nt, dim), pos_emb = (sin, cos) of shape (B, N, dim_rotary).

    Returns (out, attn) like the PyTorch module; attn is None when return_attn=False.
    """
    B, Ns, dim = src.shape
    _, Nt, _ = tgt.shape
    inner = heads * dim_head
    scale = dim_head ** -0.5
    out_dtype = tgt.dtype
    assert dim_head % 2 == 0, "interleaved rotary requires even dim_head"

    rotary_q = bool(use_rotary and tgt_pos_emb is not None)
    rotary_k = bool(use_rotary and src_pos_emb is not None)

    # ---- host-side parameter prep (done once, outside the kernel) -----------
    w_q = (params["w_q"] * scale).astype(jnp.bfloat16)        # fold softmax scale into W_q
    w_kv = params["w_kv"]
    w_k = w_kv[:, :inner].astype(jnp.bfloat16)                # split K/V weights on the host
    w_v = w_kv[:, inner:].astype(jnp.bfloat16)
    w_o = params["w_o"].astype(jnp.bfloat16)
    b_o = params["b_o"].reshape(1, dim).astype(jnp.float32)

    def _prep_sincos(pos_emb):
        # Untiled (B, N, dim_head) bf16; sign of rotate_every_two folded into sin
        # (even lanes negated); padded past dim_rotary with sin=0, cos=1 (pass-through).
        sin, cos = pos_emb                                    # (B, n, dim_rotary)
        rot = sin.shape[-1]
        assert rot % 2 == 0 and rot <= dim_head, (rot, dim_head)
        sign = jnp.where(jnp.arange(rot) % 2 == 0, -1.0, 1.0).astype(jnp.float32)
        sin = sin.astype(jnp.float32) * sign
        cos = cos.astype(jnp.float32)
        pad = dim_head - rot
        if pad:
            sin = jnp.pad(sin, ((0, 0), (0, 0), (0, pad)))
            cos = jnp.pad(cos, ((0, 0), (0, 0), (0, pad)), constant_values=1.0)
        return sin.astype(jnp.bfloat16), cos.astype(jnp.bfloat16)

    # ---- block-size selection from a VMEM byte budget ------------------------
    try:
        vmem_cap = int(pltpu.get_tpu_info().vmem_capacity_bytes)
    except Exception:
        vmem_cap = 64 * 1024 * 1024       # conservative (v7x per-TC)

    weight_bytes = (3 * dim * inner + inner * dim) * 2 + dim * 4
    per_b = _per_batch_vmem_bytes(Nt, Ns, dim, heads, dim_head,
                                  jnp.dtype(out_dtype).itemsize,
                                  rotary_q, rotary_k, return_attn)
    budget = max(per_b, int(0.45 * vmem_cap) - 2 * weight_bytes)

    cap = B if B < 2 else B // 2          # guarantee >=2 grid steps for v7x megacore
    if block_b is not None:
        cap = max(1, min(cap, block_b))
    bb = 1
    for d in range(1, cap + 1):
        if B % d == 0 and d * per_b <= budget:
            bb = d

    vmem_limit = int(min(vmem_cap, max(32 * 1024 * 1024,
                                       2 * weight_bytes + bb * per_b + (4 << 20))))

    # ---- operands / specs -----------------------------------------------------
    operands = [tgt.astype(jnp.bfloat16), src.astype(jnp.bfloat16)]
    in_specs = [pl.BlockSpec((bb, Nt, dim), lambda b: (b, 0, 0)),
                pl.BlockSpec((bb, Ns, dim), lambda b: (b, 0, 0))]
    if rotary_q:
        sin_t, cos_t = _prep_sincos(tgt_pos_emb)
        operands += [sin_t, cos_t]
        in_specs += [pl.BlockSpec((bb, Nt, dim_head), lambda b: (b, 0, 0))] * 2
    if rotary_k:
        sin_s, cos_s = _prep_sincos(src_pos_emb)
        operands += [sin_s, cos_s]
        in_specs += [pl.BlockSpec((bb, Ns, dim_head), lambda b: (b, 0, 0))] * 2
    operands += [w_q, w_k, w_v, w_o, b_o]

    out_specs = [pl.BlockSpec((bb, Nt, dim), lambda b: (b, 0, 0))]
    out_shape = [jax.ShapeDtypeStruct((B, Nt, dim), out_dtype)]
    if return_attn:
        out_specs.append(pl.BlockSpec((bb, heads, Nt, Ns), lambda b: (b, 0, 0, 0)))
        out_shape.append(jax.ShapeDtypeStruct((B, heads, Nt, Ns), jnp.float32))

    kernel = partial(_cross_attention_kernel, heads=heads, dim_head=dim_head,
                     rotary_q=rotary_q, rotary_k=rotary_k, return_attn=return_attn)

    def _make_call(single_buffer_weights):
        if single_buffer_weights:
            w_specs = [_const_spec((dim, inner)), _const_spec((dim, inner)),
                       _const_spec((dim, inner)), _const_spec((inner, dim)),
                       _const_spec((1, dim))]
        else:
            w_specs = [pl.BlockSpec((dim, inner), lambda b: (0, 0)),
                       pl.BlockSpec((dim, inner), lambda b: (0, 0)),
                       pl.BlockSpec((dim, inner), lambda b: (0, 0)),
                       pl.BlockSpec((inner, dim), lambda b: (0, 0)),
                       pl.BlockSpec((1, dim), lambda b: (0, 0))]
        return pl.pallas_call(
            kernel,
            grid=(B // bb,),
            in_specs=in_specs + w_specs,
            out_specs=tuple(out_specs),
            out_shape=tuple(out_shape),
            compiler_params=pltpu.CompilerParams(
                dimension_semantics=("parallel",),
                vmem_limit_bytes=vmem_limit),
        )

    try:
        results = _make_call(True)(*operands)
    except Exception:
        # fall back to default double-buffered weight specs if single-buffering
        # is unsupported by the local toolchain
        results = _make_call(False)(*operands)

    if return_attn:
        out, attn = results
        return out, attn
    (out,) = results
    return out, None


# ----------------------------------------------------------------------------
# pure-JAX reference (mirrors the PyTorch forward) + params
# ----------------------------------------------------------------------------
def _ref_rotate_every_two(x):
    x1, x2 = x[..., 0::2], x[..., 1::2]
    return jnp.stack((-x2, x1), axis=-1).reshape(x.shape)


def cross_attention_reference(src, src_pos_emb, tgt, tgt_pos_emb, params, *,
                              heads, dim_head, use_rotary=True):
    B, Ns, dim = src.shape
    _, Nt, _ = tgt.shape
    inner = heads * dim_head
    scale = dim_head ** -0.5

    def split_heads(x):
        b, n, _ = x.shape
        return x.reshape(b, n, heads, dim_head).transpose(0, 2, 1, 3)

    q = tgt @ params["w_q"]
    kv = src @ params["w_kv"]
    k, v = kv[..., :inner], kv[..., inner:]
    q, k, v = map(split_heads, (q, k, v))                      # (B, h, n, d)

    if use_rotary:
        def apply(x, pos_emb):
            if pos_emb is None:
                return x
            sin, cos = pos_emb                                  # (B, n, rot)
            rot = sin.shape[-1]
            sin, cos = sin[:, None, :, :], cos[:, None, :, :]   # broadcast over heads
            xr, xp = x[..., :rot], x[..., rot:]
            xr = xr * cos + _ref_rotate_every_two(xr) * sin
            return jnp.concatenate([xr, xp], axis=-1) if xp.shape[-1] else xr
        q = apply(q, tgt_pos_emb)
        k = apply(k, src_pos_emb)

    dots = jnp.einsum("bhid,bhjd->bhij", q, k) * scale
    attn = jax.nn.softmax(dots, axis=-1)
    out = jnp.einsum("bhij,bhjd->bhid", attn, v)
    out = out.transpose(0, 2, 1, 3).reshape(B, Nt, inner)
    return out @ params["w_o"] + params["b_o"], attn


def init_params(key, *, dim, heads, dim_head):
    inner = heads * dim_head
    ks = jax.random.split(key, 4)
    std = 0.1
    return {
        # Linear weights stored pre-transposed: (in_features, out_features)
        "w_q": std * jax.random.normal(ks[0], (dim, inner), jnp.float32),
        "w_kv": std * jax.random.normal(ks[1], (dim, 2 * inner), jnp.float32),
        "w_o": std * jax.random.normal(ks[2], (inner, dim), jnp.float32),
        "b_o": 0.01 * jax.random.normal(ks[3], (dim,), jnp.float32),
    }


if __name__ == "__main__":
    B, dim, heads, dim_head = 2, 32, 4, 16
    Ns, Nt = 8, 8
    rot_dim = dim_head

    key = jax.random.PRNGKey(0)
    k_src, k_tgt, k_ps, k_pt, k_par = jax.random.split(key, 5)

    src = jax.random.normal(k_src, (B, Ns, dim), jnp.float32)
    tgt = jax.random.normal(k_tgt, (B, Nt, dim), jnp.float32)

    th_s = jax.random.uniform(k_ps, (B, Ns, rot_dim), jnp.float32, 0.0, 6.2831853)
    th_t = jax.random.uniform(k_pt, (B, Nt, rot_dim), jnp.float32, 0.0, 6.2831853)
    src_pos_emb = (jnp.sin(th_s), jnp.cos(th_s))
    tgt_pos_emb = (jnp.sin(th_t), jnp.cos(th_t))

    params = init_params(k_par, dim=dim, heads=heads, dim_head=dim_head)

    out, attn = cross_attention_pallas(
        src, src_pos_emb, tgt, tgt_pos_emb, params,
        heads=heads, dim_head=dim_head, return_attn=True,
    )
    out, attn = jax.block_until_ready((out, attn))

    ref_out, ref_attn = cross_attention_reference(
        src, src_pos_emb, tgt, tgt_pos_emb, params, heads=heads, dim_head=dim_head
    )
    ref_out, ref_attn = jax.block_until_ready((ref_out, ref_attn))

    assert out.shape == (B, Nt, dim), out.shape
    assert attn.shape == (B, heads, Nt, Ns), attn.shape
    err_out = float(jnp.max(jnp.abs(out - ref_out)))
    err_attn = float(jnp.max(jnp.abs(attn - ref_attn)))
    # bf16 matmul operands + bf16 sin/cos -> loosened tolerance vs f32 reference
    assert err_out < 2.5e-2, err_out
    assert err_attn < 1.0e-2, err_attn
    print("KERNEL_OK")
</pallas_src>

<mosaic_0001>
module attributes {stable_mosaic.version = 11 : i64} {
  func.func @_cross_attention_kernel(%arg0: i32, %arg1: memref<1x8x32xbf16, #tpu.memory_space<vmem>>, %arg2: memref<1x8x32xbf16, #tpu.memory_space<vmem>>, %arg3: memref<1x8x16xbf16, #tpu.memory_space<vmem>>, %arg4: memref<1x8x16xbf16, #tpu.memory_space<vmem>>, %arg5: memref<1x8x16xbf16, #tpu.memory_space<vmem>>, %arg6: memref<1x8x16xbf16, #tpu.memory_space<vmem>>, %arg7: memref<32x64xbf16, #tpu.memory_space<vmem>>, %arg8: memref<32x64xbf16, #tpu.memory_space<vmem>>, %arg9: memref<32x64xbf16, #tpu.memory_space<vmem>>, %arg10: memref<64x32xbf16, #tpu.memory_space<vmem>>, %arg11: memref<1x32xf32, #tpu.memory_space<vmem>>, %arg12: memref<1x8x32xf32, #tpu.memory_space<vmem>>, %arg13: memref<1x4x8x8xf32, #tpu.memory_space<vmem>>) attributes {dimension_semantics = [#tpu.dimension_semantics<parallel>], iteration_bounds = array<i64: 2>, scalar_prefetch = 0 : i64, scratch_operands = 0 : i64, tpu.core_type = #tpu.core_type<tc>, window_params = [{transform_indices = @transform_0, window_bounds = array<i64: 1, 8, 32>}, {transform_indices = @transform_1, window_bounds = array<i64: 1, 8, 32>}, {transform_indices = @transform_2, window_bounds = array<i64: 1, 8, 16>}, {transform_indices = @transform_3, window_bounds = array<i64: 1, 8, 16>}, {transform_indices = @transform_4, window_bounds = array<i64: 1, 8, 16>}, {transform_indices = @transform_5, window_bounds = array<i64: 1, 8, 16>}, {pipeline_mode = #tpu.pipeline_mode<synchronous>, transform_indices = @transform_6, window_bounds = array<i64: 32, 64>}, {pipeline_mode = #tpu.pipeline_mode<synchronous>, transform_indices = @transform_7, window_bounds = array<i64: 32, 64>}, {pipeline_mode = #tpu.pipeline_mode<synchronous>, transform_indices = @transform_8, window_bounds = array<i64: 32, 64>}, {pipeline_mode = #tpu.pipeline_mode<synchronous>, transform_indices = @transform_9, window_bounds = array<i64: 64, 32>}, {pipeline_mode = #tpu.pipeline_mode<synchronous>, transform_indices = @transform_10, window_bounds = array<i64: 1, 32>}, {transform_indices = @transform_11, window_bounds = array<i64: 1, 8, 32>}, {transform_indices = @transform_12, window_bounds = array<i64: 1, 4, 8, 8>}]} {
    %c0 = arith.constant 0 : index
    %c0_0 = arith.constant 0 : index
    %c0_1 = arith.constant 0 : index
    %0 = vector.load %arg1[%c0, %c0_0, %c0_1] : memref<1x8x32xbf16, #tpu.memory_space<vmem>>, vector<1x8x32xbf16>
    %1 = vector.shape_cast %0 : vector<1x8x32xbf16> to vector<8x32xbf16>
    %c0_2 = arith.constant 0 : index
    %c0_3 = arith.constant 0 : index
    %c0_4 = arith.constant 0 : index
    %2 = vector.load %arg2[%c0_2, %c0_3, %c0_4] : memref<1x8x32xbf16, #tpu.memory_space<vmem>>, vector<1x8x32xbf16>
    %3 = vector.shape_cast %2 : vector<1x8x32xbf16> to vector<8x32xbf16>
    %c0_5 = arith.constant 0 : index
    %c0_6 = arith.constant 0 : index
    %4 = vector.load %arg7[%c0_5, %c0_6] : memref<32x64xbf16, #tpu.memory_space<vmem>>, vector<32x64xbf16>
    %cst = arith.constant dense<0.000000e+00> : vector<8x64xf32>
    %5 = tpu.matmul %1, %4, %cst {dimension_numbers = #tpu.dot_dimension_numbers<[1], [0], [0], [1], [0, 0, 1, 1], [], []>} : vector<8x32xbf16>, vector<32x64xbf16>, vector<8x64xf32> -> vector<8x64xf32>
    %c0_7 = arith.constant 0 : index
    %c0_8 = arith.constant 0 : index
    %6 = vector.load %arg8[%c0_7, %c0_8] : memref<32x64xbf16, #tpu.memory_space<vmem>>, vector<32x64xbf16>
    %cst_9 = arith.constant dense<0.000000e+00> : vector<8x64xf32>
    %7 = tpu.matmul %3, %6, %cst_9 {dimension_numbers = #tpu.dot_dimension_numbers<[1], [0], [0], [1], [0, 0, 1, 1], [], []>} : vector<8x32xbf16>, vector<32x64xbf16>, vector<8x64xf32> -> vector<8x64xf32>
    %c0_10 = arith.constant 0 : index
    %c0_11 = arith.constant 0 : index
    %8 = vector.load %arg9[%c0_10, %c0_11] : memref<32x64xbf16, #tpu.memory_space<vmem>>, vector<32x64xbf16>
    %cst_12 = arith.constant dense<0.000000e+00> : vector<8x64xf32>
    %9 = tpu.matmul %3, %8, %cst_12 {dimension_numbers = #tpu.dot_dimension_numbers<[1], [0], [0], [1], [0, 0, 1, 1], [], []>} : vector<8x32xbf16>, vector<32x64xbf16>, vector<8x64xf32> -> vector<8x64xf32>
    %10 = tpu.iota {dimensions = array<i32: 1>} : vector<1x64xi32>
    %c1_i32 = arith.constant 1 : i32
    %11 = vector.broadcast %c1_i32 : i32 to vector<1x64xi32>
    %12 = arith.andi %10, %11 : vector<1x64xi32>
    %c0_13 = arith.constant 0 : index
    %c0_14 = arith.constant 0 : index
    %c0_15 = arith.constant 0 : index
    %13 = vector.load %arg3[%c0_13, %c0_14, %c0_15] : memref<1x8x16xbf16, #tpu.memory_space<vmem>>, vector<1x8x16xbf16>
    %14 = arith.extf %13 : vector<1x8x16xbf16> to vector<1x8x16xf32>
    %15 = vector.shape_cast %14 : vector<1x8x16xf32> to vector<8x16xf32>
    %16 = tpu.concatenate %15, %15, %15, %15 in 1 : vector<8x16xf32>, vector<8x16xf32>, vector<8x16xf32>, vector<8x16xf32> -> vector<8x64xf32>
    %c0_16 = arith.constant 0 : index
    %c0_17 = arith.constant 0 : index
    %c0_18 = arith.constant 0 : index
    %17 = vector.load %arg4[%c0_16, %c0_17, %c0_18] : memref<1x8x16xbf16, #tpu.memory_space<vmem>>, vector<1x8x16xbf16>
    %18 = arith.extf %17 : vector<1x8x16xbf16> to vector<1x8x16xf32>
    %19 = vector.shape_cast %18 : vector<1x8x16xf32> to vector<8x16xf32>
    %20 = tpu.concatenate %19, %19, %19, %19 in 1 : vector<8x16xf32>, vector<8x16xf32>, vector<8x16xf32>, vector<8x16xf32> -> vector<8x64xf32>
    %c63_i32 = arith.constant 63 : i32
    %21 = tpu.dynamic_rotate %5 by %c63_i32 dim 1 : vector<8x64xf32>, i32 -> vector<8x64xf32>
    %c1_i32_19 = arith.constant 1 : i32
    %22 = tpu.dynamic_rotate %5 by %c1_i32_19 dim 1 : vector<8x64xf32>, i32 -> vector<8x64xf32>
    %c0_i32 = arith.constant 0 : i32
    %23 = vector.broadcast %c0_i32 : i32 to vector<1x64xi32>
    %24 = arith.cmpi eq, %12, %23 : vector<1x64xi32>
    %25 = vector.shape_cast %24 : vector<1x64xi1> to vector<1x64xi1>
    %26 = vector.broadcast %25 : vector<1x64xi1> to vector<8x64xi1>
    %27 = arith.select %26, %21, %22 : vector<8x64xi1>, vector<8x64xf32>
    %28 = arith.mulf %5, %20 : vector<8x64xf32>
    %29 = arith.mulf %27, %16 : vector<8x64xf32>
    %30 = arith.addf %28, %29 : vector<8x64xf32>
    %c0_20 = arith.constant 0 : index
    %c0_21 = arith.constant 0 : index
    %c0_22 = arith.constant 0 : index
    %31 = vector.load %arg5[%c0_20, %c0_21, %c0_22] : memref<1x8x16xbf16, #tpu.memory_space<vmem>>, vector<1x8x16xbf16>
    %32 = arith.extf %31 : vector<1x8x16xbf16> to vector<1x8x16xf32>
    %33 = vector.shape_cast %32 : vector<1x8x16xf32> to vector<8x16xf32>
    %34 = tpu.concatenate %33, %33, %33, %33 in 1 : vector<8x16xf32>, vector<8x16xf32>, vector<8x16xf32>, vector<8x16xf32> -> vector<8x64xf32>
    %c0_23 = arith.constant 0 : index
    %c0_24 = arith.constant 0 : index
    %c0_25 = arith.constant 0 : index
    %35 = vector.load %arg6[%c0_23, %c0_24, %c0_25] : memref<1x8x16xbf16, #tpu.memory_space<vmem>>, vector<1x8x16xbf16>
    %36 = arith.extf %35 : vector<1x8x16xbf16> to vector<1x8x16xf32>
    %37 = vector.shape_cast %36 : vector<1x8x16xf32> to vector<8x16xf32>
    %38 = tpu.concatenate %37, %37, %37, %37 in 1 : vector<8x16xf32>, vector<8x16xf32>, vector<8x16xf32>, vector<8x16xf32> -> vector<8x64xf32>
    %c63_i32_26 = arith.constant 63 : i32
    %39 = tpu.dynamic_rotate %7 by %c63_i32_26 dim 1 : vector<8x64xf32>, i32 -> vector<8x64xf32>
    %c1_i32_27 = arith.constant 1 : i32
    %40 = tpu.dynamic_rotate %7 by %c1_i32_27 dim 1 : vector<8x64xf32>, i32 -> vector<8x64xf32>
    %c0_i32_28 = arith.constant 0 : i32
    %41 = vector.broadcast %c0_i32_28 : i32 to vector<1x64xi32>
    %42 = arith.cmpi eq, %12, %41 : vector<1x64xi32>
    %43 = vector.shape_cast %42 : vector<1x64xi1> to vector<1x64xi1>
    %44 = vector.broadcast %43 : vector<1x64xi1> to vector<8x64xi1>
    %45 = arith.select %44, %39, %40 : vector<8x64xi1>, vector<8x64xf32>
    %46 = arith.mulf %7, %38 : vector<8x64xf32>
    %47 = arith.mulf %45, %34 : vector<8x64xf32>
    %48 = arith.addf %46, %47 : vector<8x64xf32>
    %49 = arith.truncf %30 : vector<8x64xf32> to vector<8x64xbf16>
    %50 = vector.shape_cast %49 : vector<8x64xbf16> to vector<1x8x4x16xbf16>
    %51 = tpu.transpose %50, [0, 2, 1, 3] : vector<1x8x4x16xbf16> -> vector<1x4x8x16xbf16>
    %52 = vector.shape_cast %51 : vector<1x4x8x16xbf16> to vector<4x8x16xbf16>
    %53 = arith.truncf %48 : vector<8x64xf32> to vector<8x64xbf16>
    %54 = vector.shape_cast %53 : vector<8x64xbf16> to vector<1x8x4x16xbf16>
    %55 = tpu.transpose %54, [0, 2, 1, 3] : vector<1x8x4x16xbf16> -> vector<1x4x8x16xbf16>
    %56 = vector.shape_cast %55 : vector<1x4x8x16xbf16> to vector<4x8x16xbf16>
    %57 = arith.truncf %9 : vector<8x64xf32> to vector<8x64xbf16>
    %58 = vector.shape_cast %57 : vector<8x64xbf16> to vector<1x8x4x16xbf16>
    %59 = tpu.transpose %58, [0, 2, 1, 3] : vector<1x8x4x16xbf16> -> vector<1x4x8x16xbf16>
    %60 = vector.shape_cast %59 : vector<1x4x8x16xbf16> to vector<4x8x16xbf16>
    "tpu.trace_start"() <{level = 10 : i32, message = "bqd,bkd->bqk"}> : () -> ()
    %cst_29 = arith.constant dense<0.000000e+00> : vector<4x8x8xf32>
    %61 = tpu.matmul %52, %56, %cst_29 {dimension_numbers = #tpu.dot_dimension_numbers<[2], [2], [1], [1], [0, 0, 0, 1, 1, 1], [0], [0]>} : vector<4x8x16xbf16>, vector<4x8x16xbf16>, vector<4x8x8xf32> -> vector<4x8x8xf32>
    "tpu.trace_stop"() : () -> ()
    %cst_30 = arith.constant dense<0xFF800000> : vector<4x8xf32>
    %62 = vector.multi_reduction <maximumf>, %61, %cst_30 [2] : vector<4x8x8xf32> to vector<4x8xf32>
    %63 = vector.shape_cast %62 : vector<4x8xf32> to vector<4x8x1xf32>
    %64 = vector.broadcast %63 : vector<4x8x1xf32> to vector<4x8x8xf32>
    %65 = arith.subf %61, %64 : vector<4x8x8xf32>
    %66 = math.exp %65 : vector<4x8x8xf32>
    %cst_31 = arith.constant dense<0.000000e+00> : vector<4x8xf32>
    %67 = vector.multi_reduction <add>, %66, %cst_31 [2] : vector<4x8x8xf32> to vector<4x8xf32>
    %68 = vector.shape_cast %67 : vector<4x8xf32> to vector<4x8x1xf32>
    %69 = vector.broadcast %68 : vector<4x8x1xf32> to vector<4x8x8xf32>
    %70 = arith.divf %66, %69 : vector<4x8x8xf32>
    %71 = vector.shape_cast %70 : vector<4x8x8xf32> to vector<1x4x8x8xf32>
    %c0_32 = arith.constant 0 : index
    %c0_33 = arith.constant 0 : index
    %c0_34 = arith.constant 0 : index
    %c0_35 = arith.constant 0 : index
    %72 = vector.load %arg13[%c0_32, %c0_33, %c0_34, %c0_35] : memref<1x4x8x8xf32, #tpu.memory_space<vmem>>, vector<1x4x8x8xf32>
    tpu.vector_store %arg13[%c0_32, %c0_33, %c0_34, %c0_35], %71 {strides = array<i32>} : memref<1x4x8x8xf32, #tpu.memory_space<vmem>>, vector<1x4x8x8xf32>,
    %73 = arith.truncf %70 : vector<4x8x8xf32> to vector<4x8x8xbf16>
    "tpu.trace_start"() <{level = 10 : i32, message = "bqk,bkd->bqd"}> : () -> ()
    %cst_36 = arith.constant dense<0.000000e+00> : vector<4x8x16xf32>
    %74 = tpu.matmul %73, %60, %cst_36 {dimension_numbers = #tpu.dot_dimension_numbers<[2], [1], [1], [2], [0, 0, 0, 1, 1, 2], [0], [0]>} : vector<4x8x8xbf16>, vector<4x8x16xbf16>, vector<4x8x16xf32> -> vector<4x8x16xf32>
    "tpu.trace_stop"() : () -> ()
    %75 = vector.shape_cast %74 : vector<4x8x16xf32> to vector<1x4x8x16xf32>
    %76 = tpu.transpose %75, [0, 2, 1, 3] : vector<1x4x8x16xf32> -> vector<1x8x4x16xf32>
    %77 = vector.shape_cast %76 : vector<1x8x4x16xf32> to vector<8x64xf32>
    %78 = arith.truncf %77 : vector<8x64xf32> to vector<8x64xbf16>
    %c0_37 = arith.constant 0 : index
    %c0_38 = arith.constant 0 : index
    %79 = vector.load %arg10[%c0_37, %c0_38] : memref<64x32xbf16, #tpu.memory_space<vmem>>, vector<64x32xbf16>
    %cst_39 = arith.constant dense<0.000000e+00> : vector<8x32xf32>
    %80 = tpu.matmul %78, %79, %cst_39 {dimension_numbers = #tpu.dot_dimension_numbers<[1], [0], [0], [1], [0, 0, 1, 1], [], []>} : vector<8x64xbf16>, vector<64x32xbf16>, vector<8x32xf32> -> vector<8x32xf32>
    %c0_40 = arith.constant 0 : index
    %c0_41 = arith.constant 0 : index
    %81 = vector.load %arg11[%c0_40, %c0_41] : memref<1x32xf32, #tpu.memory_space<vmem>>, vector<1x32xf32>
    %82 = vector.broadcast %81 : vector<1x32xf32> to vector<8x32xf32>
    %83 = arith.addf %80, %82 : vector<8x32xf32>
    %84 = vector.shape_cast %83 : vector<8x32xf32> to vector<1x8x32xf32>
    %c0_42 = arith.constant 0 : index
    %c0_43 = arith.constant 0 : index
    %c0_44 = arith.constant 0 : index
    %85 = vector.load %arg12[%c0_42, %c0_43, %c0_44] : memref<1x8x32xf32, #tpu.memory_space<vmem>>, vector<1x8x32xf32>
    tpu.vector_store %arg12[%c0_42, %c0_43, %c0_44], %84 {strides = array<i32>} : memref<1x8x32xf32, #tpu.memory_space<vmem>>, vector<1x8x32xf32>,
    return
  }
  func.func @transform_0(%arg0: i32) -> (i32, i32, i32) {
    %c0_i32 = arith.constant 0 : i32
    %c0_i32_0 = arith.constant 0 : i32
    %c0_i32_1 = arith.constant 0 : i32
    return %arg0, %c0_i32, %c0_i32_0 : i32, i32, i32
  }
  func.func @transform_1(%arg0: i32) -> (i32, i32, i32) {
    %c0_i32 = arith.constant 0 : i32
    %c0_i32_0 = arith.constant 0 : i32
    %c0_i32_1 = arith.constant 0 : i32
    return %arg0, %c0_i32, %c0_i32_0 : i32, i32, i32
  }
  func.func @transform_2(%arg0: i32) -> (i32, i32, i32) {
    %c0_i32 = arith.constant 0 : i32
    %c0_i32_0 = arith.constant 0 : i32
    %c0_i32_1 = arith.constant 0 : i32
    return %arg0, %c0_i32, %c0_i32_0 : i32, i32, i32
  }
  func.func @transform_3(%arg0: i32) -> (i32, i32, i32) {
    %c0_i32 = arith.constant 0 : i32
    %c0_i32_0 = arith.constant 0 : i32
    %c0_i32_1 = arith.constant 0 : i32
    return %arg0, %c0_i32, %c0_i32_0 : i32, i32, i32
  }
  func.func @transform_4(%arg0: i32) -> (i32, i32, i32) {
    %c0_i32 = arith.constant 0 : i32
    %c0_i32_0 = arith.constant 0 : i32
    %c0_i32_1 = arith.constant 0 : i32
    return %arg0, %c0_i32, %c0_i32_0 : i32, i32, i32
  }
  func.func @transform_5(%arg0: i32) -> (i32, i32, i32) {
    %c0_i32 = arith.constant 0 : i32
    %c0_i32_0 = arith.constant 0 : i32
    %c0_i32_1 = arith.constant 0 : i32
    return %arg0, %c0_i32, %c0_i32_0 : i32, i32, i32
  }
  func.func @transform_6(%arg0: i32) -> (i32, i32) {
    %c0_i32 = arith.constant 0 : i32
    %c0_i32_0 = arith.constant 0 : i32
    %c0_i32_1 = arith.constant 0 : i32
    return %c0_i32, %c0_i32_0 : i32, i32
  }
  func.func @transform_7(%arg0: i32) -> (i32, i32) {
    %c0_i32 = arith.constant 0 : i32
    %c0_i32_0 = arith.constant 0 : i32
    %c0_i32_1 = arith.constant 0 : i32
    return %c0_i32, %c0_i32_0 : i32, i32
  }
  func.func @transform_8(%arg0: i32) -> (i32, i32) {
    %c0_i32 = arith.constant 0 : i32
    %c0_i32_0 = arith.constant 0 : i32
    %c0_i32_1 = arith.constant 0 : i32
    return %c0_i32, %c0_i32_0 : i32, i32
  }
  func.func @transform_9(%arg0: i32) -> (i32, i32) {
    %c0_i32 = arith.constant 0 : i32
    %c0_i32_0 = arith.constant 0 : i32
    %c0_i32_1 = arith.constant 0 : i32
    return %c0_i32, %c0_i32_0 : i32, i32
  }
  func.func @transform_10(%arg0: i32) -> (i32, i32) {
    %c0_i32 = arith.constant 0 : i32
    %c0_i32_0 = arith.constant 0 : i32
    %c0_i32_1 = arith.constant 0 : i32
    return %c0_i32, %c0_i32_0 : i32, i32
  }
  func.func @transform_11(%arg0: i32) -> (i32, i32, i32) {
    %c0_i32 = arith.constant 0 : i32
    %c0_i32_0 = arith.constant 0 : i32
    %c0_i32_1 = arith.constant 0 : i32
    return %arg0, %c0_i32, %c0_i32_0 : i32, i32, i32
  }
  func.func @transform_12(%arg0: i32) -> (i32, i32, i32, i32) {
    %c0_i32 = arith.constant 0 : i32
    %c0_i32_0 = arith.constant 0 : i32
    %c0_i32_1 = arith.constant 0 : i32
    %c0_i32_2 = arith.constant 0 : i32
    return %arg0, %c0_i32, %c0_i32_0, %c0_i32_1 : i32, i32, i32, i32
  }
}

module attributes {stable_mosaic.version = 11 : i64} {
  func.func @_cross_attention_kernel(%arg0: i32, %arg1: memref<1x8x32xbf16, #tpu.memory_space<vmem>>, %arg2: memref<1x8x32xbf16, #tpu.memory_space<vmem>>, %arg3: memref<1x8x16xbf16, #tpu.memory_space<vmem>>, %arg4: memref<1x8x16xbf16, #tpu.memory_space<vmem>>, %arg5: memref<1x8x16xbf16, #tpu.memory_space<vmem>>, %arg6: memref<1x8x16xbf16, #tpu.memory_space<vmem>>, %arg7: memref<32x64xbf16, #tpu.memory_space<vmem>>, %arg8: memref<32x64xbf16, #tpu.memory_space<vmem>>, %arg9: memref<32x64xbf16, #tpu.memory_space<vmem>>, %arg10: memref<64x32xbf16, #tpu.memory_space<vmem>>, %arg11: memref<1x32xf32, #tpu.memory_space<vmem>>, %arg12: memref<1x8x32xf32, #tpu.memory_space<vmem>>, %arg13: memref<1x4x8x8xf32, #tpu.memory_space<vmem>>) attributes {dimension_semantics = [#tpu.dimension_semantics<parallel>], iteration_bounds = array<i64: 2>, scalar_prefetch = 0 : i64, scratch_operands = 0 : i64, tpu.core_type = #tpu.core_type<tc>, window_params = [{transform_indices = @transform_0, window_bounds = array<i64: 1, 8, 32>}, {transform_indices = @transform_1, window_bounds = array<i64: 1, 8, 32>}, {transform_indices = @transform_2, window_bounds = array<i64: 1, 8, 16>}, {transform_indices = @transform_3, window_bounds = array<i64: 1, 8, 16>}, {transform_indices = @transform_4, window_bounds = array<i64: 1, 8, 16>}, {transform_indices = @transform_5, window_bounds = array<i64: 1, 8, 16>}, {pipeline_mode = #tpu.pipeline_mode<synchronous>, transform_indices = @transform_6, window_bounds = array<i64: 32, 64>}, {pipeline_mode = #tpu.pipeline_mode<synchronous>, transform_indices = @transform_7, window_bounds = array<i64: 32, 64>}, {pipeline_mode = #tpu.pipeline_mode<synchronous>, transform_indices = @transform_8, window_bounds = array<i64: 32, 64>}, {pipeline_mode = #tpu.pipeline_mode<synchronous>, transform_indices = @transform_9, window_bounds = array<i64: 64, 32>}, {pipeline_mode = #tpu.pipeline_mode<synchronous>, transform_indices = @transform_10, window_bounds = array<i64: 1, 32>}, {transform_indices = @transform_11, window_bounds = array<i64: 1, 8, 32>}, {transform_indices = @transform_12, window_bounds = array<i64: 1, 4, 8, 8>}]} {
    %c0 = arith.constant 0 : index
    %c0_0 = arith.constant 0 : index
    %c0_1 = arith.constant 0 : index
    %0 = vector.load %arg1[%c0, %c0_0, %c0_1] : memref<1x8x32xbf16, #tpu.memory_space<vmem>>, vector<1x8x32xbf16>
    %1 = vector.shape_cast %0 : vector<1x8x32xbf16> to vector<8x32xbf16>
    %c0_2 = arith.constant 0 : index
    %c0_3 = arith.constant 0 : index
    %c0_4 = arith.constant 0 : index
    %2 = vector.load %arg2[%c0_2, %c0_3, %c0_4] : memref<1x8x32xbf16, #tpu.memory_space<vmem>>, vector<1x8x32xbf16>
    %3 = vector.shape_cast %2 : vector<1x8x32xbf16> to vector<8x32xbf16>
    %c0_5 = arith.constant 0 : index
    %c0_6 = arith.constant 0 : index
    %4 = vector.load %arg7[%c0_5, %c0_6] : memref<32x64xbf16, #tpu.memory_space<vmem>>, vector<32x64xbf16>
    %cst = arith.constant dense<0.000000e+00> : vector<8x64xf32>
    %5 = tpu.matmul %1, %4, %cst {dimension_numbers = #tpu.dot_dimension_numbers<[1], [0], [0], [1], [0, 0, 1, 1], [], []>} : vector<8x32xbf16>, vector<32x64xbf16>, vector<8x64xf32> -> vector<8x64xf32>
    %c0_7 = arith.constant 0 : index
    %c0_8 = arith.constant 0 : index
    %6 = vector.load %arg8[%c0_7, %c0_8] : memref<32x64xbf16, #tpu.memory_space<vmem>>, vector<32x64xbf16>
    %cst_9 = arith.constant dense<0.000000e+00> : vector<8x64xf32>
    %7 = tpu.matmul %3, %6, %cst_9 {dimension_numbers = #tpu.dot_dimension_numbers<[1], [0], [0], [1], [0, 0, 1, 1], [], []>} : vector<8x32xbf16>, vector<32x64xbf16>, vector<8x64xf32> -> vector<8x64xf32>
    %c0_10 = arith.constant 0 : index
    %c0_11 = arith.constant 0 : index
    %8 = vector.load %arg9[%c0_10, %c0_11] : memref<32x64xbf16, #tpu.memory_space<vmem>>, vector<32x64xbf16>
    %cst_12 = arith.constant dense<0.000000e+00> : vector<8x64xf32>
    %9 = tpu.matmul %3, %8, %cst_12 {dimension_numbers = #tpu.dot_dimension_numbers<[1], [0], [0], [1], [0, 0, 1, 1], [], []>} : vector<8x32xbf16>, vector<32x64xbf16>, vector<8x64xf32> -> vector<8x64xf32>
    %10 = tpu.iota {dimensions = array<i32: 1>} : vector<1x64xi32>
    %c1_i32 = arith.constant 1 : i32
    %11 = vector.broadcast %c1_i32 : i32 to vector<1x64xi32>
    %12 = arith.andi %10, %11 : vector<1x64xi32>
    %c0_13 = arith.constant 0 : index
    %c0_14 = arith.constant 0 : index
    %c0_15 = arith.constant 0 : index
    %13 = vector.load %arg3[%c0_13, %c0_14, %c0_15] : memref<1x8x16xbf16, #tpu.memory_space<vmem>>, vector<1x8x16xbf16>
    %14 = arith.extf %13 : vector<1x8x16xbf16> to vector<1x8x16xf32>
    %15 = vector.shape_cast %14 : vector<1x8x16xf32> to vector<8x16xf32>
    %16 = tpu.concatenate %15, %15, %15, %15 in 1 : vector<8x16xf32>, vector<8x16xf32>, vector<8x16xf32>, vector<8x16xf32> -> vector<8x64xf32>
    %c0_16 = arith.constant 0 : index
    %c0_17 = arith.constant 0 : index
    %c0_18 = arith.constant 0 : index
    %17 = vector.load %arg4[%c0_16, %c0_17, %c0_18] : memref<1x8x16xbf16, #tpu.memory_space<vmem>>, vector<1x8x16xbf16>
    %18 = arith.extf %17 : vector<1x8x16xbf16> to vector<1x8x16xf32>
    %19 = vector.shape_cast %18 : vector<1x8x16xf32> to vector<8x16xf32>
    %20 = tpu.concatenate %19, %19, %19, %19 in 1 : vector<8x16xf32>, vector<8x16xf32>, vector<8x16xf32>, vector<8x16xf32> -> vector<8x64xf32>
    %c63_i32 = arith.constant 63 : i32
    %21 = tpu.dynamic_rotate %5 by %c63_i32 dim 1 : vector<8x64xf32>, i32 -> vector<8x64xf32>
    %c1_i32_19 = arith.constant 1 : i32
    %22 = tpu.dynamic_rotate %5 by %c1_i32_19 dim 1 : vector<8x64xf32>, i32 -> vector<8x64xf32>
    %c0_i32 = arith.constant 0 : i32
    %23 = vector.broadcast %c0_i32 : i32 to vector<1x64xi32>
    %24 = arith.cmpi eq, %12, %23 : vector<1x64xi32>
    %25 = vector.shape_cast %24 : vector<1x64xi1> to vector<1x64xi1>
    %26 = vector.broadcast %25 : vector<1x64xi1> to vector<8x64xi1>
    %27 = arith.select %26, %21, %22 : vector<8x64xi1>, vector<8x64xf32>
    %28 = arith.mulf %5, %20 : vector<8x64xf32>
    %29 = arith.mulf %27, %16 : vector<8x64xf32>
    %30 = arith.addf %28, %29 : vector<8x64xf32>
    %c0_20 = arith.constant 0 : index
    %c0_21 = arith.constant 0 : index
    %c0_22 = arith.constant 0 : index
    %31 = vector.load %arg5[%c0_20, %c0_21, %c0_22] : memref<1x8x16xbf16, #tpu.memory_space<vmem>>, vector<1x8x16xbf16>
    %32 = arith.extf %31 : vector<1x8x16xbf16> to vector<1x8x16xf32>
    %33 = vector.shape_cast %32 : vector<1x8x16xf32> to vector<8x16xf32>
    %34 = tpu.concatenate %33, %33, %33, %33 in 1 : vector<8x16xf32>, vector<8x16xf32>, vector<8x16xf32>, vector<8x16xf32> -> vector<8x64xf32>
    %c0_23 = arith.constant 0 : index
    %c0_24 = arith.constant 0 : index
    %c0_25 = arith.constant 0 : index
    %35 = vector.load %arg6[%c0_23, %c0_24, %c0_25] : memref<1x8x16xbf16, #tpu.memory_space<vmem>>, vector<1x8x16xbf16>
    %36 = arith.extf %35 : vector<1x8x16xbf16> to vector<1x8x16xf32>
    %37 = vector.shape_cast %36 : vector<1x8x16xf32> to vector<8x16xf32>
    %38 = tpu.concatenate %37, %37, %37, %37 in 1 : vector<8x16xf32>, vector<8x16xf32>, vector<8x16xf32>, vector<8x16xf32> -> vector<8x64xf32>
    %c63_i32_26 = arith.constant 63 : i32
    %39 = tpu.dynamic_rotate %7 by %c63_i32_26 dim 1 : vector<8x64xf32>, i32 -> vector<8x64xf32>
    %c1_i32_27 = arith.constant 1 : i32
    %40 = tpu.dynamic_rotate %7 by %c1_i32_27 dim 1 : vector<8x64xf32>, i32 -> vector<8x64xf32>
    %c0_i32_28 = arith.constant 0 : i32
    %41 = vector.broadcast %c0_i32_28 : i32 to vector<1x64xi32>
    %42 = arith.cmpi eq, %12, %41 : vector<1x64xi32>
    %43 = vector.shape_cast %42 : vector<1x64xi1> to vector<1x64xi1>
    %44 = vector.broadcast %43 : vector<1x64xi1> to vector<8x64xi1>
    %45 = arith.select %44, %39, %40 : vector<8x64xi1>, vector<8x64xf32>
    %46 = arith.mulf %7, %38 : vector<8x64xf32>
    %47 = arith.mulf %45, %34 : vector<8x64xf32>
    %48 = arith.addf %46, %47 : vector<8x64xf32>
    %49 = arith.truncf %30 : vector<8x64xf32> to vector<8x64xbf16>
    %50 = vector.shape_cast %49 : vector<8x64xbf16> to vector<1x8x4x16xbf16>
    %51 = tpu.transpose %50, [0, 2, 1, 3] : vector<1x8x4x16xbf16> -> vector<1x4x8x16xbf16>
    %52 = vector.shape_cast %51 : vector<1x4x8x16xbf16> to vector<4x8x16xbf16>
    %53 = arith.truncf %48 : vector<8x64xf32> to vector<8x64xbf16>
    %54 = vector.shape_cast %53 : vector<8x64xbf16> to vector<1x8x4x16xbf16>
    %55 = tpu.transpose %54, [0, 2, 1, 3] : vector<1x8x4x16xbf16> -> vector<1x4x8x16xbf16>
    %56 = vector.shape_cast %55 : vector<1x4x8x16xbf16> to vector<4x8x16xbf16>
    %57 = arith.truncf %9 : vector<8x64xf32> to vector<8x64xbf16>
    %58 = vector.shape_cast %57 : vector<8x64xbf16> to vector<1x8x4x16xbf16>
    %59 = tpu.transpose %58, [0, 2, 1, 3] : vector<1x8x4x16xbf16> -> vector<1x4x8x16xbf16>
    %60 = vector.shape_cast %59 : vector<1x4x8x16xbf16> to vector<4x8x16xbf16>
    "tpu.trace_start"() <{level = 10 : i32, message = "bqd,bkd->bqk"}> : () -> ()
    %cst_29 = arith.constant dense<0.000000e+00> : vector<4x8x8xf32>
    %61 = tpu.matmul %52, %56, %cst_29 {dimension_numbers = #tpu.dot_dimension_numbers<[2], [2], [1], [1], [0, 0, 0, 1, 1, 1], [0], [0]>} : vector<4x8x16xbf16>, vector<4x8x16xbf16>, vector<4x8x8xf32> -> vector<4x8x8xf32>
    "tpu.trace_stop"() : () -> ()
    %cst_30 = arith.constant dense<0xFF800000> : vector<4x8xf32>
    %62 = vector.multi_reduction <maximumf>, %61, %cst_30 [2] : vector<4x8x8xf32> to vector<4x8xf32>
    %63 = vector.shape_cast %62 : vector<4x8xf32> to vector<4x8x1xf32>
    %64 = vector.broadcast %63 : vector<4x8x1xf32> to vector<4x8x8xf32>
    %65 = arith.subf %61, %64 : vector<4x8x8xf32>
    %66 = math.exp %65 : vector<4x8x8xf32>
    %cst_31 = arith.constant dense<0.000000e+00> : vector<4x8xf32>
    %67 = vector.multi_reduction <add>, %66, %cst_31 [2] : vector<4x8x8xf32> to vector<4x8xf32>
    %68 = vector.shape_cast %67 : vector<4x8xf32> to vector<4x8x1xf32>
    %69 = vector.broadcast %68 : vector<4x8x1xf32> to vector<4x8x8xf32>
    %70 = arith.divf %66, %69 : vector<4x8x8xf32>
    %71 = vector.shape_cast %70 : vector<4x8x8xf32> to vector<1x4x8x8xf32>
    %c0_32 = arith.constant 0 : index
    %c0_33 = arith.constant 0 : index
    %c0_34 = arith.constant 0 : index
    %c0_35 = arith.constant 0 : index
    %72 = vector.load %arg13[%c0_32, %c0_33, %c0_34, %c0_35] : memref<1x4x8x8xf32, #tpu.memory_space<vmem>>, vector<1x4x8x8xf32>
    tpu.vector_store %arg13[%c0_32, %c0_33, %c0_34, %c0_35], %71 {strides = array<i32>} : memref<1x4x8x8xf32, #tpu.memory_space<vmem>>, vector<1x4x8x8xf32>,
    %73 = arith.truncf %70 : vector<4x8x8xf32> to vector<4x8x8xbf16>
    "tpu.trace_start"() <{level = 10 : i32, message = "bqk,bkd->bqd"}> : () -> ()
    %cst_36 = arith.constant dense<0.000000e+00> : vector<4x8x16xf32>
    %74 = tpu.matmul %73, %60, %cst_36 {dimension_numbers = #tpu.dot_dimension_numbers<[2], [1], [1], [2], [0, 0, 0, 1, 1, 2], [0], [0]>} : vector<4x8x8xbf16>, vector<4x8x16xbf16>, vector<4x8x16xf32> -> vector<4x8x16xf32>
    "tpu.trace_stop"() : () -> ()
    %75 = vector.shape_cast %74 : vector<4x8x16xf32> to vector<1x4x8x16xf32>
    %76 = tpu.transpose %75, [0, 2, 1, 3] : vector<1x4x8x16xf32> -> vector<1x8x4x16xf32>
    %77 = vector.shape_cast %76 : vector<1x8x4x16xf32> to vector<8x64xf32>
    %78 = arith.truncf %77 : vector<8x64xf32> to vector<8x64xbf16>
    %c0_37 = arith.constant 0 : index
    %c0_38 = arith.constant 0 : index
    %79 = vector.load %arg10[%c0_37, %c0_38] : memref<64x32xbf16, #tpu.memory_space<vmem>>, vector<64x32xbf16>
    %cst_39 = arith.constant dense<0.000000e+00> : vector<8x32xf32>
    %80 = tpu.matmul %78, %79, %cst_39 {dimension_numbers = #tpu.dot_dimension_numbers<[1], [0], [0], [1], [0, 0, 1, 1], [], []>} : vector<8x64xbf16>, vector<64x32xbf16>, vector<8x32xf32> -> vector<8x32xf32>
    %c0_40 = arith.constant 0 : index
    %c0_41 = arith.constant 0 : index
    %81 = vector.load %arg11[%c0_40, %c0_41] : memref<1x32xf32, #tpu.memory_space<vmem>>, vector<1x32xf32>
    %82 = vector.broadcast %81 : vector<1x32xf32> to vector<8x32xf32>
    %83 = arith.addf %80, %82 : vector<8x32xf32>
    %84 = vector.shape_cast %83 : vector<8x32xf32> to vector<1x8x32xf32>
    %c0_42 = arith.constant 0 : index
    %c0_43 = arith.constant 0 : index
    %c0_44 = arith.constant 0 : index
    %85 = vector.load %arg12[%c0_42, %c0_43, %c0_44] : memref<1x8x32xf32, #tpu.memory_space<vmem>>, vector<1x8x32xf32>
    tpu.vector_store %arg12[%c0_42, %c0_43, %c0_44], %84 {strides = array<i32>} : memref<1x8x32xf32, #tpu.memory_space<vmem>>, vector<1x8x32xf32>,
    return
  }
  func.func @transform_0(%arg0: i32) -> (i32, i32, i32) {
    %c0_i32 = arith.constant 0 : i32
    %c0_i32_0 = arith.constant 0 : i32
    %c0_i32_1 = arith.constant 0 : i32
    return %arg0, %c0_i32, %c0_i32_0 : i32, i32, i32
  }
  func.func @transform_1(%arg0: i32) -> (i32, i32, i32) {
    %c0_i32 = arith.constant 0 : i32
    %c0_i32_0 = arith.constant 0 : i32
    %c0_i32_1 = arith.constant 0 : i32
    return %arg0, %c0_i32, %c0_i32_0 : i32, i32, i32
  }
  func.func @transform_2(%arg0: i32) -> (i32, i32, i32) {
    %c0_i32 = arith.constant 0 : i32
    %c0_i32_0 = arith.constant 0 : i32
    %c0_i32_1 = arith.constant 0 : i32
    return %arg0, %c0_i32, %c0_i32_0 : i32, i32, i32
  }
  func.func @transform_3(%arg0: i32) -> (i32, i32, i32) {
    %c0_i32 = arith.constant 0 : i32
    %c0_i32_0 = arith.constant 0 : i32
    %c0_i32_1 = arith.constant 0 : i32
    return %arg0, %c0_i32, %c0_i32_0 : i32, i32, i32
  }
  func.func @transform_4(%arg0: i32) -> (i32, i32, i32) {
    %c0_i32 = arith.constant 0 : i32
    %c0_i32_0 = arith.constant 0 : i32
    %c0_i32_1 = arith.constant 0 : i32
    return %arg0, %c0_i32, %c0_i32_0 : i32, i32, i32
  }
  func.func @transform_5(%arg0: i32) -> (i32, i32, i32) {
    %c0_i32 = arith.constant 0 : i32
    %c0_i32_0 = arith.constant 0 : i32
    %c0_i32_1 = arith.constant 0 : i32
    return %arg0, %c0_i32, %c0_i32_0 : i32, i32, i32
  }
  func.func @transform_6(%arg0: i32) -> (i32, i32) {
    %c0_i32 = arith.constant 0 : i32
    %c0_i32_0 = arith.constant 0 : i32
    %c0_i32_1 = arith.constant 0 : i32
    return %c0_i32, %c0_i32_0 : i32, i32
  }
  func.func @transform_7(%arg0: i32) -> (i32, i32) {
    %c0_i32 = arith.constant 0 : i32
    %c0_i32_0 = arith.constant 0 : i32
    %c0_i32_1 = arith.constant 0 : i32
    return %c0_i32, %c0_i32_0 : i32, i32
  }
  func.func @transform_8(%arg0: i32) -> (i32, i32) {
    %c0_i32 = arith.constant 0 : i32
    %c0_i32_0 = arith.constant 0 : i32
    %c0_i32_1 = arith.constant 0 : i32
    return %c0_i32, %c0_i32_0 : i32, i32
  }
  func.func @transform_9(%arg0: i32) -> (i32, i32) {
    %c0_i32 = arith.constant 0 : i32
    %c0_i32_0 = arith.constant 0 : i32
    %c0_i32_1 = arith.constant 0 : i32
    return %c0_i32, %c0_i32_0 : i32, i32
  }
  func.func @transform_10(%arg0: i32) -> (i32, i32) {
    %c0_i32 = arith.constant 0 : i32
    %c0_i32_0 = arith.constant 0 : i32
    %c0_i32_1 = arith.constant 0 : i32
    return %c0_i32, %c0_i32_0 : i32, i32
  }
  func.func @transform_11(%arg0: i32) -> (i32, i32, i32) {
    %c0_i32 = arith.constant 0 : i32
    %c0_i32_0 = arith.constant 0 : i32
    %c0_i32_1 = arith.constant 0 : i32
    return %arg0, %c0_i32, %c0_i32_0 : i32, i32, i32
  }
  func.func @transform_12(%arg0: i32) -> (i32, i32, i32, i32) {
    %c0_i32 = arith.constant 0 : i32
    %c0_i32_0 = arith.constant 0 : i32
    %c0_i32_1 = arith.constant 0 : i32
    %c0_i32_2 = arith.constant 0 : i32
    return %arg0, %c0_i32, %c0_i32_0, %c0_i32_1 : i32, i32, i32, i32
  }
}

</mosaic_0001>

<bundles_post_ra>
// kernel: tpu_custom_call.1
= control target key start
LH: loop header
LB: loop body
LE: loop exit
PB: predicated region body
PF: predicated region fallthrough
CT: control target
= control target key end

     0   :  { %s3549_s0 = inlined_call_operand.hbm [shape: bf16[2,8,32], index: 0, kind: input, shape index: {}]   ;;  %s3550_s1 = inlined_call_operand.hbm [shape: bf16[2,8,32], index: 1, kind: input, shape index: {}]   ;;  %s3551_s2 = inlined_call_operand.hbm [shape: bf16[2,8,16], index: 2, kind: input, shape index: {}]   ;;  %s3552_s3 = inlined_call_operand.vmem [shape: bf16[2,8,16], index: 3, kind: input, shape index: {}]   ;;  %s3553_s4 = inlined_call_operand.hbm [shape: bf16[2,8,16], index: 4, kind: input, shape index: {}]   ;;  %s3554_s5 = inlined_call_operand.hbm [shape: bf16[2,8,16], index: 5, kind: input, shape index: {}]   ;;  %s3555_s6 = inlined_call_operand.vmem [shape: bf16[32,64], index: 6, kind: input, shape index: {}]   ;;  %s3556_s7 = inlined_call_operand.vmem [shape: bf16[32,64], index: 7, kind: input, shape index: {}]   ;;  %s3557_s8 = inlined_call_operand.vmem [shape: bf16[32,64], index: 8, kind: input, shape index: {}]   ;;  %s3558_s9 = inlined_call_operand.vmem [shape: bf16[64,32], index: 9, kind: input, shape index: {}]   ;;  %s3559_s10 = inlined_call_operand.vmem [shape: f32[1,32], index: 10, kind: input, shape index: {}]   ;;  %s3560_s11 = inlined_call_operand.hbm [shape: f32[2,8,32], index: 11, kind: output, shape index: {0}]   ;;  %s3561_s12 = inlined_call_operand.hbm [shape: f32[2,4,8,8], index: 12, kind: output, shape index: {1}]  }
   0x1   :  { %3580 = sst [smem:[#allocation26_spill]] %s3549_s0 }
   0x2   :  { %3581 = sst [smem:[#allocation27_spill]] %s3550_s1 }
   0x3   :  { %3582 = sst [smem:[#allocation28_spill]] %s3553_s4 }
   0x4   :  { %3583 = sst [smem:[#allocation29_spill]] %s3558_s9 }
   0x5   :  { %3584 = sst [smem:[#allocation30_spill]] %s3559_s10 }
   0x6   :  { %3585 = sst [smem:[#allocation31_spill]] %s3560_s11 }
   0x7   :  { %3586 = sst [smem:[#allocation32_spill]] %s3561_s12 }
   0x8   :  { %18 = vsyncpa [#allocation3], 0 }
   0x9   :  { %20 = vsyncpa [#allocation3 + $0x1], 0 }
   0xa   :  { %21 = vsyncpa [#allocation6], 0 }
   0xb   :  { %23 = vsyncpa [#allocation6 + $0x1], 0 }
   0xc   :  { %24 = vsyncpa [#allocation9], 0 }
   0xd   :  { %26 = vsyncpa [#allocation9 + $0x1], 0 }
   0xe   :  { %27 = vsyncpa [#allocation4], 0 }
   0xf   :  { %29 = vsyncpa [#allocation4 + $0x1], 0 }
  0x10   :  { %30 = vsyncpa [#allocation13], 0 }
  0x11   :  { %32 = vsyncpa [#allocation13 + $0x1], 0  ;;  %s2938_s21 = smov 0   ;;  %s2940_s22 = smov 0  }
  0x12   :  { %s2942_s23 = smov 0   ;;  %s2944_s24 = smov 0  }
  0x13 LB: > { %3587 = sst [smem:[#allocation19_spill]] %s2836_s21  ;;  %s2959_s25 = sadd.s32 4294967295, %s2848_s24   ;;  %s2848_s24 = sphi %s2944_s24, %s3624_s24   ;;  %s2844_s23 = sphi %s2942_s23, %s3626_s23   ;;  %s2840_s22 = sphi %s2940_s22, %s3628_s22   ;;  %s2836_s21 = sphi %s2938_s21, %s3627_s21  }
  0x14   : > { %3588 = sst [smem:[#allocation20_spill]] %s2844_s23  ;;  %s2280_s26 = sadd.s32 4294967294, %s2848_s24  }
  0x15   : > { %3589 = sst [smem:[#allocation21_spill]] %s2848_s24  ;;  %s2963_s27 = sadd.s32 1, %s2848_s24  }
  0x16   : > { %3590 = sst [smem:[#allocation22_spill]] %s2963_s27  ;;  %s45_s28 = sadd.s32 1, %s2844_s23 }
  0x17   : > { %s42_s29 = ssub.s32 %s2848_s24, %s2963_s27  ;;  %p52_p0 = scmp.ne.s32.totalorder %s2844_s23, %s2840_s22 }
  0x18   : > { %p43_p1 = scmp.eq.s32.totalorder %s42_s29, 0  ;;  %p53_p2 = scmp.eq.s32.totalorder %s2848_s24, 0 }
  0x19   : > { %p58_p3 = scmp.ne.s32.totalorder %s2840_s22, %s2836_s21  ;;  %p59_p4 = scmp.eq.s32.totalorder %s2959_s25, 0 }
  0x1a   : > { %s2975_s30 = scalar_select %p43_p1, %s2844_s23, %s45_s28  }
  0x1b   : > { %p54_p5 = por %p53_p2, %p52_p0  ;;  %p2977_p6 = por %p59_p4, %p58_p3 }
  0x1c   : > { %3591 = sst [smem:[#allocation23_spill]] %s2975_s30  ;;  %p317_p7 = scmp.eq.s32.totalorder %s2959_s25, 1 }
  0x1d   : > { %s3592_s13 = scalar_select %p2977_p6, 1, 0 }
  0x1e   : > { %p323_p8 = scmp.eq.s32.totalorder %s2280_s26, 1  ;;  %p2486_p10 = scmp.lt.s32.totalorder %s2848_s24, 2 }
  0x1f   : > { %p2984_p11 = por %p317_p7, %p52_p0  ;;  %s3564_s16 = sand.u32 1, %s2844_s23  }
  0x20   : > { %p2988_p12 = por %p323_p8, %p58_p3  ;;  %s2994_s17 = sshll.u32 %s2848_s24, 6 }
  0x21   : > { %s3593_s14 = scalar_select %p2984_p11, 1, 0 }
  0x22   : > { %s3595_s15 = scalar_select %p2988_p12, 1, 0 }
  0x23   : > { %3594 = sst [smem:[#allocation24_spill]] %s3593_s14  ;;  %s2998_s18 = sshll.u32 %s3564_s16, 2 }
  0x24   : > { %3596 = sst [smem:[#allocation25_spill]] %s3595_s15  ;;  %p3000_p13 = pnand %p2486_p10, %p54_p5 }
  0x25   : > { %s3568_s20 = sand.u32 1, %s2848_s24   ;;  %s3598_s1 = sld [smem:[#allocation27_spill]] }
  0x26   : > { %s3597_s19 = scalar_select %p3000_p13, 1, 0 }
  0x27   : > { %s406_s30 = scalar_lea.vmem [#allocation5], %s2998_s18  ;;  %s3017_s16 = scalar_lea.sflag [#allocation6], %s3568_s20 }
  0x28   : > { %s413_s27 = sshll.u32 %s406_s30, 4  ;;  %p3023_p2 = pneg %p3000_p13  ;;  %s3012_s27 = int_to_ptr.vmem [resolvable:$true] %s413_s27 }
  0x2b   : > { %s3009_s29 = scalar_lea.hbm %s3598_s1, %s2994_s17  ;;  %s2597_s30 = scalar_lea.hbm %s3598_s1, 128 }
  0x2c   : > { %s2592_s15 = scalar_lea.hbm %s3009_s29, 64  ;;  %p2598_p5 = scmp.lt.u32.totalorder %s3009_s29, %s3598_s1 }
  0x2d   : > { %p2593_p1 = scmp.ne.s32.totalorder %s3009_s29, %s2592_s15  ;;  %p2599_p7 = scmp.lt.u32.totalorder %s2597_s30, %s2592_s15 }
  0x2e   : > { %p2601_p10 = scmp.lt.u32.totalorder %s2592_s15, %s3009_s29 }
  0x2f   : > { %p2595_p3 = pnand %p3023_p2, %p2593_p1  ;;  %p2600_p8 = por %p2599_p7, %p2598_p5 }
  0x31   : > { %p2596_p4 = pneg %p2595_p3  ;;  %p2602_p9 = por %p2601_p10, %p2600_p8 }
  0x33   : > { %p2603_p0 = pnand %p2602_p9, %p2596_p4 }
  0x35   : > { %2606 = shalt.err (!%p2603_p0)
}
  0x36   : > { %s2607_s20 = scalar_lea.vmem %s3012_s27, 64  ;;  %s2850_s26 = smov [#allocation5]  }
  0x37   : > { %p2608_p1 = scmp.ne.s32.totalorder %s3012_s27, %s2607_s20  ;;  %s2612_s28 = sshll.u32 %s2850_s26, 4  ;;  %s2613_s28 = int_to_ptr.vmem [resolvable:$false] %s2612_s28 }
  0x38   : > { %s2614_s10 = scalar_lea.vmem %s2613_s28, 128  ;;  %p2615_p11 = scmp.lt.s32.totalorder %s3012_s27, %s2613_s28 }
  0x39   : > { %p2610_p3 = pnand %p2608_p1, %p3023_p2  ;;  %p2616_p6 = scmp.lt.s32.totalorder %s2614_s10, %s2607_s20 }
  0x3b   : > { %p2611_p12 = pneg %p2610_p3  ;;  %p2617_p5 = por %p2616_p6, %p2615_p11 }
  0x3d   : > { %p2618_p7 = pnand %p2617_p5, %p2611_p12 }
  0x3f   : > { %2621 = shalt.err (!%p2618_p7)
}
  0x40   : > { %2469 = dma.hbm_to_vmem [thread:$0]  (!%p3000_p13), %s3009_s29, 64, %s3012_s27, %s3017_s16  }
  0x41   : > { %p479_p9 = scmp.lt.s32.totalorder %s2848_s24, 3  ;;  %s3600_s4 = sld [smem:[#allocation28_spill]] }
  0x42   : > { %p3601_p6 = scmp.ge.s32.totalorder %s2848_s24, 1  ;;  %s449_s26 = scalar_lea.vmem [#allocation8], %s2998_s18 }
  0x43   : > { %s456_s28 = sshll.u32 %s449_s26, 4  ;;  %s3603_s10 = sand.u32 1, %s2848_s24   ;;  %s457_s28 = int_to_ptr.vmem [resolvable:$true] %s456_s28 }
  0x44   : > { %p3056_p11 = pnand %p3601_p6, %p479_p9  ;;  %s3063_s27 = scalar_lea.sflag [#allocation9], %s3603_s10 }
  0x46   : > { %s3602_s30 = scalar_select %p3056_p11, 1, 0 }
  0x47   : > { %s3052_s20 = scalar_lea.hbm %s3600_s4, %s2994_s17  ;;  %s2627_s1 = scalar_lea.hbm %s3600_s4, 128 }
  0x48   : > { %s2622_s29 = scalar_lea.hbm %s3052_s20, 64  ;;  %p2628_p8 = scmp.lt.u32.totalorder %s3052_s20, %s3600_s4 }
  0x49   : > { %p2623_p12 = scmp.ne.s32.totalorder %s3052_s20, %s2622_s29  ;;  %p2629_p10 = scmp.lt.u32.totalorder %s2627_s1, %s2622_s29 }
  0x4a   : > { %p2631_p3 = scmp.lt.u32.totalorder %s2622_s29, %s3052_s20 }
  0x4b   : > { %p2625_p0 = pnand %p2623_p12, %p3023_p2  ;;  %p2630_p1 = por %p2629_p10, %p2628_p8 }
  0x4d   : > { %p2626_p4 = pneg %p2625_p0  ;;  %p2632_p5 = por %p2631_p3, %p2630_p1 }
  0x4f   : > { %p2633_p7 = pnand %p2632_p5, %p2626_p4 }
  0x51   : > { %2636 = shalt.err (!%p2633_p7)
}
  0x52   : > { %s2637_s26 = scalar_lea.vmem %s457_s28, 64  ;;  %s2851_s10 = smov [#allocation8]  }
  0x53   : > { %p2638_p9 = scmp.ne.s32.totalorder %s457_s28, %s2637_s26  ;;  %s2642_s24 = sshll.u32 %s2851_s10, 4  ;;  %s2643_s24 = int_to_ptr.vmem [resolvable:$false] %s2642_s24 }
  0x54   : > { %s2644_s11 = scalar_lea.vmem %s2643_s24, 128  ;;  %p2645_p0 = scmp.lt.s32.totalorder %s457_s28, %s2643_s24 }
  0x55   : > { %p2640_p6 = pnand %p2638_p9, %p3023_p2  ;;  %p2646_p11 = scmp.lt.s32.totalorder %s2644_s11, %s2637_s26 }
  0x57   : > { %p2641_p12 = pneg %p2640_p6  ;;  %p2647_p13 = por %p2646_p11, %p2645_p0 }
  0x59   : > { %p2648_p8 = pnand %p2647_p13, %p2641_p12 }
  0x5b   : > { %2651 = shalt.err (!%p2648_p8)
}
  0x5c   : > { %p3604_p10 = scmp.ne.s32.totalorder %s3597_s19, 0  ;;  %s3605_s0 = sld [smem:[#allocation26_spill]] }
  0x5d   : > { %s388_s24 = scalar_lea.vmem [#allocation2], %s2998_s18  ;;  %s3096_s10 = scalar_lea.hbm %s3551_s2, %s2994_s17 }
  0x5e   : > { %2475 = dma.hbm_to_vmem [thread:$0]  (!%p3604_p10), %s3052_s20, 64, %s457_s28, %s3063_s27  }
  0x5f   : > { %s395_s29 = sshll.u32 %s388_s24, 4  ;;  %s3606_s11 = sand.u32 1, %s2844_s23   ;;  %s3090_s29 = int_to_ptr.vmem [resolvable:$true] %s395_s29 }
  0x60   : > { %s385_s20 = scalar_lea.sflag [#allocation3], %s3606_s11 }
  0x62   : > { %s3087_s14 = scalar_lea.hbm %s3605_s0, %s2994_s17  ;;  %s2657_s4 = scalar_lea.hbm %s3605_s0, 128 }
  0x63   : > { %s2652_s28 = scalar_lea.hbm %s3087_s14, 64  ;;  %p2658_p1 = scmp.lt.u32.totalorder %s3087_s14, %s3605_s0 }
  0x64   : > { %p2653_p13 = scmp.ne.s32.totalorder %s3087_s14, %s2652_s28  ;;  %p2659_p3 = scmp.lt.u32.totalorder %s2657_s4, %s2652_s28 }
  0x65   : > { %p2661_p7 = scmp.lt.u32.totalorder %s2652_s28, %s3087_s14 }
  0x66   : > { %p2655_p11 = pnand %p2653_p13, %p3023_p2  ;;  %p2660_p5 = por %p2659_p3, %p2658_p1 }
  0x68   : > { %p2656_p4 = pneg %p2655_p11  ;;  %p2662_p9 = por %p2661_p7, %p2660_p5 }
  0x6a   : > { %p2663_p6 = pnand %p2662_p9, %p2656_p4 }
  0x6c   : > { %2666 = shalt.err (!%p2663_p6)
}
  0x6d   : > { %s2667_s15 = scalar_lea.vmem %s3090_s29, 64  ;;  %s2852_s26 = smov [#allocation2]  }
  0x6e   : > { %p2668_p12 = scmp.ne.s32.totalorder %s3090_s29, %s2667_s15  ;;  %s2672_s11 = sshll.u32 %s2852_s26, 4  ;;  %s2673_s11 = int_to_ptr.vmem [resolvable:$false] %s2672_s11 }
  0x6f   : > { %s2674_s9 = scalar_lea.vmem %s2673_s11, 128  ;;  %p2675_p13 = scmp.lt.s32.totalorder %s3090_s29, %s2673_s11 }
  0x70   : > { %p2670_p0 = pnand %p2668_p12, %p3023_p2  ;;  %p2676_p11 = scmp.lt.s32.totalorder %s2674_s9, %s2667_s15 }
  0x72   : > { %p2671_p8 = pneg %p2670_p0  ;;  %p2677_p1 = por %p2676_p11, %p2675_p13 }
  0x74   : > { %p2678_p3 = pnand %p2677_p1, %p2671_p8 }
  0x76   : > { %2681 = shalt.err (!%p2678_p3)
}
  0x77   : > { %2466 = dma.hbm_to_vmem [thread:$0]  (!%p3604_p10), %s3087_s14, 64, %s3090_s29, %s385_s20  }
  0x78   : > { %s424_s4 = scalar_lea.vmem [#allocation7], %s2998_s18  ;;  %s3126_s24 = scalar_lea.hbm %s3554_s5, %s2994_s17 }
  0x79   : > { %s431_s28 = sshll.u32 %s424_s4, 4  ;;  %s2682_s15 = scalar_lea.hbm %s3096_s10, 64  ;;  %s432_s28 = int_to_ptr.vmem [resolvable:$true] %s431_s28 }
  0x7a   : > { %p2683_p4 = scmp.ne.s32.totalorder %s3096_s10, %s2682_s15  ;;  %s2687_s9 = scalar_lea.hbm %s3551_s2, 128 }
  0x7b   : > { %p2688_p9 = scmp.lt.u32.totalorder %s3096_s10, %s3551_s2  ;;  %p2689_p6 = scmp.lt.u32.totalorder %s2687_s9, %s2682_s15 }
  0x7c   : > { %p2685_p5 = pnand %p2683_p4, %p3023_p2  ;;  %p2691_p0 = scmp.lt.u32.totalorder %s2682_s15, %s3096_s10 }
  0x7d   : > { %p2690_p12 = por %p2689_p6, %p2688_p9 }
  0x7e   : > { %p2686_p7 = pneg %p2685_p5 }
  0x7f   : > { %p2692_p8 = por %p2691_p0, %p2690_p12 }
  0x81   : > { %p2693_p13 = pnand %p2692_p8, %p2686_p7 }
  0x83   : > { %2696 = shalt.err (!%p2693_p13)
}
  0x84   : > { %s2697_s17 = scalar_lea.vmem %s432_s28, 64  ;;  %s2853_s14 = smov [#allocation7]  }
  0x85   : > { %p2698_p11 = scmp.ne.s32.totalorder %s432_s28, %s2697_s17  ;;  %s2702_s29 = sshll.u32 %s2853_s14, 4  ;;  %s2703_s29 = int_to_ptr.vmem [resolvable:$false] %s2702_s29 }
  0x86   : > { %s2704_s20 = scalar_lea.vmem %s2703_s29, 128  ;;  %p2705_p4 = scmp.lt.s32.totalorder %s432_s28, %s2703_s29 }
  0x87   : > { %p2700_p1 = pnand %p2698_p11, %p3023_p2  ;;  %p2706_p5 = scmp.lt.s32.totalorder %s2704_s20, %s2697_s17 }
  0x89   : > { %p2701_p3 = pneg %p2700_p1  ;;  %p2707_p10 = por %p2706_p5, %p2705_p4 }
  0x8b   : > { %p2708_p6 = pnand %p2707_p10, %p2701_p3 }
  0x8d   : > { %2711 = shalt.err (!%p2708_p6)
}
  0x8e   : > { %p3607_p9 = scmp.ne.s32.totalorder %s3597_s19, 0  ;;  %s467_s0 = scalar_lea.vmem [#allocation10], %s2998_s18 }
  0x8f   : > { %s474_s23 = sshll.u32 %s467_s0, 4  ;;  %s2712_s4 = scalar_lea.hbm %s3126_s24, 64  ;;  %s475_s23 = int_to_ptr.vmem [resolvable:$true] %s474_s23 }
  0x90   : > { %2472 = dma.hbm_to_vmem [thread:$0]  (!%p3607_p9), %s3096_s10, 64, %s432_s28, %s3017_s16  }
  0x91   : > { %p2713_p7 = scmp.ne.s32.totalorder %s3126_s24, %s2712_s4  ;;  %s2717_s15 = scalar_lea.hbm %s3554_s5, 128 }
  0x92   : > { %p2718_p0 = scmp.lt.u32.totalorder %s3126_s24, %s3554_s5  ;;  %p2719_p8 = scmp.lt.u32.totalorder %s2717_s15, %s2712_s4 }
  0x93   : > { %p2715_p12 = pnand %p2713_p7, %p3023_p2  ;;  %p2721_p11 = scmp.lt.u32.totalorder %s2712_s4, %s3126_s24 }
  0x94   : > { %p2720_p13 = por %p2719_p8, %p2718_p0 }
  0x95   : > { %p2716_p10 = pneg %p2715_p12 }
  0x96   : > { %p2722_p1 = por %p2721_p11, %p2720_p13 }
  0x98   : > { %p2723_p3 = pnand %p2722_p1, %p2716_p10 }
  0x9a   : > { %2726 = shalt.err (!%p2723_p3)
}
  0x9b   : > { %s2727_s16 = scalar_lea.vmem %s475_s23, 64  ;;  %s2854_s18 = smov [#allocation10]  }
  0x9c   : > { %p2728_p4 = scmp.ne.s32.totalorder %s475_s23, %s2727_s16  ;;  %s2732_s10 = sshll.u32 %s2854_s18, 4  ;;  %s2733_s10 = int_to_ptr.vmem [resolvable:$false] %s2732_s10 }
  0x9d   : > { %s2734_s28 = scalar_lea.vmem %s2733_s10, 128  ;;  %p2735_p7 = scmp.lt.s32.totalorder %s475_s23, %s2733_s10 }
  0x9e   : > { %p2730_p5 = pnand %p2728_p4, %p3023_p2  ;;  %p2736_p12 = scmp.lt.s32.totalorder %s2734_s28, %s2727_s16 }
  0xa0   : > { %p2731_p6 = pneg %p2730_p5  ;;  %p2737_p9 = por %p2736_p12, %p2735_p7 }
  0xa2   : > { %p2738_p0 = pnand %p2737_p9, %p2731_p6 }
  0xa4   : > { %2741 = shalt.err (!%p2738_p0)
}
  0xa5   : > { %p3608_p8 = scmp.ne.s32.totalorder %s3597_s19, 0  ;;  %p3609_p10 = scmp.ne.s32.totalorder %s3602_s30, 0 }
  0xa6   : > { %s3168_s21 = sand.u32 (!%p3609_p10), 1, %s2840_s22   ;;  %p3610_p2 = scmp.ne.s32.totalorder (!%p3609_p10), %s3592_s13, 0 }
  0xa7   : > { %2478 = dma.hbm_to_vmem [thread:$0]  (!%p3608_p8), %s3126_s24, 64, %s475_s23, %s3063_s27  }
  0xa8   : > { %483 = sbr.rel (%p3609_p10) target bundleno = 2074 (0x81a), region = 64  ;;  %s3171_s9 = sshll.u32 (!%p3609_p10), %s3168_s21, 2 }
  0xa9   : > { %s486_s17 = scalar_lea.sflag (!%p3609_p10), [#allocation3], %s3168_s21  ;;  %s489_s14 = scalar_lea.vmem (!%p3609_p10), [#allocation2], %s3171_s9 }
  0xaf   : > { %2815 = dma.done.wait (%p3610_p2), %s486_s17, 64  }
  0xb0   : > { %2817 = vsyncadd (%p3610_p2), %s486_s17, 4294967232  ;;  %s494_s19 = sand.u32 1, %s2959_s25   ;;  %s498_s27 = scalar_lea.vmem [#allocation5], %s3171_s9 }
  0xb1   : > { %s495_s30 = scalar_lea.sflag [#allocation6], %s494_s19 }
  0xb2   : > { %2819 = dma.done.wait (%p3610_p2), %s495_s30, 128  }
  0xb3   : > { %2821 = vsyncadd (%p3610_p2), %s495_s30, 4294967168  ;;  %s507_s24 = scalar_lea.vmem [#allocation7], %s3171_s9  ;;  %s513_s29 = scalar_lea.sflag [#allocation9], %s494_s19 }
  0xb4   : > { %s516_s20 = scalar_lea.vmem [#allocation8], %s3171_s9 }
  0xb5   : > { %2823 = dma.done.wait (%p3610_p2), %s513_s29, 128  }
  0xb6   : > { %2825 = vsyncadd (%p3610_p2), %s513_s29, 4294967168  ;;  %v2855_v0 = vmov 0.0   ;;  %vm2856_vm0 = vmmov 0   ;;  %v2566_v1 = vld [vmem:[%s3556_s7] sm:$0xff]   ;;  %v2568_v3 = vld [vmem:[%s3556_s7 + $0x8] sm:$0xff]   ;;  %vm618_vm1 = vcmask 261120   ;;  %v777_v34 = vlaneseq }
  0xb7   : > { %2373 = vmatprep.subr.bf16.mxu1 %v2855_v0  ;;  %2365 = vmatprep.subr.bf16.mxu0 %v2855_v0  ;;  %v2567_v2 = vld [vmem:[%s3555_s6] sm:$0xff]   ;;  %v3208_v4 = vld [vmem:[%s498_s27] sm:$0xf]  ;;  %v3222_v7 = vld [vmem:[%s516_s20] sm:$0xf]  ;;  %s525_s11 = scalar_lea.vmem [#allocation10], %s3171_s9 }
  0xb8   : > { %2377 = vmatprep.mubr.msk.bf16.mxu1 %vm2856_vm0, %v2855_v0  ;;  %2369 = vmatprep.mubr.msk.bf16.mxu0 %vm2856_vm0, %v2855_v0  ;;  %v2569_v5 = vld [vmem:[%s3555_s6 + $0x8] sm:$0xff]   ;;  %v600_v6 = vld [vmem:[%s489_s14] sm:$0xf]  ;;  %s2857_s16 = smov 64   ;;  %v834_v12 = vunpack.c.l.bf16 %v3222_v7  ;;  %s2858_s18 = smov 16   ;;  %vm812_vm2 = vcmask 1048064  }
  0xb9   : > { %2374 = vmatpush3.bf16.msra.mxu1 %v2566_v1  ;;  %2366 = vmatpush3.bf16.msra.mxu0 %v2567_v2  ;;  %v848_v8 = vld [vmem:[%s525_s11] sm:$0xf]  ;;  %s2859_s10 = smov 48   ;;  %p595_p9 = scmp.lt.s32.totalorder %s2959_s25, 1  ;;  %v780_v22 = vld [vmem:[%s507_s24] sm:$0xf] }
  0xba   : > { %2375 = vmatprep.subr.bf16.mxu1 %v2855_v0  ;;  %2367 = vmatprep.subr.bf16.mxu0 %v2855_v0  ;;  %v849_v13 = vunpack.c.l.bf16 %v848_v8  ;;  %v781_v26 = vunpack.c.l.bf16 %v780_v22  ;;  %s2860_s27 = smov 32   ;;  %s2861_s9 = smov 65   ;;  %vm792_vm3 = vcmask 130048   ;;  %v778_v37 = vand.u32 127, %v777_v34 }
  0xbb   : > { %s596_s28 = scalar_select %p595_p9, %s2959_s25, 1  ;;  %vm795_vm4 = vcmask 392192   ;;  %vm1571_vm6 = vcmask 64512   ;;  %vm1627_vm7 = vcmask 1043456   ;;  %vm2000_vm8 = vcmask 523264  }
  0xbc   : > { %v2536_v19 = vpack.i.bf16 %v849_v13, %v834_v12  ;;  %s2862_s24 = smov 127   ;;  %v779_v44 = vand.u32 1, %v778_v37  ;;  %s2863_s29 = smov 96  }
  0xbd   : > { %2376 = vmatpush3.bf16.msra.mxu1 %v2568_v3  ;;  %2368 = vmatpush3.bf16.msra.mxu0 %v2569_v5  ;;  %s2301_s17 = sshll.u32 %s596_s28, 2  ;;  %s2864_s20 = smov 112  }
  0xbe   : > { %2389 = vmatprep.subr.bf16.mxu1 %v2855_v0  ;;  %2381 = vmatprep.subr.bf16.mxu0 %v2855_v0  ;;  %s598_s30 = scalar_lea.vmem %s3552_s3, %s2301_s17  ;;  %vm3257_vm5 = vcmp.eq.s32.totalorder %v779_v44, 0  ;;  %s2865_s0 = smov 80  }
  0xbf   : > { %v797_v23 = vld [vmem:[%s598_s30] sm:$0xf]  ;;  %s2300_s12 = sshll.u32 %s3168_s21, 5  ;;  %s2051_s23 = scalar_lea.sflag [#allocation13], %s3168_s21 }
  0xc0   : > { %2378 = vmatmul.mubr.msk.bf16.vlgmr.msra.gmra.mrb[0].mxu1 %vm618_vm1, %v3208_v4  ;;  %2370 = vmatmul.mubr.msk.bf16.vlgmr.msra.gmra.mrb[0].mxu0 %vm618_vm1, %v600_v6  ;;  %v798_v27 = vunpack.c.l.bf16 %v797_v23  ;;  %s3387_s15 = scalar_lea.vmem [#allocation12], %s2300_s12  ;;  %s2869_s1 = smov [#allocation12]  }
  0xc1   : > { %2391 = vmatprep.mubr.msk.bf16.mxu1 %vm2856_vm0, %v2855_v0  ;;  %2385 = vmatprep.mubr.msk.bf16.mxu0 %vm2856_vm0, %v2855_v0  ;;  %s2746_s13 = sshll.u32 %s2869_s1, 4  ;;  %s2747_s13 = int_to_ptr.vmem [resolvable:$false] %s2746_s13 }
  0xc2   : > { %v2551_v28 = vpack.i.bf16 %v798_v27, %v781_v26  ;;  %s2748_s12 = scalar_lea.vmem %s2747_s13, 1024 }
 0x193   : > { %v3225_v9 = vpop.f32.mrb[0].mxu1  ;;  %v3228_v11 = vpop.f32.mrb[0].mxu0 }
 0x194   : > { %863 = vrot.lane.b32.xlu0 %v3225_v9, %s2857_s16  ;;  %v2379_v10 = vpop.f32.mrb[1].mxu1  ;;  %v2371_v15 = vpop.f32.mrb[1].mxu0 }
 0x195   : > { %v718_v14 = vpop.f32.mrb[2].mxu1  ;;  %v659_v17 = vpop.f32.mrb[2].mxu0 }
 0x196   : > { %v2380_v16 = vpop.f32.mrb[3].mxu1  ;;  %v2372_v18 = vpop.f32.mrb[3].mxu0 }
 0x198   : > { %813 = vrot.lane.b32.xlu0 %v3228_v11, %s2857_s16 }
 0x19c   : > { %2537 = vrot.lane.b32.xlu0 %v2536_v19, %s2858_s18 }
 0x1a0   : > { %2547 = vrot.lane.b32.xlu0 %v2536_v19, %s2859_s10 }
 0x206   : > { %v864_v20 = vpop.permute.xlu0 %863 }
 0x207   : > { %v865_v21 = vsel %vm812_vm2, %v864_v20, %v3225_v9  ;;  %v2570_v20 = vld [vmem:[%s3557_s8] sm:$0xff]  }
 0x208   : > { %866 = vrot.lane.b32.xlu1 %v865_v21, %s2857_s16  ;;  %2382 = vmatpush3.bf16.msra.mxu0 %v2570_v20  ;;  %v2866_v21 = vmov 1983009808  }
 0x209   : > { %2383 = vmatprep.subr.bf16.mxu0 %v2855_v0  ;;  %v889_v22 = vunpack.c.l.s4 %v2866_v21 }
 0x20a   : > { %v814_v24 = vpop.permute.xlu0 %813 }
 0x20b   : > { %v815_v25 = vsel %vm812_vm2, %v814_v24, %v3228_v11  ;;  %v890_v23 = vunpack.c.0.s8 %v889_v22  ;;  %v892_v24 = vshrl.u32 %v777_v34, 7 }
 0x20c   : > { %816 = vrot.lane.b32.xlu1 %v815_v25, %s2857_s16  ;;  %v2867_v25 = vmov 1934713408   ;;  %s3613_s16 = sld [smem:[#allocation29_spill]] }
 0x20e   : > { %v2538_v33 = vpop.permute.xlu0 %2537 }
 0x20f   : > { %v2540_v35 = vunpack.i.h.bf16 %v2538_v33  ;;  %v2539_v38 = vunpack.i.l.bf16 %v2538_v33 }
 0x210   : > { %2542 = vrot.lane.b32.xlu1 %v2536_v19, %s2860_s27 }
 0x211   : > { %v860_v41 = vsel %vm792_vm3, %v849_v13, %v2540_v35  ;;  %v845_v45 = vsel %vm792_vm3, %v834_v12, %v2539_v38 }
 0x212   : > { %v2548_v40 = vpop.permute.xlu0 %2547 }
 0x213   : > { %v2550_v46 = vunpack.i.h.bf16 %v2548_v40  ;;  %v2549_v48 = vunpack.i.l.bf16 %v2548_v40  ;;  %v2868_v40 = vmov 0  }
 0x214   : > { %2552 = vrot.lane.b32.xlu1 %v2551_v28, %s2858_s18 }
 0x27a   : > { %v867_v29 = vpop.permute.xlu1 %866 }
 0x27b   : > { %v868_v30 = vsel %vm812_vm2, %v867_v29, %v3225_v9 }
 0x27c   : > { %873 = vrot.lane.b32.xlu0 %v868_v30, %s2861_s9  ;;  %870 = vrot.lane.b32.xlu1 %v868_v30, %s2862_s24 }
 0x27e   : > { %v817_v31 = vpop.permute.xlu1 %816 }
 0x27f   : > { %v818_v32 = vsel %vm812_vm2, %v817_v31, %v3228_v11 }
 0x280   : > { %2557 = vrot.lane.b32.xlu0 %v2551_v28, %s2860_s27  ;;  %2562 = vrot.lane.b32.xlu1 %v2551_v28, %s2859_s10 }
 0x282   : > { %v2543_v36 = vpop.permute.xlu1 %2542 }
 0x283   : > { %v2545_v39 = vunpack.i.h.bf16 %v2543_v36  ;;  %v2544_v42 = vunpack.i.l.bf16 %v2543_v36 }
 0x284   : > { %826 = vrot.lane.b32.xlu1 %v818_v32, %s2861_s9  ;;  %823 = vrot.lane.b32.xlu0 %v818_v32, %s2862_s24  ;;  %s3614_s24 = sld [smem:[#allocation24_spill]] }
 0x285   : > { %v861_v47 = vsel %vm618_vm1, %v860_v41, %v2545_v39  ;;  %v846_v50 = vsel %vm618_vm1, %v845_v45, %v2544_v42 }
 0x286   : > { %v2553_v43 = vpop.permute.xlu1 %2552  ;;  %v862_v51 = vsel %vm795_vm4, %v861_v47, %v2550_v46  ;;  %v847_v54 = vsel %vm795_vm4, %v846_v50, %v2549_v48 }
 0x287   : > { %v2555_v56 = vunpack.i.h.bf16 %v2553_v43  ;;  %v2554_v57 = vunpack.i.l.bf16 %v2553_v43  ;;  %v877_v58 = vmul.f32 %v862_v51, %v3225_v9 }
 0x289   : > { %v809_v5 = vsel %vm792_vm3, %v798_v27, %v2555_v56  ;;  %v793_v6 = vsel %vm792_vm3, %v781_v26, %v2554_v57  ;;  %v906_v26 = vunpack.c.l.s4 %v2867_v25  ;;  %v3295_v27 = vsub.s32 %v890_v23, %v892_v24 }
 0x28a   : > { %p3616_p11 = scmp.ne.s32.totalorder %s3614_s24, 0 }
 0x28b   : > { %v907_v28 = vunpack.c.0.s8 %v906_v26 }
 0x28d   : > { %v3297_v31 = vsub.s32 %v907_v28, %v892_v24 }
 0x2ee   : > { %v871_v52 = vpop.permute.xlu1 %870  ;;  %v874_v53 = vpop.permute.xlu0 %873 }
 0x2ef   : > { %v876_v55 = vsel %vm3257_vm5, %v871_v52, %v874_v53 }
 0x2f0   : > { %v878_v59 = vmul.f32 %v876_v55, %v847_v54 }
 0x2f2   : > { %v879_v60 = vadd.f32 %v878_v59, %v877_v58  ;;  %v2563_v61 = vpop.permute.xlu1 %2562  ;;  %v2558_v62 = vpop.permute.xlu0 %2557 }
 0x2f3   : > { %v2565_v63 = vunpack.i.h.bf16 %v2563_v61  ;;  %v2564_v1 = vunpack.i.l.bf16 %v2563_v61  ;;  %v2560_v2 = vunpack.i.h.bf16 %v2558_v62  ;;  %v2559_v3 = vunpack.i.l.bf16 %v2558_v62 }
 0x2f4   : > { %v1049_v7 = vpack.c.bf16 %v879_v60, %v879_v60 }
 0x2f5   : > { %v810_v8 = vsel %vm618_vm1, %v809_v5, %v2560_v2  ;;  %v794_v10 = vsel %vm618_vm1, %v793_v6, %v2559_v3 }
 0x2f6   : > { %v827_v12 = vpop.permute.xlu1 %826  ;;  %v824_v13 = vpop.permute.xlu0 %823  ;;  %v796_v9 = vsel %vm795_vm4, %v794_v10, %v2564_v1  ;;  %v811_v14 = vsel %vm795_vm4, %v810_v8, %v2565_v63  ;;  %1053 = vrot.lane.b32.xlu1 %v1049_v7, %s2863_s29  ;;  %1051 = vrot.lane.b32.xlu0 %v1049_v7, %s2864_s20  ;;  %v1063_v32 = vrot.slane %v1049_v7, %v3295_v27 }
 0x2f7   : > { %v829_v15 = vsel %vm3257_vm5, %v824_v13, %v827_v12  ;;  %v830_v16 = vmul.f32 %v811_v14, %v3228_v11  ;;  %v2571_v11 = vld [vmem:[%s3557_s8 + $0x8] sm:$0xff]  }
 0x2f8   : > { %v831_v17 = vmul.f32 %v829_v15, %v796_v9  ;;  %2384 = vmatpush3.bf16.msra.mxu0 %v2571_v11 }
 0x2f9   : > { %2395 = vmatprep.subr.bf16.mxu0 %v2855_v0 }
 0x2fa   : > { %v832_v18 = vadd.f32 %v831_v17, %v830_v16  ;;  %1055 = vrot.lane.b32.xlu0 %v1049_v7, %s2865_s0 }
 0x2fb   : > { %2386 = vmatmul.mubr.msk.bf16.vlgmr.msra.gmra.mrb[4].mxu0 %vm618_vm1, %v3208_v4 }
 0x2fc   : > { %v880_v19 = vpack.c.bf16 %v832_v18, %v832_v18  ;;  %2397 = vmatprep.mubr.msk.bf16.mxu0 %vm2856_vm0, %v2855_v0 }
 0x2fe   : > { %882 = vrot.lane.b32.xlu1 %v880_v19, %s2864_s20  ;;  %884 = vrot.lane.b32.xlu0 %v880_v19, %s2863_s29  ;;  %v894_v47 = vrot.slane %v880_v19, %v3295_v27 }
 0x302   : > { %886 = vrot.lane.b32.xlu1 %v880_v19, %s2865_s0 }
 0x368   : > { %v1054_v29 = vpop.permute.xlu1 %1053  ;;  %v1052_v30 = vpop.permute.xlu0 %1051 }
 0x369   : > { %v1071_v4 = vrot.slane %v1054_v29, %v3295_v27  ;;  %v1097_v39 = vrot.slane %v1052_v30, %v3295_v27 }
 0x36b   : > { %v1072_v33 = vcombine.low %v1063_v32, %v1071_v4  ;;  %v1073_v35 = vcombine.high %v1063_v32, %v1071_v4 }
 0x36c   : > { %v1056_v36 = vpop.permute.xlu0 %1055 }
 0x36d   : > { %v1080_v37 = vrot.slane %v1072_v33, %v3297_v31  ;;  %v1087_v34 = vrot.slane %v1073_v35, %v3297_v31  ;;  %v1105_v38 = vrot.slane %v1056_v36, %v3295_v27 }
 0x36f   : > { %v1088_v41 = vcombine.high %v1080_v37, %v2868_v40  ;;  %v1106_v42 = vcombine.low %v1097_v39, %v1105_v38  ;;  %v1107_v43 = vcombine.high %v1097_v39, %v1105_v38  ;;  %v1089_v45 = vcombine.high %v1087_v34, %v2868_v40 }
 0x370   : > { %v885_v44 = vpop.permute.xlu0 %884  ;;  %v883_v46 = vpop.permute.xlu1 %882  ;;  %v1128_v51 = vshrl.u32 %v1080_v37, 16  ;;  %v1144_v53 = vshrl.u32 %v1087_v34, 16 }
 0x371   : > { %v902_v48 = vrot.slane %v885_v44, %v3295_v27  ;;  %v1114_v49 = vrot.slane %v1106_v42, %v3297_v31  ;;  %v1121_v50 = vrot.slane %v1107_v43, %v3297_v31  ;;  %v1136_v52 = vshrl.u32 %v1088_v41, 16 }
 0x372   : > { %v1152_v59 = vshrl.u32 %v1089_v45, 16  ;;  %v928_v17 = vrot.slane %v883_v46, %v3295_v27 }
 0x373   : > { %v903_v54 = vcombine.low %v894_v47, %v902_v48  ;;  %v1122_v55 = vcombine.high %v1114_v49, %v2868_v40  ;;  %v1123_v56 = vcombine.high %v1121_v50, %v2868_v40  ;;  %v1126_v57 = vpack.i.b16 %v1114_v49, %v1080_v37 }
 0x374   : > { %v1129_v58 = vshrl.u32 %v1114_v49, 16  ;;  %v1142_v60 = vpack.i.b16 %v1121_v50, %v1087_v34  ;;  %v1145_v61 = vshrl.u32 %v1121_v50, 16  ;;  %v904_v62 = vcombine.high %v894_v47, %v902_v48  ;;  %v887_v10 = vpop.permute.xlu1 %886 }
 0x375   : > { %v1134_v1 = vpack.i.b16 %v1122_v55, %v1088_v41  ;;  %v1137_v2 = vshrl.u32 %v1122_v55, 16  ;;  %v1150_v3 = vpack.i.b16 %v1123_v56, %v1089_v45  ;;  %v1153_v6 = vshrl.u32 %v1123_v56, 16 }
 0x376   : > { %v1130_v63 = vpack.i.b16 %v1129_v58, %v1128_v51  ;;  %v1146_v5 = vpack.i.b16 %v1145_v61, %v1144_v53  ;;  %v1156_v7 = vcombine.low %v1126_v57, %v1142_v60  ;;  %v911_v8 = vrot.slane %v903_v54, %v3297_v31 }
 0x377   : > { %v1138_v12 = vpack.i.b16 %v1137_v2, %v1136_v52  ;;  %v1164_v13 = vcombine.low %v1134_v1, %v1150_v3  ;;  %v1154_v9 = vpack.i.b16 %v1153_v6, %v1152_v59  ;;  %v918_v15 = vrot.slane %v904_v62, %v3297_v31 }
 0x378   : > { %v1181_v14 = vcombine.low %v1130_v63, %v1146_v5  ;;  %v1163_v16 = vrot.slane %v1156_v7, %v3295_v27  ;;  %v936_v18 = vrot.slane %v887_v10, %v3295_v27  ;;  %v919_v11 = vcombine.high %v911_v8, %v2868_v40 }
 0x379   : > { %v1171_v19 = vrot.slane %v1164_v13, %v3295_v27  ;;  %v1189_v20 = vcombine.low %v1138_v12, %v1154_v9  ;;  %v920_v24 = vcombine.high %v918_v15, %v2868_v40  ;;  %v959_v28 = vshrl.u32 %v911_v8, 16 }
 0x37a   : > { %v937_v21 = vcombine.low %v928_v17, %v936_v18  ;;  %v938_v22 = vcombine.high %v928_v17, %v936_v18  ;;  %v1188_v25 = vrot.slane %v1181_v14, %v3295_v27  ;;  %v967_v32 = vshrl.u32 %v919_v11, 16 }
 0x37b   : > { %v1172_v23 = vcombine.low %v1163_v16, %v1171_v19  ;;  %v1196_v26 = vrot.slane %v1189_v20, %v3295_v27  ;;  %v975_v4 = vshrl.u32 %v918_v15, 16  ;;  %v983_v39 = vshrl.u32 %v920_v24, 16 }
 0x37c   : > { %v945_v29 = vrot.slane %v937_v21, %v3297_v31  ;;  %v952_v30 = vrot.slane %v938_v22, %v3297_v31 }
 0x37d   : > { %v1179_v33 = vrot.slane %v1172_v23, %v3297_v31  ;;  %v1197_v35 = vcombine.low %v1188_v25, %v1196_v26 }
 0x37e   : > { %v953_v36 = vcombine.high %v945_v29, %v2868_v40  ;;  %v954_v37 = vcombine.high %v952_v30, %v2868_v40  ;;  %v957_v34 = vpack.i.b16 %v945_v29, %v911_v8  ;;  %v960_v38 = vshrl.u32 %v945_v29, 16 }
 0x37f   : > { %v973_v41 = vpack.i.b16 %v952_v30, %v918_v15  ;;  %v976_v42 = vshrl.u32 %v952_v30, 16  ;;  %v1204_v43 = vrot.slane %v1197_v35, %v3297_v31  ;;  %v1209_v54 = vshrl.u32 %v1179_v33, 16 }
 0x380   : > { %v961_v44 = vpack.i.b16 %v960_v38, %v959_v28  ;;  %v965_v45 = vpack.i.b16 %v953_v36, %v919_v11  ;;  %v968_v46 = vshrl.u32 %v953_v36, 16  ;;  %v981_v47 = vpack.i.b16 %v954_v37, %v920_v24 }
 0x381   : > { %v977_v48 = vpack.i.b16 %v976_v42, %v975_v4  ;;  %v984_v49 = vshrl.u32 %v954_v37, 16  ;;  %v987_v50 = vcombine.low %v957_v34, %v973_v41  ;;  %v1208_v51 = vpack.i.b16 %v1204_v43, %v1179_v33 }
 0x382   : > { %v969_v52 = vpack.i.b16 %v968_v46, %v967_v32  ;;  %v995_v53 = vcombine.low %v965_v45, %v981_v47  ;;  %v1210_v55 = vshrl.u32 %v1204_v43, 16  ;;  %v1205_v63 = vcombine.high %v1204_v43, %v2868_v40 }
 0x383   : > { %v985_v56 = vpack.i.b16 %v984_v49, %v983_v39  ;;  %v1012_v57 = vcombine.low %v961_v44, %v977_v48  ;;  %v1391_v58 = vsel %vm792_vm3, %v1208_v51, 0  ;;  %v994_v59 = vrot.slane %v987_v50, %v3295_v27 }
 0x384   : > { %v1002_v60 = vrot.slane %v995_v53, %v3295_v27  ;;  %2390 = vmatpush3.bf16.xpose.msra.mxu1 %v1391_v58  ;;  %v1211_v61 = vpack.i.b16 %v1210_v55, %v1209_v54  ;;  %v1180_v6 = vcombine.high %v1179_v33, %v2868_v40  ;;  %v1216_v10 = vshrl.u32 %v1205_v63, 16 }
 0x385   : > { %v1020_v62 = vcombine.low %v969_v52, %v985_v56  ;;  %2401 = vmatprep.subr.bf16.mxu1 %v2855_v0  ;;  %v1019_v3 = vrot.slane %v1012_v57, %v3295_v27 }
 0x386   : > { %v1003_v1 = vcombine.low %v994_v59, %v1002_v60  ;;  %v1437_v2 = vsel %vm792_vm3, %v1211_v61, 0  ;;  %v1214_v13 = vpack.i.b16 %v1205_v63, %v1180_v6  ;;  %v1215_v9 = vshrl.u32 %v1180_v6, 16 }
 0x387   : > { %v1027_v5 = vrot.slane %v1020_v62, %v3295_v27  ;;  %2396 = vmatpush3.bf16.xpose.msra.mxu0 %v1437_v2 }
 0x388   : > { %2407 = vmatprep.subr.bf16.mxu0 %v2855_v0  ;;  %v1010_v8 = vrot.slane %v1003_v1, %v3297_v31  ;;  %v1217_v17 = vpack.i.b16 %v1216_v10, %v1215_v9  ;;  %v1483_v18 = vsel %vm792_vm3, %v1214_v13, 0 }
 0x389   : > { %v1028_v7 = vcombine.low %v1019_v3, %v1027_v5 }
 0x38a   : > { %v1040_v15 = vshrl.u32 %v1010_v8, 16  ;;  %v1529_v11 = vsel %vm792_vm3, %v1217_v17, 0  ;;  %v1011_v21 = vcombine.high %v1010_v8, %v2868_v40 }
 0x38b   : > { %v1035_v12 = vrot.slane %v1028_v7, %v3297_v31 }
 0x38c   : > { %v1046_v24 = vshrl.u32 %v1011_v21, 16 }
 0x38d   : > { %v1039_v14 = vpack.i.b16 %v1035_v12, %v1010_v8  ;;  %v1041_v16 = vshrl.u32 %v1035_v12, 16  ;;  %v1036_v20 = vcombine.high %v1035_v12, %v2868_v40 }
 0x38f   : > { %2392 = vmatmul.mubr.msk.bf16.vlgmr.msra.gmra.mrb[4].mxu1 %vm792_vm3, %v1039_v14  ;;  %v1042_v19 = vpack.i.b16 %v1041_v16, %v1040_v15  ;;  %v1047_v22 = vshrl.u32 %v1036_v20, 16  ;;  %v1045_v23 = vpack.i.b16 %v1036_v20, %v1011_v21 }
 0x390   : > { %2402 = vmatpush3.bf16.xpose.msra.mxu1 %v1483_v18  ;;  %2403 = vmatprep.mubr.msk.bf16.mxu1 %vm2856_vm0, %v2855_v0 }
 0x391   : > { %2398 = vmatmul.mubr.msk.bf16.vlgmr.msra.gmra.mrb[8].mxu0 %vm792_vm3, %v1042_v19  ;;  %2413 = vmatprep.subr.bf16.mxu1 %v2855_v0  ;;  %v1048_v25 = vpack.i.b16 %v1047_v22, %v1046_v24 }
 0x392   : > { %2408 = vmatpush3.bf16.xpose.msra.mxu0 %v1529_v11  ;;  %2409 = vmatprep.mubr.msk.bf16.mxu0 %vm2856_vm0, %v2855_v0 }
 0x393   : > { %2419 = vmatprep.subr.bf16.mxu0 %v2855_v0 }
 0x397   : > { %2404 = vmatmul.mubr.msk.bf16.vlgmr.msra.gmra.mrb[8].mxu1 %vm792_vm3, %v1045_v23 }
 0x398   : > { %2415 = vmatprep.mubr.msk.bf16.mxu1 %vm2856_vm0, %v2855_v0 }
 0x399   : > { %2410 = vmatmul.mubr.msk.bf16.vlgmr.msra.gmra.mrb[12].mxu0 %vm792_vm3, %v1048_v25 }
 0x39a   : > { %2421 = vmatprep.mubr.msk.bf16.mxu0 %vm2856_vm0, %v2855_v0 }
 0x3ce   : > { %v771_v26 = vpop.f32.mrb[4].mxu0 }
 0x3cf   : > { %v2387_v28 = vpop.f32.mrb[5].mxu0  ;;  %v1218_v52 = vpack.c.bf16 %v771_v26, %v771_v26 }
 0x3d0   : > { %v774_v29 = vpop.f32.mrb[6].mxu0 }
 0x3d1   : > { %v2388_v30 = vpop.f32.mrb[7].mxu0  ;;  %v1232_v11 = vrot.slane %v1218_v52, %v3295_v27 }
 0x462   : > { %v1427_v32 = vpop.f32.mrb[4].mxu1 }
 0x463   : > { %v2393_v4 = vpop.f32.mrb[5].mxu1  ;;  %v1572_v33 = vsel %vm1571_vm6, %v1427_v32, -inf }
 0x464   : > { %1573 = vmax.xlane.f32.xlu0 %v1572_v33  ;;  %v1430_v35 = vpop.f32.mrb[6].mxu1  ;;  %v1473_v36 = vpop.f32.mrb[8].mxu0 }
 0x465   : > { %v2394_v37 = vpop.f32.mrb[7].mxu1  ;;  %v2399_v34 = vpop.f32.mrb[9].mxu0  ;;  %v1575_v38 = vsel %vm1571_vm6, %v1473_v36, -inf }
 0x466   : > { %1576 = vmax.xlane.f32.xlu1 %v1575_v38  ;;  %v1476_v39 = vpop.f32.mrb[10].mxu0 }
 0x467   : > { %v2400_v41 = vpop.f32.mrb[11].mxu0 }
 0x46a   : > { %v1519_v42 = vpop.f32.mrb[8].mxu1 }
 0x46b   : > { %v2405_v43 = vpop.f32.mrb[9].mxu1  ;;  %v1578_v44 = vsel %vm1571_vm6, %v1519_v42, -inf }
 0x46c   : > { %1579 = vmax.xlane.f32.xlu0 %v1578_v44  ;;  %v1522_v45 = vpop.f32.mrb[10].mxu1  ;;  %v1565_v46 = vpop.f32.mrb[12].mxu0 }
 0x46d   : > { %v2406_v47 = vpop.f32.mrb[11].mxu1  ;;  %v2411_v48 = vpop.f32.mrb[13].mxu0  ;;  %v1581_v51 = vsel %vm1571_vm6, %v1565_v46, -inf }
 0x46e   : > { %v1568_v49 = vpop.f32.mrb[14].mxu0 }
 0x46f   : > { %v2412_v50 = vpop.f32.mrb[15].mxu0 }
 0x470   : > { %1582 = vmax.xlane.f32.xlu0 %v1581_v51 }
 0x477   : > { %1220 = vrot.lane.b32.xlu1 %v1218_v52, %s2864_s20 }
 0x4f1   : > { %v1574_v53 = vpop.xlane.xlu0 %1573 }
 0x4f2   : > { %v1584_v54 = vsub.f32 %v1427_v32, %v1574_v53 }
 0x4f3   : > { %v1577_v55 = vpop.xlane.xlu1 %1576 }
 0x4f4   : > { %v1588_v56 = vmul.f32 1.442695, %v1584_v54  ;;  %v1585_v57 = vsub.f32 %v1473_v36, %v1577_v55 }
 0x4f6   : > { %2576 = vpow2.f32 %v1588_v56  ;;  %v1590_v58 = vmul.f32 1.442695, %v1585_v57 }
 0x4f7   : > { %v1221_v13 = vpop.permute.xlu1 %1220 }
 0x4f8   : > { %2578 = vpow2.f32 %v1590_v58  ;;  %v1266_v16 = vrot.slane %v1221_v13, %v3295_v27 }
 0x4f9   : > { %v1580_v63 = vpop.xlane.xlu0 %1579 }
 0x4fa   : > { %v1586_v2 = vsub.f32 %v1519_v42, %v1580_v63 }
 0x4fc   : > { %v1592_v5 = vmul.f32 1.442695, %v1586_v2 }
 0x4fd   : > { %v1583_v1 = vpop.xlane.xlu0 %1582 }
 0x4fe   : > { %v1587_v3 = vsub.f32 %v1565_v46, %v1583_v1  ;;  %2580 = vpow2.f32 %v1592_v5 }
 0x500   : > { %v2577_v59 = vpop.eup %2576  ;;  %v1594_v6 = vmul.f32 1.442695, %v1587_v3 }
 0x501   : > { %v1596_v60 = vsel %vm1571_vm6, %v2577_v59, 0.0 }
 0x502   : > { %v2579_v61 = vpop.eup %2578  ;;  %1597 = vadd.xlane.f32.xlu1 %v1596_v60  ;;  %2582 = vpow2.f32 %v1594_v6 }
 0x503   : > { %v1599_v62 = vsel %vm1571_vm6, %v2579_v61, 0.0 }
 0x504   : > { %1600 = vadd.xlane.f32.xlu0 %v1599_v62 }
 0x508   : > { %v3368_v7 = vpop.eup %2580 }
 0x509   : > { %v1602_v10 = vsel %vm1571_vm6, %v3368_v7, 0.0 }
 0x50c   : > { %v3370_v8 = vpop.eup %2582 }
 0x50d   : > { %v1605_v12 = vsel %vm1571_vm6, %v3370_v8, 0.0 }
 0x513   : > { %1224 = vrot.lane.b32.xlu1 %v1218_v52, %s2865_s0  ;;  %s3615_s0 = sld [smem:[#allocation32_spill]] }
 0x51a   : > { %1222 = vrot.lane.b32.xlu0 %v1218_v52, %s2863_s29  ;;  %s2334_s29 = sshll.u32 %s2959_s25, 9 }
 0x537   : > { %1603 = vadd.xlane.f32.xlu1 %v1602_v10 }
 0x539   : > { %1606 = vadd.xlane.f32.xlu0 %v1605_v12 }
 0x58f   : > { %v1598_v9 = vpop.xlane.xlu1 %1597 }
 0x590   : > { %2584 = vrcp.f32 %v1598_v9 }
 0x591   : > { %v1601_v14 = vpop.xlane.xlu0 %1600 }
 0x592   : > { %2586 = vrcp.f32 %v1601_v14 }
 0x593   : > { %v1225_v15 = vpop.permute.xlu1 %1224 }
 0x594   : > { %v1274_v17 = vrot.slane %v1225_v15, %v3295_v27 }
 0x595   : > { %v1223_v18 = vpop.permute.xlu0 %1222 }
 0x596   : > { %v1275_v19 = vcombine.low %v1266_v16, %v1274_v17  ;;  %v1276_v20 = vcombine.high %v1266_v16, %v1274_v17  ;;  %v1240_v21 = vrot.slane %v1223_v18, %v3295_v27 }
 0x598   : > { %v1283_v22 = vrot.slane %v1275_v19, %v3297_v31  ;;  %v1290_v23 = vrot.slane %v1276_v20, %v3297_v31  ;;  %v1241_v24 = vcombine.low %v1232_v11, %v1240_v21  ;;  %v1242_v25 = vcombine.high %v1232_v11, %v1240_v21 }
 0x59a   : > { %v2585_v26 = vpop.eup %2584  ;;  %v1291_v28 = vcombine.high %v1283_v22, %v2868_v40  ;;  %v1292_v29 = vcombine.high %v1290_v23, %v2868_v40  ;;  %v1249_v32 = vrot.slane %v1241_v24, %v3297_v31  ;;  %v1256_v4 = vrot.slane %v1242_v25, %v3297_v31 }
 0x59b   : > { %v1609_v30 = vmul.f32 %v2585_v26, %v2577_v59  ;;  %v1298_v35 = vshrl.u32 %v1283_v22, 16  ;;  %v1314_v37 = vshrl.u32 %v1290_v23, 16 }
 0x59c   : > { %v2587_v33 = vpop.eup %2586  ;;  %v1306_v36 = vshrl.u32 %v1291_v28, 16  ;;  %v1257_v38 = vcombine.high %v1249_v32, %v2868_v40  ;;  %v1258_v39 = vcombine.high %v1256_v4, %v2868_v40  ;;  %v1295_v41 = vpack.i.b16 %v1283_v22, %v1249_v32 }
 0x59d   : > { %1616 = vst.msk [vmem:[%s3387_s15] sm:$0xff] %vm1571_vm6, %v1609_v30  ;;  %v1611_v34 = vmul.f32 %v2587_v33, %v2579_v61  ;;  %v1322_v42 = vshrl.u32 %v1292_v29, 16  ;;  %v1297_v43 = vshrl.u32 %v1249_v32, 16  ;;  %v1311_v44 = vpack.i.b16 %v1290_v23, %v1256_v4 }
 0x59e   : > { %v1313_v45 = vshrl.u32 %v1256_v4, 16  ;;  %v1303_v46 = vpack.i.b16 %v1291_v28, %v1257_v38  ;;  %v1305_v47 = vshrl.u32 %v1257_v38, 16  ;;  %v1319_v48 = vpack.i.b16 %v1292_v29, %v1258_v39 }
 0x59f   : > { %1617 = vst.msk [vmem:[%s3387_s15 + $0x8] sm:$0xff] %vm1571_vm6, %v1611_v34  ;;  %v1321_v49 = vshrl.u32 %v1258_v39, 16  ;;  %v1299_v50 = vpack.i.b16 %v1298_v35, %v1297_v43  ;;  %v1325_v52 = vcombine.low %v1295_v41, %v1311_v44  ;;  %v1620_v18 = vpack.c.bf16 %v1609_v30, %v1609_v30 }
 0x5a0   : > { %v1315_v51 = vpack.i.b16 %v1314_v37, %v1313_v45  ;;  %v1307_v53 = vpack.i.b16 %v1306_v36, %v1305_v47  ;;  %v1333_v55 = vcombine.low %v1303_v46, %v1319_v48  ;;  %v1621_v11 = vpack.c.bf16 %v1611_v34, %v1611_v34 }
 0x5a1   : > { %v1323_v54 = vpack.i.b16 %v1322_v42, %v1321_v49  ;;  %v1332_v57 = vrot.slane %v1325_v52, %v3295_v27 }
 0x5a2   : > { %v1350_v56 = vcombine.low %v1299_v50, %v1315_v51  ;;  %v1340_v59 = vrot.slane %v1333_v55, %v3295_v27 }
 0x5a3   : > { %v1358_v58 = vcombine.low %v1307_v53, %v1323_v54 }
 0x5a4   : > { %v1341_v60 = vcombine.low %v1332_v57, %v1340_v59  ;;  %v1357_v61 = vrot.slane %v1350_v56, %v3295_v27  ;;  %v2574_v59 = vld [vmem:[%s3613_s16 + $0x10] sm:$0xff]  }
 0x5a5   : > { %v1365_v62 = vrot.slane %v1358_v58, %v3295_v27 }
 0x5a6   : > { %v1348_v63 = vrot.slane %v1341_v60, %v3297_v31 }
 0x5a7   : > { %v1366_v1 = vcombine.low %v1357_v61, %v1365_v62 }
 0x5a8   : > { %v1349_v3 = vcombine.high %v1348_v63, %v2868_v40  ;;  %v1378_v6 = vshrl.u32 %v1348_v63, 16 }
 0x5a9   : > { %v1373_v2 = vrot.slane %v1366_v1, %v3297_v31 }
 0x5aa   : > { %v1384_v13 = vshrl.u32 %v1349_v3, 16 }
 0x5ab   : > { %v1377_v5 = vpack.i.b16 %v1373_v2, %v1348_v63  ;;  %v1379_v10 = vshrl.u32 %v1373_v2, 16  ;;  %v1374_v12 = vcombine.high %v1373_v2, %v2868_v40 }
 0x5ad   : > { %v1629_v9 = vsel %vm1627_vm7, %v1377_v5, 0  ;;  %v1380_v14 = vpack.i.b16 %v1379_v10, %v1378_v6  ;;  %v1383_v15 = vpack.i.b16 %v1374_v12, %v1349_v3  ;;  %v1385_v16 = vshrl.u32 %v1374_v12, 16  ;;  %v2575_v6 = vld [vmem:[%s3613_s16 + $0x18] sm:$0xff]  }
 0x5ae   : > { %2414 = vmatpush3.bf16.msra.mxu1 %v1629_v9 }
 0x5af   : > { %v1675_v17 = vsel %vm1627_vm7, %v1380_v14, 0  ;;  %2425 = vmatprep.subr.bf16.mxu1 %v2855_v0  ;;  %v1386_v19 = vpack.i.b16 %v1385_v16, %v1384_v13  ;;  %v1721_v20 = vsel %vm1627_vm7, %v1383_v15, 0 }
 0x5b0   : > { %2420 = vmatpush3.bf16.msra.mxu0 %v1675_v17 }
 0x5b1   : > { %2416 = vmatmul.mubr.msk.bf16.vlgmr.msra.gmra.mrb[12].mxu1 %vm1571_vm6, %v1620_v18  ;;  %2431 = vmatprep.subr.bf16.mxu0 %v2855_v0  ;;  %v1767_v40 = vsel %vm1627_vm7, %v1386_v19, 0 }
 0x5b2   : > { %2426 = vmatpush3.bf16.msra.mxu1 %v1721_v20  ;;  %2427 = vmatprep.mubr.msk.bf16.mxu1 %vm2856_vm0, %v2855_v0 }
 0x5b3   : > { %2422 = vmatmul.mubr.msk.bf16.vlgmr.msra.gmra.mrb[16].mxu0 %vm1571_vm6, %v1621_v11  ;;  %2437 = vmatprep.subr.bf16.mxu1 %v2855_v0 }
 0x5b4   : > { %2432 = vmatpush3.bf16.msra.mxu0 %v1767_v40  ;;  %2433 = vmatprep.mubr.msk.bf16.mxu0 %vm2856_vm0, %v2855_v0 }
 0x5c4   : > { %v1604_v21 = vpop.xlane.xlu1 %1603 }
 0x5c5   : > { %2588 = vrcp.f32 %v1604_v21 }
 0x5c6   : > { %v1607_v22 = vpop.xlane.xlu0 %1606 }
 0x5c7   : > { %2590 = vrcp.f32 %v1607_v22 }
 0x5cf   : > { %v2589_v23 = vpop.eup %2588 }
 0x5d0   : > { %v1613_v24 = vmul.f32 %v2589_v23, %v3368_v7  ;;  %v2572_v7 = vld [vmem:[%s3613_s16] sm:$0xff]  }
 0x5d1   : > { %v2591_v25 = vpop.eup %2590 }
 0x5d2   : > { %1618 = vst.msk [vmem:[%s3387_s15 + $0x10] sm:$0xff] %vm1571_vm6, %v1613_v24  ;;  %v1615_v26 = vmul.f32 %v2591_v25, %v3370_v8  ;;  %v1622_v28 = vpack.c.bf16 %v1613_v24, %v1613_v24  ;;  %v2573_v8 = vld [vmem:[%s3613_s16 + $0x8] sm:$0xff]  }
 0x5d4   : > { %1619 = vst.msk [vmem:[%s3387_s15 + $0x18] sm:$0xff] %vm1571_vm6, %v1615_v26  ;;  %2428 = vmatmul.mubr.msk.bf16.vlgmr.msra.gmra.mrb[16].mxu1 %vm1571_vm6, %v1622_v28  ;;  %v1623_v29 = vpack.c.bf16 %v1615_v26, %v1615_v26 }
 0x5d5   : > { %2445 = vmatprep.mubr.msk.bf16.mxu1 %vm2856_vm0, %v2855_v0  ;;  %2438 = vmatpush3.bf16.msra.mxu1 %v2572_v7 }
 0x5d6   : > { %2434 = vmatmul.mubr.msk.bf16.vlgmr.msra.gmra.mrb[20].mxu0 %vm1571_vm6, %v1623_v29  ;;  %2439 = vmatprep.subr.bf16.mxu1 %v2855_v0 }
 0x5d9   : > { %2440 = vmatpush3.bf16.msra.mxu1 %v2573_v8 }
 0x5da   : > { %2441 = vmatprep.subr.bf16.mxu1 %v2855_v0 }
 0x5dd   : > { %2442 = vmatpush3.bf16.msra.mxu1 %v2574_v59 }
 0x5de   : > { %2443 = vmatprep.subr.bf16.mxu1 %v2855_v0 }
 0x5e1   : > { %2444 = vmatpush3.bf16.msra.mxu1 %v2575_v6 }
 0x684   : > { %v1665_v30 = vpop.f32.mrb[12].mxu1 }
 0x685   : > { %v2417_v32 = vpop.f32.mrb[13].mxu1 }
 0x686   : > { %v1668_v4 = vpop.f32.mrb[14].mxu1  ;;  %v1711_v33 = vpop.f32.mrb[16].mxu0 }
 0x687   : > { %v2418_v35 = vpop.f32.mrb[15].mxu1  ;;  %v2423_v36 = vpop.f32.mrb[17].mxu0 }
 0x688   : > { %v1714_v37 = vpop.f32.mrb[18].mxu0 }
 0x689   : > { %v2424_v34 = vpop.f32.mrb[19].mxu0 }
 0x6a7   : > { %v1757_v38 = vpop.f32.mrb[16].mxu1 }
 0x6a8   : > { %v1809_v39 = vcombine.low %v1665_v30, %v1757_v38  ;;  %v1810_v41 = vcombine.high %v1665_v30, %v1757_v38  ;;  %v2429_v42 = vpop.f32.mrb[17].mxu1 }
 0x6a9   : > { %v1760_v43 = vpop.f32.mrb[18].mxu1  ;;  %v1803_v44 = vpop.f32.mrb[20].mxu0 }
 0x6aa   : > { %v1825_v45 = vcombine.low %v1711_v33, %v1803_v44  ;;  %v1826_v46 = vcombine.high %v1711_v33, %v1803_v44  ;;  %v2430_v47 = vpop.f32.mrb[19].mxu1  ;;  %v2435_v48 = vpop.f32.mrb[21].mxu0  ;;  %v1817_v50 = vrot.slane %v1809_v39, %v3295_v27  ;;  %v1824_v51 = vrot.slane %v1810_v41, %v3295_v27 }
 0x6ab   : > { %v1806_v49 = vpop.f32.mrb[22].mxu0 }
 0x6ac   : > { %v1833_v52 = vrot.slane %v1825_v45, %v3295_v27  ;;  %v1840_v53 = vrot.slane %v1826_v46, %v3295_v27  ;;  %v2436_v54 = vpop.f32.mrb[23].mxu0 }
 0x6ae   : > { %v1841_v55 = vcombine.low %v1817_v50, %v1833_v52  ;;  %v1842_v56 = vcombine.high %v1817_v50, %v1833_v52  ;;  %v1857_v57 = vcombine.low %v1824_v51, %v1840_v53  ;;  %v1858_v58 = vcombine.high %v1824_v51, %v1840_v53 }
 0x6b0   : > { %v1849_v60 = vrot.slane %v1841_v55, %v3297_v31  ;;  %v1856_v61 = vrot.slane %v1842_v56, %v3297_v31  ;;  %v1865_v62 = vrot.slane %v1857_v57, %v3297_v31  ;;  %v1872_v63 = vrot.slane %v1858_v58, %v3297_v31 }
 0x6b2   : > { %v1877_v1 = vcombine.low %v1849_v60, %v1856_v61  ;;  %v2319_v2 = vcombine.high %v1849_v60, %v1856_v61  ;;  %v1893_v3 = vcombine.low %v1865_v62, %v1872_v63  ;;  %v2320_v5 = vcombine.high %v1865_v62, %v1872_v63 }
 0x6b4   : > { %v1884_v10 = vrot.slane %v1877_v1, %v3295_v27  ;;  %v1892_v12 = vrot.slane %v2319_v2, %v3295_v27  ;;  %v1900_v13 = vrot.slane %v1893_v3, %v3295_v27  ;;  %v1908_v9 = vrot.slane %v2320_v5, %v3295_v27 }
 0x6b6   : > { %v1910_v14 = vcombine.high %v1884_v10, %v1892_v12  ;;  %v1926_v15 = vcombine.high %v1900_v13, %v1908_v9  ;;  %v1909_v16 = vcombine.low %v1884_v10, %v1892_v12  ;;  %v1925_v17 = vcombine.low %v1900_v13, %v1908_v9 }
 0x6b8   : > { %v1924_v18 = vrot.slane %v1910_v14, %v3297_v31  ;;  %v1940_v0 = vrot.slane %v1926_v15, %v3297_v31  ;;  %v1917_v19 = vrot.slane %v1909_v16, %v3297_v31  ;;  %v1933_v20 = vrot.slane %v1925_v17, %v3297_v31 }
 0x6ba   : > { %v1943_v11 = vcombine.low %v1924_v18, %v1940_v0  ;;  %v1942_v40 = vcombine.high %v1917_v19, %v1933_v20  ;;  %v1944_v21 = vcombine.high %v1924_v18, %v1940_v0  ;;  %v1941_v22 = vcombine.low %v1917_v19, %v1933_v20 }
 0x6bc   : > { %1950 = vrot.lane.b32.xlu1 %v1943_v11, %s2860_s27  ;;  %1946 = vrot.lane.b32.xlu0 %v1942_v40, %s2858_s18  ;;  %s3467_s18 = scalar_lea.hbm %s3615_s0, %s2334_s29 }
 0x6c0   : > { %1954 = vrot.lane.b32.xlu1 %v1944_v21, %s2859_s10  ;;  %s2077_s10 = sshll.u32 %s3387_s15, 4  ;;  %s3470_s10 = int_to_ptr.vmem [resolvable:$true] %s2077_s10 }
 0x6c1   : > { %s2742_s4 = scalar_lea.vmem %s3470_s10, 512  ;;  %p2749_p4 = scmp.lt.s32.totalorder %s3470_s10, %s2747_s13 }
 0x6c2   : > { %p2743_p13 = scmp.ne.s32.totalorder %s3470_s10, %s2742_s4  ;;  %p2750_p5 = scmp.lt.s32.totalorder %s2748_s12, %s2742_s4 }
 0x6c4   : > { %p2744_p1 = pnand %p2743_p13, %p3616_p11  ;;  %p2751_p6 = por %p2750_p5, %p2749_p4 }
 0x6c6   : > { %p2745_p3 = pneg %p2744_p1 }
 0x6c8   : > { %p2752_p7 = pnand %p2751_p6, %p2745_p3 }
 0x72e   : > { %v1951_v27 = vpop.permute.xlu1 %1950  ;;  %v1947_v23 = vpop.permute.xlu0 %1946 }
 0x72f   : > { %v1957_v24 = vsel %vm792_vm3, %v1941_v22, %v1947_v23 }
 0x730   : > { %v1958_v31 = vsel %vm618_vm1, %v1957_v24, %v1951_v27 }
 0x732   : > { %v1955_v25 = vpop.permute.xlu1 %1954 }
 0x733   : > { %v1959_v26 = vsel %vm795_vm4, %v1958_v31, %v1955_v25 }
 0x734   : > { %v1960_v28 = vpack.c.bf16 %v1959_v26, %v1959_v26 }
 0x736   : > { %2446 = vmatmul.mubr.msk.bf16.vlgmr.msra.gmra.mrb[20].mxu1 %vm2000_vm8, %v1960_v28 }
 0x737   : > { %2755 = shalt.err (!%p2752_p7)
}
 0x738   : > { %s2756_s15 = scalar_lea.hbm %s3467_s18, 512  ;;  %s2760_s28 = scalar_lea.hbm %s3615_s0, 1024 }
 0x739   : > { %p2757_p12 = scmp.ne.s32.totalorder %s3467_s18, %s2756_s15  ;;  %p2761_p10 = scmp.lt.u32.totalorder %s3467_s18, %s3615_s0 }
 0x73a   : > { %p2762_p2 = scmp.lt.u32.totalorder %s2760_s28, %s2756_s15  ;;  %p2764_p13 = scmp.lt.u32.totalorder %s2756_s15, %s3467_s18 }
 0x73b   : > { %p2758_p0 = pnand %p2757_p12, %p3616_p11 }
 0x73c   : > { %p2763_p9 = por %p2762_p2, %p2761_p10 }
 0x73d   : > { %p2759_p8 = pneg %p2758_p0 }
 0x73e   : > { %p2765_p1 = por %p2764_p13, %p2763_p9 }
 0x740   : > { %p2766_p3 = pnand %p2765_p1, %p2759_p8 }
 0x742   : > { %2769 = shalt.err (!%p2766_p3)
}
 0x743   : > { %s2870_s19 = smov 128   ;;  %s2871_s30 = smov 8  }
 0x744   : > { %2460 = dma.vmem_to_hbm [thread:$0]  (%p3616_p11), %s3470_s10, 512, %s3467_s18, %s2051_s23, %s2870_s19, %s2870_s19, %s2871_s30  }
 0x745   : > { %s2299_s9 = sshll.u32 %s3168_s21, 3  ;;  %s3617_s20 = sld [smem:[#allocation30_spill]] }
 0x746   : > { %s2329_s4 = sshll.u32 %s2959_s25, 7  ;;  %s587_s1 = scalar_lea.vmem [#allocation11], %s2299_s9 }
 0x747   : > { %s2064_s13 = sshll.u32 %s587_s1, 4  ;;  %s3618_s26 = sld [smem:[#allocation31_spill]]  ;;  %s3506_s13 = int_to_ptr.vmem [resolvable:$true] %s2064_s13 }
 0x748   : > { %s2046_s25 = scalar_lea.sflag [#allocation4], %s3168_s21  ;;  %s2770_s18 = scalar_lea.vmem %s3506_s13, 128 }
 0x749   : > { %p2771_p4 = scmp.ne.s32.totalorder %s3506_s13, %s2770_s18  ;;  %s2872_s10 = smov [#allocation11]  }
 0x74a   : > { %s2774_s23 = sshll.u32 %s2872_s10, 4  ;;  %s2775_s23 = int_to_ptr.vmem [resolvable:$false] %s2774_s23 }
 0x74b   : > { %v2321_v29 = vld [vmem:[%s3617_s20] ss:$0 sm:$0xff]  ;;  %p2772_p5 = pnand %p2771_p4, %p3616_p11  ;;  %s2776_s28 = scalar_lea.vmem %s2775_s23, 256 }
 0x74c   : > { %p2777_p7 = scmp.lt.s32.totalorder %s3506_s13, %s2775_s23  ;;  %p2778_p12 = scmp.lt.s32.totalorder %s2776_s28, %s2770_s18 }
 0x74d   : > { %s3504_s11 = scalar_lea.hbm %s3618_s26, %s2329_s4  ;;  %p2773_p6 = pneg %p2772_p5 }
 0x74e   : > { %p2779_p0 = por %p2778_p12, %p2777_p7 }
 0x750   : > { %p2780_p8 = pnand %p2779_p0, %p2773_p6 }
 0x809   : > { %v2038_v7 = vpop.f32.mrb[20].mxu1 }
 0x80a   : > { %v2039_v8 = vadd.f32 %v2321_v29, %v2038_v7  ;;  %v2447_v30 = vpop.f32.mrb[21].mxu1 }
 0x80b   : > { %v2041_v32 = vpop.f32.mrb[22].mxu1 }
 0x80c   : > { %v2448_v4 = vpop.f32.mrb[23].mxu1  ;;  %2044 = vst.msk [vmem:[%s587_s1] sm:$0xff] %vm618_vm1, %v2039_v8 }
 0x80d   : > { %2783 = shalt.err (!%p2780_p8)
}
 0x80e   : > { %s2784_s21 = scalar_lea.hbm %s3504_s11, 128  ;;  %s2788_s19 = scalar_lea.hbm %s3618_s26, 256 }
 0x80f   : > { %p2785_p10 = scmp.ne.s32.totalorder %s3504_s11, %s2784_s21  ;;  %p2789_p13 = scmp.lt.u32.totalorder %s3504_s11, %s3618_s26 }
 0x810   : > { %p2790_p1 = scmp.lt.u32.totalorder %s2788_s19, %s2784_s21  ;;  %p2792_p4 = scmp.lt.u32.totalorder %s2784_s21, %s3504_s11 }
 0x811   : > { %p2786_p2 = pnand %p2785_p10, %p3616_p11 }
 0x812   : > { %p2791_p3 = por %p2790_p1, %p2789_p13 }
 0x813   : > { %p2787_p9 = pneg %p2786_p2 }
 0x814   : > { %p2793_p5 = por %p2792_p4, %p2791_p3 }
 0x816   : > { %p2794_p6 = pnand %p2793_p5, %p2787_p9 }
 0x818   : > { %2797 = shalt.err (!%p2794_p6)
}
 0x819   : > { %2459 = dma.vmem_to_hbm [thread:$0]  (%p3616_p11), %s3506_s13, 128, %s3504_s11, %s2046_s25  }
 0x81a PF: > { %s3619_s29 = sld [smem:[#allocation19_spill]]  ;;  %s3620_s27 = sld [smem:[#allocation25_spill]] }
 0x81b   : > { %s3621_s20 = sld [smem:[#allocation21_spill]] }
 0x820   : > { %s2092_s4 = sand.u32 1, %s3619_s29   ;;  %p3622_p7 = scmp.ne.s32.totalorder %s3620_s27, 0 }
 0x821   : > { %p3623_p12 = scmp.ge.s32.totalorder %s3621_s20, 2  ;;  %s2093_s1 = scalar_lea.sflag [#allocation4], %s2092_s4 }
 0x823   : > { %p2480_p0 = pnand %p3623_p12, %p3622_p7 }
 0x825   : > { %2827 = dma.done.wait (!%p2480_p0), %s2093_s1, 128  }
 0x826   : > { %2829 = vsyncadd (!%p2480_p0), %s2093_s1, 4294967168  ;;  %s2102_s12 = scalar_lea.sflag [#allocation13], %s2092_s4 }
 0x827   : > { %2831 = dma.done.wait (!%p2480_p0), %s2102_s12, 512  }
 0x828   : > { %2833 = vsyncadd (!%p2480_p0), %s2102_s12, 4294966784  ;;  %s3624_s24 = sld [smem:[#allocation22_spill]]  ;;  %s3625_s15 = sld [smem:[#allocation20_spill]] }
 0x829   : > { %s3626_s23 = sld [smem:[#allocation23_spill]]  ;;  %s3627_s21 = smov %s2840_s22 }
 0x82e   : > { %p35_p11 = scmp.ge.s32.totalorder %s3624_s24, 4   ;;  %s3628_s22 = smov %s3625_s15 }
 0x830   :  { %37 = sbr.rel (!%p35_p11) target bundleno = 19 (0x13), region = 177 }
 0x837   :  { %2107 = vsyncpa [#allocation3], 1 }
 0x838   :  { %2109 = vsyncpa [#allocation3 + $0x1], 1 }
 0x839   :  { %2110 = vsyncpa [#allocation6], 1 }
 0x83a   :  { %2112 = vsyncpa [#allocation6 + $0x1], 1 }
 0x83b   :  { %2113 = vsyncpa [#allocation9], 1 }
 0x83c   :  { %2115 = vsyncpa [#allocation9 + $0x1], 1 }
 0x83d   :  { %2116 = vsyncpa [#allocation4], 1 }
 0x83e   :  { %2118 = vsyncpa [#allocation4 + $0x1], 1 }
 0x83f   :  { %2119 = vsyncpa [#allocation13], 1 }
 0x840   :  { %2121 = vsyncpa [#allocation13 + $0x1], 1 }

// kernel: tpu_custom_call.1
= control target key start
LH: loop header
LB: loop body
LE: loop exit
PB: predicated region body
PF: predicated region fallthrough
CT: control target
= control target key end

     0   :  { %s3549_s0 = inlined_call_operand.hbm [shape: bf16[2,8,32], index: 0, kind: input, shape index: {}]   ;;  %s3550_s1 = inlined_call_operand.hbm [shape: bf16[2,8,32], index: 1, kind: input, shape index: {}]   ;;  %s3551_s2 = inlined_call_operand.hbm [shape: bf16[2,8,16], index: 2, kind: input, shape index: {}]   ;;  %s3552_s3 = inlined_call_operand.vmem [shape: bf16[2,8,16], index: 3, kind: input, shape index: {}]   ;;  %s3553_s4 = inlined_call_operand.hbm [shape: bf16[2,8,16], index: 4, kind: input, shape index: {}]   ;;  %s3554_s5 = inlined_call_operand.hbm [shape: bf16[2,8,16], index: 5, kind: input, shape index: {}]   ;;  %s3555_s6 = inlined_call_operand.vmem [shape: bf16[32,64], index: 6, kind: input, shape index: {}]   ;;  %s3556_s7 = inlined_call_operand.vmem [shape: bf16[32,64], index: 7, kind: input, shape index: {}]   ;;  %s3557_s8 = inlined_call_operand.vmem [shape: bf16[32,64], index: 8, kind: input, shape index: {}]   ;;  %s3558_s9 = inlined_call_operand.vmem [shape: bf16[64,32], index: 9, kind: input, shape index: {}]   ;;  %s3559_s10 = inlined_call_operand.vmem [shape: f32[1,32], index: 10, kind: input, shape index: {}]   ;;  %s3560_s11 = inlined_call_operand.hbm [shape: f32[2,8,32], index: 11, kind: output, shape index: {0}]   ;;  %s3561_s12 = inlined_call_operand.hbm [shape: f32[2,4,8,8], index: 12, kind: output, shape index: {1}]  }
   0x1   :  { %3580 = sst [smem:[#allocation26_spill]] %s3549_s0 }
   0x2   :  { %3581 = sst [smem:[#allocation27_spill]] %s3550_s1 }
   0x3   :  { %3582 = sst [smem:[#allocation28_spill]] %s3553_s4 }
   0x4   :  { %3583 = sst [smem:[#allocation29_spill]] %s3558_s9 }
   0x5   :  { %3584 = sst [smem:[#allocation30_spill]] %s3559_s10 }
   0x6   :  { %3585 = sst [smem:[#allocation31_spill]] %s3560_s11 }
   0x7   :  { %3586 = sst [smem:[#allocation32_spill]] %s3561_s12 }
   0x8   :  { %18 = vsyncpa [#allocation3], 0 }
   0x9   :  { %20 = vsyncpa [#allocation3 + $0x1], 0 }
   0xa   :  { %21 = vsyncpa [#allocation6], 0 }
   0xb   :  { %23 = vsyncpa [#allocation6 + $0x1], 0 }
   0xc   :  { %24 = vsyncpa [#allocation9], 0 }
   0xd   :  { %26 = vsyncpa [#allocation9 + $0x1], 0 }
   0xe   :  { %27 = vsyncpa [#allocation4], 0 }
   0xf   :  { %29 = vsyncpa [#allocation4 + $0x1], 0 }
  0x10   :  { %30 = vsyncpa [#allocation13], 0 }
  0x11   :  { %32 = vsyncpa [#allocation13 + $0x1], 0  ;;  %s2938_s21 = smov 0   ;;  %s2940_s22 = smov 0  }
  0x12   :  { %s2942_s23 = smov 0   ;;  %s2944_s24 = smov 0  }
  0x13 LB: > { %3587 = sst [smem:[#allocation19_spill]] %s2836_s21  ;;  %s2959_s25 = sadd.s32 4294967295, %s2848_s24   ;;  %s2848_s24 = sphi %s2944_s24, %s3624_s24   ;;  %s2844_s23 = sphi %s2942_s23, %s3626_s23   ;;  %s2840_s22 = sphi %s2940_s22, %s3628_s22   ;;  %s2836_s21 = sphi %s2938_s21, %s3627_s21  }
  0x14   : > { %3588 = sst [smem:[#allocation20_spill]] %s2844_s23  ;;  %s2280_s26 = sadd.s32 4294967294, %s2848_s24  }
  0x15   : > { %3589 = sst [smem:[#allocation21_spill]] %s2848_s24  ;;  %s2963_s27 = sadd.s32 1, %s2848_s24  }
  0x16   : > { %3590 = sst [smem:[#allocation22_spill]] %s2963_s27  ;;  %s45_s28 = sadd.s32 1, %s2844_s23 }
  0x17   : > { %s42_s29 = ssub.s32 %s2848_s24, %s2963_s27  ;;  %p52_p0 = scmp.ne.s32.totalorder %s2844_s23, %s2840_s22 }
  0x18   : > { %p43_p1 = scmp.eq.s32.totalorder %s42_s29, 0  ;;  %p53_p2 = scmp.eq.s32.totalorder %s2848_s24, 0 }
  0x19   : > { %p58_p3 = scmp.ne.s32.totalorder %s2840_s22, %s2836_s21  ;;  %p59_p4 = scmp.eq.s32.totalorder %s2959_s25, 0 }
  0x1a   : > { %s2975_s30 = scalar_select %p43_p1, %s2844_s23, %s45_s28  }
  0x1b   : > { %p54_p5 = por %p53_p2, %p52_p0  ;;  %p2977_p6 = por %p59_p4, %p58_p3 }
  0x1c   : > { %3591 = sst [smem:[#allocation23_spill]] %s2975_s30  ;;  %p317_p7 = scmp.eq.s32.totalorder %s2959_s25, 1 }
  0x1d   : > { %s3592_s13 = scalar_select %p2977_p6, 1, 0 }
  0x1e   : > { %p323_p8 = scmp.eq.s32.totalorder %s2280_s26, 1  ;;  %p2486_p10 = scmp.lt.s32.totalorder %s2848_s24, 2 }
  0x1f   : > { %p2984_p11 = por %p317_p7, %p52_p0  ;;  %s3564_s16 = sand.u32 1, %s2844_s23  }
  0x20   : > { %p2988_p12 = por %p323_p8, %p58_p3  ;;  %s2994_s17 = sshll.u32 %s2848_s24, 6 }
  0x21   : > { %s3593_s14 = scalar_select %p2984_p11, 1, 0 }
  0x22   : > { %s3595_s15 = scalar_select %p2988_p12, 1, 0 }
  0x23   : > { %3594 = sst [smem:[#allocation24_spill]] %s3593_s14  ;;  %s2998_s18 = sshll.u32 %s3564_s16, 2 }
  0x24   : > { %3596 = sst [smem:[#allocation25_spill]] %s3595_s15  ;;  %p3000_p13 = pnand %p2486_p10, %p54_p5 }
  0x25   : > { %s3568_s20 = sand.u32 1, %s2848_s24   ;;  %s3598_s1 = sld [smem:[#allocation27_spill]] }
  0x26   : > { %s3597_s19 = scalar_select %p3000_p13, 1, 0 }
  0x27   : > { %s406_s30 = scalar_lea.vmem [#allocation5], %s2998_s18  ;;  %s3017_s16 = scalar_lea.sflag [#allocation6], %s3568_s20 }
  0x28   : > { %s413_s27 = sshll.u32 %s406_s30, 4  ;;  %p3023_p2 = pneg %p3000_p13  ;;  %s3012_s27 = int_to_ptr.vmem [resolvable:$true] %s413_s27 }
  0x2b   : > { %s3009_s29 = scalar_lea.hbm %s3598_s1, %s2994_s17  ;;  %s2597_s30 = scalar_lea.hbm %s3598_s1, 128 }
  0x2c   : > { %s2592_s15 = scalar_lea.hbm %s3009_s29, 64  ;;  %p2598_p5 = scmp.lt.u32.totalorder %s3009_s29, %s3598_s1 }
  0x2d   : > { %p2593_p1 = scmp.ne.s32.totalorder %s3009_s29, %s2592_s15  ;;  %p2599_p7 = scmp.lt.u32.totalorder %s2597_s30, %s2592_s15 }
  0x2e   : > { %p2601_p10 = scmp.lt.u32.totalorder %s2592_s15, %s3009_s29 }
  0x2f   : > { %p2595_p3 = pnand %p3023_p2, %p2593_p1  ;;  %p2600_p8 = por %p2599_p7, %p2598_p5 }
  0x31   : > { %p2596_p4 = pneg %p2595_p3  ;;  %p2602_p9 = por %p2601_p10, %p2600_p8 }
  0x33   : > { %p2603_p0 = pnand %p2602_p9, %p2596_p4 }
  0x35   : > { %2606 = shalt.err (!%p2603_p0)
}
  0x36   : > { %s2607_s20 = scalar_lea.vmem %s3012_s27, 64  ;;  %s2850_s26 = smov [#allocation5]  }
  0x37   : > { %p2608_p1 = scmp.ne.s32.totalorder %s3012_s27, %s2607_s20  ;;  %s2612_s28 = sshll.u32 %s2850_s26, 4  ;;  %s2613_s28 = int_to_ptr.vmem [resolvable:$false] %s2612_s28 }
  0x38   : > { %s2614_s10 = scalar_lea.vmem %s2613_s28, 128  ;;  %p2615_p11 = scmp.lt.s32.totalorder %s3012_s27, %s2613_s28 }
  0x39   : > { %p2610_p3 = pnand %p2608_p1, %p3023_p2  ;;  %p2616_p6 = scmp.lt.s32.totalorder %s2614_s10, %s2607_s20 }
  0x3b   : > { %p2611_p12 = pneg %p2610_p3  ;;  %p2617_p5 = por %p2616_p6, %p2615_p11 }
  0x3d   : > { %p2618_p7 = pnand %p2617_p5, %p2611_p12 }
  0x3f   : > { %2621 = shalt.err (!%p2618_p7)
}
  0x40   : > { %2469 = dma.hbm_to_vmem [thread:$0]  (!%p3000_p13), %s3009_s29, 64, %s3012_s27, %s3017_s16  }
  0x41   : > { %p479_p9 = scmp.lt.s32.totalorder %s2848_s24, 3  ;;  %s3600_s4 = sld [smem:[#allocation28_spill]] }
  0x42   : > { %p3601_p6 = scmp.ge.s32.totalorder %s2848_s24, 1  ;;  %s449_s26 = scalar_lea.vmem [#allocation8], %s2998_s18 }
  0x43   : > { %s456_s28 = sshll.u32 %s449_s26, 4  ;;  %s3603_s10 = sand.u32 1, %s2848_s24   ;;  %s457_s28 = int_to_ptr.vmem [resolvable:$true] %s456_s28 }
  0x44   : > { %p3056_p11 = pnand %p3601_p6, %p479_p9  ;;  %s3063_s27 = scalar_lea.sflag [#allocation9], %s3603_s10 }
  0x46   : > { %s3602_s30 = scalar_select %p3056_p11, 1, 0 }
  0x47   : > { %s3052_s20 = scalar_lea.hbm %s3600_s4, %s2994_s17  ;;  %s2627_s1 = scalar_lea.hbm %s3600_s4, 128 }
  0x48   : > { %s2622_s29 = scalar_lea.hbm %s3052_s20, 64  ;;  %p2628_p8 = scmp.lt.u32.totalorder %s3052_s20, %s3600_s4 }
  0x49   : > { %p2623_p12 = scmp.ne.s32.totalorder %s3052_s20, %s2622_s29  ;;  %p2629_p10 = scmp.lt.u32.totalorder %s2627_s1, %s2622_s29 }
  0x4a   : > { %p2631_p3 = scmp.lt.u32.totalorder %s2622_s29, %s3052_s20 }
  0x4b   : > { %p2625_p0 = pnand %p2623_p12, %p3023_p2  ;;  %p2630_p1 = por %p2629_p10, %p2628_p8 }
  0x4d   : > { %p2626_p4 = pneg %p2625_p0  ;;  %p2632_p5 = por %p2631_p3, %p2630_p1 }
  0x4f   : > { %p2633_p7 = pnand %p2632_p5, %p2626_p4 }
  0x51   : > { %2636 = shalt.err (!%p2633_p7)
}
  0x52   : > { %s2637_s26 = scalar_lea.vmem %s457_s28, 64  ;;  %s2851_s10 = smov [#allocation8]  }
  0x53   : > { %p2638_p9 = scmp.ne.s32.totalorder %s457_s28, %s2637_s26  ;;  %s2642_s24 = sshll.u32 %s2851_s10, 4  ;;  %s2643_s24 = int_to_ptr.vmem [resolvable:$false] %s2642_s24 }
  0x54   : > { %s2644_s11 = scalar_lea.vmem %s2643_s24, 128  ;;  %p2645_p0 = scmp.lt.s32.totalorder %s457_s28, %s2643_s24 }
  0x55   : > { %p2640_p6 = pnand %p2638_p9, %p3023_p2  ;;  %p2646_p11 = scmp.lt.s32.totalorder %s2644_s11, %s2637_s26 }
  0x57   : > { %p2641_p12 = pneg %p2640_p6  ;;  %p2647_p13 = por %p2646_p11, %p2645_p0 }
  0x59   : > { %p2648_p8 = pnand %p2647_p13, %p2641_p12 }
  0x5b   : > { %2651 = shalt.err (!%p2648_p8)
}
  0x5c   : > { %p3604_p10 = scmp.ne.s32.totalorder %s3597_s19, 0  ;;  %s3605_s0 = sld [smem:[#allocation26_spill]] }
  0x5d   : > { %s388_s24 = scalar_lea.vmem [#allocation2], %s2998_s18  ;;  %s3096_s10 = scalar_lea.hbm %s3551_s2, %s2994_s17 }
  0x5e   : > { %2475 = dma.hbm_to_vmem [thread:$0]  (!%p3604_p10), %s3052_s20, 64, %s457_s28, %s3063_s27  }
  0x5f   : > { %s395_s29 = sshll.u32 %s388_s24, 4  ;;  %s3606_s11 = sand.u32 1, %s2844_s23   ;;  %s3090_s29 = int_to_ptr.vmem [resolvable:$true] %s395_s29 }
  0x60   : > { %s385_s20 = scalar_lea.sflag [#allocation3], %s3606_s11 }
  0x62   : > { %s3087_s14 = scalar_lea.hbm %s3605_s0, %s2994_s17  ;;  %s2657_s4 = scalar_lea.hbm %s3605_s0, 128 }
  0x63   : > { %s2652_s28 = scalar_lea.hbm %s3087_s14, 64  ;;  %p2658_p1 = scmp.lt.u32.totalorder %s3087_s14, %s3605_s0 }
  0x64   : > { %p2653_p13 = scmp.ne.s32.totalorder %s3087_s14, %s2652_s28  ;;  %p2659_p3 = scmp.lt.u32.totalorder %s2657_s4, %s2652_s28 }
  0x65   : > { %p2661_p7 = scmp.lt.u32.totalorder %s2652_s28, %s3087_s14 }
  0x66   : > { %p2655_p11 = pnand %p2653_p13, %p3023_p2  ;;  %p2660_p5 = por %p2659_p3, %p2658_p1 }
  0x68   : > { %p2656_p4 = pneg %p2655_p11  ;;  %p2662_p9 = por %p2661_p7, %p2660_p5 }
  0x6a   : > { %p2663_p6 = pnand %p2662_p9, %p2656_p4 }
  0x6c   : > { %2666 = shalt.err (!%p2663_p6)
}
  0x6d   : > { %s2667_s15 = scalar_lea.vmem %s3090_s29, 64  ;;  %s2852_s26 = smov [#allocation2]  }
  0x6e   : > { %p2668_p12 = scmp.ne.s32.totalorder %s3090_s29, %s2667_s15  ;;  %s2672_s11 = sshll.u32 %s2852_s26, 4  ;;  %s2673_s11 = int_to_ptr.vmem [resolvable:$false] %s2672_s11 }
  0x6f   : > { %s2674_s9 = scalar_lea.vmem %s2673_s11, 128  ;;  %p2675_p13 = scmp.lt.s32.totalorder %s3090_s29, %s2673_s11 }
  0x70   : > { %p2670_p0 = pnand %p2668_p12, %p3023_p2  ;;  %p2676_p11 = scmp.lt.s32.totalorder %s2674_s9, %s2667_s15 }
  0x72   : > { %p2671_p8 = pneg %p2670_p0  ;;  %p2677_p1 = por %p2676_p11, %p2675_p13 }
  0x74   : > { %p2678_p3 = pnand %p2677_p1, %p2671_p8 }
  0x76   : > { %2681 = shalt.err (!%p2678_p3)
}
  0x77   : > { %2466 = dma.hbm_to_vmem [thread:$0]  (!%p3604_p10), %s3087_s14, 64, %s3090_s29, %s385_s20  }
  0x78   : > { %s424_s4 = scalar_lea.vmem [#allocation7], %s2998_s18  ;;  %s3126_s24 = scalar_lea.hbm %s3554_s5, %s2994_s17 }
  0x79   : > { %s431_s28 = sshll.u32 %s424_s4, 4  ;;  %s2682_s15 = scalar_lea.hbm %s3096_s10, 64  ;;  %s432_s28 = int_to_ptr.vmem [resolvable:$true] %s431_s28 }
  0x7a   : > { %p2683_p4 = scmp.ne.s32.totalorder %s3096_s10, %s2682_s15  ;;  %s2687_s9 = scalar_lea.hbm %s3551_s2, 128 }
  0x7b   : > { %p2688_p9 = scmp.lt.u32.totalorder %s3096_s10, %s3551_s2  ;;  %p2689_p6 = scmp.lt.u32.totalorder %s2687_s9, %s2682_s15 }
  0x7c   : > { %p2685_p5 = pnand %p2683_p4, %p3023_p2  ;;  %p2691_p0 = scmp.lt.u32.totalorder %s2682_s15, %s3096_s10 }
  0x7d   : > { %p2690_p12 = por %p2689_p6, %p2688_p9 }
  0x7e   : > { %p2686_p7 = pneg %p2685_p5 }
  0x7f   : > { %p2692_p8 = por %p2691_p0, %p2690_p12 }
  0x81   : > { %p2693_p13 = pnand %p2692_p8, %p2686_p7 }
  0x83   : > { %2696 = shalt.err (!%p2693_p13)
}
  0x84   : > { %s2697_s17 = scalar_lea.vmem %s432_s28, 64  ;;  %s2853_s14 = smov [#allocation7]  }
  0x85   : > { %p2698_p11 = scmp.ne.s32.totalorder %s432_s28, %s2697_s17  ;;  %s2702_s29 = sshll.u32 %s2853_s14, 4  ;;  %s2703_s29 = int_to_ptr.vmem [resolvable:$false] %s2702_s29 }
  0x86   : > { %s2704_s20 = scalar_lea.vmem %s2703_s29, 128  ;;  %p2705_p4 = scmp.lt.s32.totalorder %s432_s28, %s2703_s29 }
  0x87   : > { %p2700_p1 = pnand %p2698_p11, %p3023_p2  ;;  %p2706_p5 = scmp.lt.s32.totalorder %s2704_s20, %s2697_s17 }
  0x89   : > { %p2701_p3 = pneg %p2700_p1  ;;  %p2707_p10 = por %p2706_p5, %p2705_p4 }
  0x8b   : > { %p2708_p6 = pnand %p2707_p10, %p2701_p3 }
  0x8d   : > { %2711 = shalt.err (!%p2708_p6)
}
  0x8e   : > { %p3607_p9 = scmp.ne.s32.totalorder %s3597_s19, 0  ;;  %s467_s0 = scalar_lea.vmem [#allocation10], %s2998_s18 }
  0x8f   : > { %s474_s23 = sshll.u32 %s467_s0, 4  ;;  %s2712_s4 = scalar_lea.hbm %s3126_s24, 64  ;;  %s475_s23 = int_to_ptr.vmem [resolvable:$true] %s474_s23 }
  0x90   : > { %2472 = dma.hbm_to_vmem [thread:$0]  (!%p3607_p9), %s3096_s10, 64, %s432_s28, %s3017_s16  }
  0x91   : > { %p2713_p7 = scmp.ne.s32.totalorder %s3126_s24, %s2712_s4  ;;  %s2717_s15 = scalar_lea.hbm %s3554_s5, 128 }
  0x92   : > { %p2718_p0 = scmp.lt.u32.totalorder %s3126_s24, %s3554_s5  ;;  %p2719_p8 = scmp.lt.u32.totalorder %s2717_s15, %s2712_s4 }
  0x93   : > { %p2715_p12 = pnand %p2713_p7, %p3023_p2  ;;  %p2721_p11 = scmp.lt.u32.totalorder %s2712_s4, %s3126_s24 }
  0x94   : > { %p2720_p13 = por %p2719_p8, %p2718_p0 }
  0x95   : > { %p2716_p10 = pneg %p2715_p12 }
  0x96   : > { %p2722_p1 = por %p2721_p11, %p2720_p13 }
  0x98   : > { %p2723_p3 = pnand %p2722_p1, %p2716_p10 }
  0x9a   : > { %2726 = shalt.err (!%p2723_p3)
}
  0x9b   : > { %s2727_s16 = scalar_lea.vmem %s475_s23, 64  ;;  %s2854_s18 = smov [#allocation10]  }
  0x9c   : > { %p2728_p4 = scmp.ne.s32.totalorder %s475_s23, %s2727_s16  ;;  %s2732_s10 = sshll.u32 %s2854_s18, 4  ;;  %s2733_s10 = int_to_ptr.vmem [resolvable:$false] %s2732_s10 }
  0x9d   : > { %s2734_s28 = scalar_lea.vmem %s2733_s10, 128  ;;  %p2735_p7 = scmp.lt.s32.totalorder %s475_s23, %s2733_s10 }
  0x9e   : > { %p2730_p5 = pnand %p2728_p4, %p3023_p2  ;;  %p2736_p12 = scmp.lt.s32.totalorder %s2734_s28, %s2727_s16 }
  0xa0   : > { %p2731_p6 = pneg %p2730_p5  ;;  %p2737_p9 = por %p2736_p12, %p2735_p7 }
  0xa2   : > { %p2738_p0 = pnand %p2737_p9, %p2731_p6 }
  0xa4   : > { %2741 = shalt.err (!%p2738_p0)
}
  0xa5   : > { %p3608_p8 = scmp.ne.s32.totalorder %s3597_s19, 0  ;;  %p3609_p10 = scmp.ne.s32.totalorder %s3602_s30, 0 }
  0xa6   : > { %s3168_s21 = sand.u32 (!%p3609_p10), 1, %s2840_s22   ;;  %p3610_p2 = scmp.ne.s32.totalorder (!%p3609_p10), %s3592_s13, 0 }
  0xa7   : > { %2478 = dma.hbm_to_vmem [thread:$0]  (!%p3608_p8), %s3126_s24, 64, %s475_s23, %s3063_s27  }
  0xa8   : > { %483 = sbr.rel (%p3609_p10) target bundleno = 2074 (0x81a), region = 64  ;;  %s3171_s9 = sshll.u32 (!%p3609_p10), %s3168_s21, 2 }
  0xa9   : > { %s486_s17 = scalar_lea.sflag (!%p3609_p10), [#allocation3], %s3168_s21  ;;  %s489_s14 = scalar_lea.vmem (!%p3609_p10), [#allocation2], %s3171_s9 }
  0xaf   : > { %2815 = dma.done.wait (%p3610_p2), %s486_s17, 64  }
  0xb0   : > { %2817 = vsyncadd (%p3610_p2), %s486_s17, 4294967232  ;;  %s494_s19 = sand.u32 1, %s2959_s25   ;;  %s498_s27 = scalar_lea.vmem [#allocation5], %s3171_s9 }
  0xb1   : > { %s495_s30 = scalar_lea.sflag [#allocation6], %s494_s19 }
  0xb2   : > { %2819 = dma.done.wait (%p3610_p2), %s495_s30, 128  }
  0xb3   : > { %2821 = vsyncadd (%p3610_p2), %s495_s30, 4294967168  ;;  %s507_s24 = scalar_lea.vmem [#allocation7], %s3171_s9  ;;  %s513_s29 = scalar_lea.sflag [#allocation9], %s494_s19 }
  0xb4   : > { %s516_s20 = scalar_lea.vmem [#allocation8], %s3171_s9 }
  0xb5   : > { %2823 = dma.done.wait (%p3610_p2), %s513_s29, 128  }
  0xb6   : > { %2825 = vsyncadd (%p3610_p2), %s513_s29, 4294967168  ;;  %v2855_v0 = vmov 0.0   ;;  %vm2856_vm0 = vmmov 0   ;;  %v2566_v1 = vld [vmem:[%s3556_s7] sm:$0xff]   ;;  %v2568_v3 = vld [vmem:[%s3556_s7 + $0x8] sm:$0xff]   ;;  %vm618_vm1 = vcmask 261120   ;;  %v777_v34 = vlaneseq }
  0xb7   : > { %2373 = vmatprep.subr.bf16.mxu1 %v2855_v0  ;;  %2365 = vmatprep.subr.bf16.mxu0 %v2855_v0  ;;  %v2567_v2 = vld [vmem:[%s3555_s6] sm:$0xff]   ;;  %v3208_v4 = vld [vmem:[%s498_s27] sm:$0xf]  ;;  %v3222_v7 = vld [vmem:[%s516_s20] sm:$0xf]  ;;  %s525_s11 = scalar_lea.vmem [#allocation10], %s3171_s9 }
  0xb8   : > { %2377 = vmatprep.mubr.msk.bf16.mxu1 %vm2856_vm0, %v2855_v0  ;;  %2369 = vmatprep.mubr.msk.bf16.mxu0 %vm2856_vm0, %v2855_v0  ;;  %v2569_v5 = vld [vmem:[%s3555_s6 + $0x8] sm:$0xff]   ;;  %v600_v6 = vld [vmem:[%s489_s14] sm:$0xf]  ;;  %s2857_s16 = smov 64   ;;  %v834_v12 = vunpack.c.l.bf16 %v3222_v7  ;;  %s2858_s18 = smov 16   ;;  %vm812_vm2 = vcmask 1048064  }
  0xb9   : > { %2374 = vmatpush3.bf16.msra.mxu1 %v2566_v1  ;;  %2366 = vmatpush3.bf16.msra.mxu0 %v2567_v2  ;;  %v848_v8 = vld [vmem:[%s525_s11] sm:$0xf]  ;;  %s2859_s10 = smov 48   ;;  %p595_p9 = scmp.lt.s32.totalorder %s2959_s25, 1  ;;  %v780_v22 = vld [vmem:[%s507_s24] sm:$0xf] }
  0xba   : > { %2375 = vmatprep.subr.bf16.mxu1 %v2855_v0  ;;  %2367 = vmatprep.subr.bf16.mxu0 %v2855_v0  ;;  %v849_v13 = vunpack.c.l.bf16 %v848_v8  ;;  %v781_v26 = vunpack.c.l.bf16 %v780_v22  ;;  %s2860_s27 = smov 32   ;;  %s2861_s9 = smov 65   ;;  %vm792_vm3 = vcmask 130048   ;;  %v778_v37 = vand.u32 127, %v777_v34 }
  0xbb   : > { %s596_s28 = scalar_select %p595_p9, %s2959_s25, 1  ;;  %vm795_vm4 = vcmask 392192   ;;  %vm1571_vm6 = vcmask 64512   ;;  %vm1627_vm7 = vcmask 1043456   ;;  %vm2000_vm8 = vcmask 523264  }
  0xbc   : > { %v2536_v19 = vpack.i.bf16 %v849_v13, %v834_v12  ;;  %s2862_s24 = smov 127   ;;  %v779_v44 = vand.u32 1, %v778_v37  ;;  %s2863_s29 = smov 96  }
  0xbd   : > { %2376 = vmatpush3.bf16.msra.mxu1 %v2568_v3  ;;  %2368 = vmatpush3.bf16.msra.mxu0 %v2569_v5  ;;  %s2301_s17 = sshll.u32 %s596_s28, 2  ;;  %s2864_s20 = smov 112  }
  0xbe   : > { %2389 = vmatprep.subr.bf16.mxu1 %v2855_v0  ;;  %2381 = vmatprep.subr.bf16.mxu0 %v2855_v0  ;;  %s598_s30 = scalar_lea.vmem %s3552_s3, %s2301_s17  ;;  %vm3257_vm5 = vcmp.eq.s32.totalorder %v779_v44, 0  ;;  %s2865_s0 = smov 80  }
  0xbf   : > { %v797_v23 = vld [vmem:[%s598_s30] sm:$0xf]  ;;  %s2300_s12 = sshll.u32 %s3168_s21, 5  ;;  %s2051_s23 = scalar_lea.sflag [#allocation13], %s3168_s21 }
  0xc0   : > { %2378 = vmatmul.mubr.msk.bf16.vlgmr.msra.gmra.mrb[0].mxu1 %vm618_vm1, %v3208_v4  ;;  %2370 = vmatmul.mubr.msk.bf16.vlgmr.msra.gmra.mrb[0].mxu0 %vm618_vm1, %v600_v6  ;;  %v798_v27 = vunpack.c.l.bf16 %v797_v23  ;;  %s3387_s15 = scalar_lea.vmem [#allocation12], %s2300_s12  ;;  %s2869_s1 = smov [#allocation12]  }
  0xc1   : > { %2391 = vmatprep.mubr.msk.bf16.mxu1 %vm2856_vm0, %v2855_v0  ;;  %2385 = vmatprep.mubr.msk.bf16.mxu0 %vm2856_vm0, %v2855_v0  ;;  %s2746_s13 = sshll.u32 %s2869_s1, 4  ;;  %s2747_s13 = int_to_ptr.vmem [resolvable:$false] %s2746_s13 }
  0xc2   : > { %v2551_v28 = vpack.i.bf16 %v798_v27, %v781_v26  ;;  %s2748_s12 = scalar_lea.vmem %s2747_s13, 1024 }
 0x193   : > { %v3225_v9 = vpop.f32.mrb[0].mxu1  ;;  %v3228_v11 = vpop.f32.mrb[0].mxu0 }
 0x194   : > { %863 = vrot.lane.b32.xlu0 %v3225_v9, %s2857_s16  ;;  %v2379_v10 = vpop.f32.mrb[1].mxu1  ;;  %v2371_v15 = vpop.f32.mrb[1].mxu0 }
 0x195   : > { %v718_v14 = vpop.f32.mrb[2].mxu1  ;;  %v659_v17 = vpop.f32.mrb[2].mxu0 }
 0x196   : > { %v2380_v16 = vpop.f32.mrb[3].mxu1  ;;  %v2372_v18 = vpop.f32.mrb[3].mxu0 }
 0x198   : > { %813 = vrot.lane.b32.xlu0 %v3228_v11, %s2857_s16 }
 0x19c   : > { %2537 = vrot.lane.b32.xlu0 %v2536_v19, %s2858_s18 }
 0x1a0   : > { %2547 = vrot.lane.b32.xlu0 %v2536_v19, %s2859_s10 }
 0x206   : > { %v864_v20 = vpop.permute.xlu0 %863 }
 0x207   : > { %v865_v21 = vsel %vm812_vm2, %v864_v20, %v3225_v9  ;;  %v2570_v20 = vld [vmem:[%s3557_s8] sm:$0xff]  }
 0x208   : > { %866 = vrot.lane.b32.xlu1 %v865_v21, %s2857_s16  ;;  %2382 = vmatpush3.bf16.msra.mxu0 %v2570_v20  ;;  %v2866_v21 = vmov 1983009808  }
 0x209   : > { %2383 = vmatprep.subr.bf16.mxu0 %v2855_v0  ;;  %v889_v22 = vunpack.c.l.s4 %v2866_v21 }
 0x20a   : > { %v814_v24 = vpop.permute.xlu0 %813 }
 0x20b   : > { %v815_v25 = vsel %vm812_vm2, %v814_v24, %v3228_v11  ;;  %v890_v23 = vunpack.c.0.s8 %v889_v22  ;;  %v892_v24 = vshrl.u32 %v777_v34, 7 }
 0x20c   : > { %816 = vrot.lane.b32.xlu1 %v815_v25, %s2857_s16  ;;  %v2867_v25 = vmov 1934713408   ;;  %s3613_s16 = sld [smem:[#allocation29_spill]] }
 0x20e   : > { %v2538_v33 = vpop.permute.xlu0 %2537 }
 0x20f   : > { %v2540_v35 = vunpack.i.h.bf16 %v2538_v33  ;;  %v2539_v38 = vunpack.i.l.bf16 %v2538_v33 }
 0x210   : > { %2542 = vrot.lane.b32.xlu1 %v2536_v19, %s2860_s27 }
 0x211   : > { %v860_v41 = vsel %vm792_vm3, %v849_v13, %v2540_v35  ;;  %v845_v45 = vsel %vm792_vm3, %v834_v12, %v2539_v38 }
 0x212   : > { %v2548_v40 = vpop.permute.xlu0 %2547 }
 0x213   : > { %v2550_v46 = vunpack.i.h.bf16 %v2548_v40  ;;  %v2549_v48 = vunpack.i.l.bf16 %v2548_v40  ;;  %v2868_v40 = vmov 0  }
 0x214   : > { %2552 = vrot.lane.b32.xlu1 %v2551_v28, %s2858_s18 }
 0x27a   : > { %v867_v29 = vpop.permute.xlu1 %866 }
 0x27b   : > { %v868_v30 = vsel %vm812_vm2, %v867_v29, %v3225_v9 }
 0x27c   : > { %873 = vrot.lane.b32.xlu0 %v868_v30, %s2861_s9  ;;  %870 = vrot.lane.b32.xlu1 %v868_v30, %s2862_s24 }
 0x27e   : > { %v817_v31 = vpop.permute.xlu1 %816 }
 0x27f   : > { %v818_v32 = vsel %vm812_vm2, %v817_v31, %v3228_v11 }
 0x280   : > { %2557 = vrot.lane.b32.xlu0 %v2551_v28, %s2860_s27  ;;  %2562 = vrot.lane.b32.xlu1 %v2551_v28, %s2859_s10 }
 0x282   : > { %v2543_v36 = vpop.permute.xlu1 %2542 }
 0x283   : > { %v2545_v39 = vunpack.i.h.bf16 %v2543_v36  ;;  %v2544_v42 = vunpack.i.l.bf16 %v2543_v36 }
 0x284   : > { %826 = vrot.lane.b32.xlu1 %v818_v32, %s2861_s9  ;;  %823 = vrot.lane.b32.xlu0 %v818_v32, %s2862_s24  ;;  %s3614_s24 = sld [smem:[#allocation24_spill]] }
 0x285   : > { %v861_v47 = vsel %vm618_vm1, %v860_v41, %v2545_v39  ;;  %v846_v50 = vsel %vm618_vm1, %v845_v45, %v2544_v42 }
 0x286   : > { %v2553_v43 = vpop.permute.xlu1 %2552  ;;  %v862_v51 = vsel %vm795_vm4, %v861_v47, %v2550_v46  ;;  %v847_v54 = vsel %vm795_vm4, %v846_v50, %v2549_v48 }
 0x287   : > { %v2555_v56 = vunpack.i.h.bf16 %v2553_v43  ;;  %v2554_v57 = vunpack.i.l.bf16 %v2553_v43  ;;  %v877_v58 = vmul.f32 %v862_v51, %v3225_v9 }
 0x289   : > { %v809_v5 = vsel %vm792_vm3, %v798_v27, %v2555_v56  ;;  %v793_v6 = vsel %vm792_vm3, %v781_v26, %v2554_v57  ;;  %v906_v26 = vunpack.c.l.s4 %v2867_v25  ;;  %v3295_v27 = vsub.s32 %v890_v23, %v892_v24 }
 0x28a   : > { %p3616_p11 = scmp.ne.s32.totalorder %s3614_s24, 0 }
 0x28b   : > { %v907_v28 = vunpack.c.0.s8 %v906_v26 }
 0x28d   : > { %v3297_v31 = vsub.s32 %v907_v28, %v892_v24 }
 0x2ee   : > { %v871_v52 = vpop.permute.xlu1 %870  ;;  %v874_v53 = vpop.permute.xlu0 %873 }
 0x2ef   : > { %v876_v55 = vsel %vm3257_vm5, %v871_v52, %v874_v53 }
 0x2f0   : > { %v878_v59 = vmul.f32 %v876_v55, %v847_v54 }
 0x2f2   : > { %v879_v60 = vadd.f32 %v878_v59, %v877_v58  ;;  %v2563_v61 = vpop.permute.xlu1 %2562  ;;  %v2558_v62 = vpop.permute.xlu0 %2557 }
 0x2f3   : > { %v2565_v63 = vunpack.i.h.bf16 %v2563_v61  ;;  %v2564_v1 = vunpack.i.l.bf16 %v2563_v61  ;;  %v2560_v2 = vunpack.i.h.bf16 %v2558_v62  ;;  %v2559_v3 = vunpack.i.l.bf16 %v2558_v62 }
 0x2f4   : > { %v1049_v7 = vpack.c.bf16 %v879_v60, %v879_v60 }
 0x2f5   : > { %v810_v8 = vsel %vm618_vm1, %v809_v5, %v2560_v2  ;;  %v794_v10 = vsel %vm618_vm1, %v793_v6, %v2559_v3 }
 0x2f6   : > { %v827_v12 = vpop.permute.xlu1 %826  ;;  %v824_v13 = vpop.permute.xlu0 %823  ;;  %v796_v9 = vsel %vm795_vm4, %v794_v10, %v2564_v1  ;;  %v811_v14 = vsel %vm795_vm4, %v810_v8, %v2565_v63  ;;  %1053 = vrot.lane.b32.xlu1 %v1049_v7, %s2863_s29  ;;  %1051 = vrot.lane.b32.xlu0 %v1049_v7, %s2864_s20  ;;  %v1063_v32 = vrot.slane %v1049_v7, %v3295_v27 }
 0x2f7   : > { %v829_v15 = vsel %vm3257_vm5, %v824_v13, %v827_v12  ;;  %v830_v16 = vmul.f32 %v811_v14, %v3228_v11  ;;  %v2571_v11 = vld [vmem:[%s3557_s8 + $0x8] sm:$0xff]  }
 0x2f8   : > { %v831_v17 = vmul.f32 %v829_v15, %v796_v9  ;;  %2384 = vmatpush3.bf16.msra.mxu0 %v2571_v11 }
 0x2f9   : > { %2395 = vmatprep.subr.bf16.mxu0 %v2855_v0 }
 0x2fa   : > { %v832_v18 = vadd.f32 %v831_v17, %v830_v16  ;;  %1055 = vrot.lane.b32.xlu0 %v1049_v7, %s2865_s0 }
 0x2fb   : > { %2386 = vmatmul.mubr.msk.bf16.vlgmr.msra.gmra.mrb[4].mxu0 %vm618_vm1, %v3208_v4 }
 0x2fc   : > { %v880_v19 = vpack.c.bf16 %v832_v18, %v832_v18  ;;  %2397 = vmatprep.mubr.msk.bf16.mxu0 %vm2856_vm0, %v2855_v0 }
 0x2fe   : > { %882 = vrot.lane.b32.xlu1 %v880_v19, %s2864_s20  ;;  %884 = vrot.lane.b32.xlu0 %v880_v19, %s2863_s29  ;;  %v894_v47 = vrot.slane %v880_v19, %v3295_v27 }
 0x302   : > { %886 = vrot.lane.b32.xlu1 %v880_v19, %s2865_s0 }
 0x368   : > { %v1054_v29 = vpop.permute.xlu1 %1053  ;;  %v1052_v30 = vpop.permute.xlu0 %1051 }
 0x369   : > { %v1071_v4 = vrot.slane %v1054_v29, %v3295_v27  ;;  %v1097_v39 = vrot.slane %v1052_v30, %v3295_v27 }
 0x36b   : > { %v1072_v33 = vcombine.low %v1063_v32, %v1071_v4  ;;  %v1073_v35 = vcombine.high %v1063_v32, %v1071_v4 }
 0x36c   : > { %v1056_v36 = vpop.permute.xlu0 %1055 }
 0x36d   : > { %v1080_v37 = vrot.slane %v1072_v33, %v3297_v31  ;;  %v1087_v34 = vrot.slane %v1073_v35, %v3297_v31  ;;  %v1105_v38 = vrot.slane %v1056_v36, %v3295_v27 }
 0x36f   : > { %v1088_v41 = vcombine.high %v1080_v37, %v2868_v40  ;;  %v1106_v42 = vcombine.low %v1097_v39, %v1105_v38  ;;  %v1107_v43 = vcombine.high %v1097_v39, %v1105_v38  ;;  %v1089_v45 = vcombine.high %v1087_v34, %v2868_v40 }
 0x370   : > { %v885_v44 = vpop.permute.xlu0 %884  ;;  %v883_v46 = vpop.permute.xlu1 %882  ;;  %v1128_v51 = vshrl.u32 %v1080_v37, 16  ;;  %v1144_v53 = vshrl.u32 %v1087_v34, 16 }
 0x371   : > { %v902_v48 = vrot.slane %v885_v44, %v3295_v27  ;;  %v1114_v49 = vrot.slane %v1106_v42, %v3297_v31  ;;  %v1121_v50 = vrot.slane %v1107_v43, %v3297_v31  ;;  %v1136_v52 = vshrl.u32 %v1088_v41, 16 }
 0x372   : > { %v1152_v59 = vshrl.u32 %v1089_v45, 16  ;;  %v928_v17 = vrot.slane %v883_v46, %v3295_v27 }
 0x373   : > { %v903_v54 = vcombine.low %v894_v47, %v902_v48  ;;  %v1122_v55 = vcombine.high %v1114_v49, %v2868_v40  ;;  %v1123_v56 = vcombine.high %v1121_v50, %v2868_v40  ;;  %v1126_v57 = vpack.i.b16 %v1114_v49, %v1080_v37 }
 0x374   : > { %v1129_v58 = vshrl.u32 %v1114_v49, 16  ;;  %v1142_v60 = vpack.i.b16 %v1121_v50, %v1087_v34  ;;  %v1145_v61 = vshrl.u32 %v1121_v50, 16  ;;  %v904_v62 = vcombine.high %v894_v47, %v902_v48  ;;  %v887_v10 = vpop.permute.xlu1 %886 }
 0x375   : > { %v1134_v1 = vpack.i.b16 %v1122_v55, %v1088_v41  ;;  %v1137_v2 = vshrl.u32 %v1122_v55, 16  ;;  %v1150_v3 = vpack.i.b16 %v1123_v56, %v1089_v45  ;;  %v1153_v6 = vshrl.u32 %v1123_v56, 16 }
 0x376   : > { %v1130_v63 = vpack.i.b16 %v1129_v58, %v1128_v51  ;;  %v1146_v5 = vpack.i.b16 %v1145_v61, %v1144_v53  ;;  %v1156_v7 = vcombine.low %v1126_v57, %v1142_v60  ;;  %v911_v8 = vrot.slane %v903_v54, %v3297_v31 }
 0x377   : > { %v1138_v12 = vpack.i.b16 %v1137_v2, %v1136_v52  ;;  %v1164_v13 = vcombine.low %v1134_v1, %v1150_v3  ;;  %v1154_v9 = vpack.i.b16 %v1153_v6, %v1152_v59  ;;  %v918_v15 = vrot.slane %v904_v62, %v3297_v31 }
 0x378   : > { %v1181_v14 = vcombine.low %v1130_v63, %v1146_v5  ;;  %v1163_v16 = vrot.slane %v1156_v7, %v3295_v27  ;;  %v936_v18 = vrot.slane %v887_v10, %v3295_v27  ;;  %v919_v11 = vcombine.high %v911_v8, %v2868_v40 }
 0x379   : > { %v1171_v19 = vrot.slane %v1164_v13, %v3295_v27  ;;  %v1189_v20 = vcombine.low %v1138_v12, %v1154_v9  ;;  %v920_v24 = vcombine.high %v918_v15, %v2868_v40  ;;  %v959_v28 = vshrl.u32 %v911_v8, 16 }
 0x37a   : > { %v937_v21 = vcombine.low %v928_v17, %v936_v18  ;;  %v938_v22 = vcombine.high %v928_v17, %v936_v18  ;;  %v1188_v25 = vrot.slane %v1181_v14, %v3295_v27  ;;  %v967_v32 = vshrl.u32 %v919_v11, 16 }
 0x37b   : > { %v1172_v23 = vcombine.low %v1163_v16, %v1171_v19  ;;  %v1196_v26 = vrot.slane %v1189_v20, %v3295_v27  ;;  %v975_v4 = vshrl.u32 %v918_v15, 16  ;;  %v983_v39 = vshrl.u32 %v920_v24, 16 }
 0x37c   : > { %v945_v29 = vrot.slane %v937_v21, %v3297_v31  ;;  %v952_v30 = vrot.slane %v938_v22, %v3297_v31 }
 0x37d   : > { %v1179_v33 = vrot.slane %v1172_v23, %v3297_v31  ;;  %v1197_v35 = vcombine.low %v1188_v25, %v1196_v26 }
 0x37e   : > { %v953_v36 = vcombine.high %v945_v29, %v2868_v40  ;;  %v954_v37 = vcombine.high %v952_v30, %v2868_v40  ;;  %v957_v34 = vpack.i.b16 %v945_v29, %v911_v8  ;;  %v960_v38 = vshrl.u32 %v945_v29, 16 }
 0x37f   : > { %v973_v41 = vpack.i.b16 %v952_v30, %v918_v15  ;;  %v976_v42 = vshrl.u32 %v952_v30, 16  ;;  %v1204_v43 = vrot.slane %v1197_v35, %v3297_v31  ;;  %v1209_v54 = vshrl.u32 %v1179_v33, 16 }
 0x380   : > { %v961_v44 = vpack.i.b16 %v960_v38, %v959_v28  ;;  %v965_v45 = vpack.i.b16 %v953_v36, %v919_v11  ;;  %v968_v46 = vshrl.u32 %v953_v36, 16  ;;  %v981_v47 = vpack.i.b16 %v954_v37, %v920_v24 }
 0x381   : > { %v977_v48 = vpack.i.b16 %v976_v42, %v975_v4  ;;  %v984_v49 = vshrl.u32 %v954_v37, 16  ;;  %v987_v50 = vcombine.low %v957_v34, %v973_v41  ;;  %v1208_v51 = vpack.i.b16 %v1204_v43, %v1179_v33 }
 0x382   : > { %v969_v52 = vpack.i.b16 %v968_v46, %v967_v32  ;;  %v995_v53 = vcombine.low %v965_v45, %v981_v47  ;;  %v1210_v55 = vshrl.u32 %v1204_v43, 16  ;;  %v1205_v63 = vcombine.high %v1204_v43, %v2868_v40 }
 0x383   : > { %v985_v56 = vpack.i.b16 %v984_v49, %v983_v39  ;;  %v1012_v57 = vcombine.low %v961_v44, %v977_v48  ;;  %v1391_v58 = vsel %vm792_vm3, %v1208_v51, 0  ;;  %v994_v59 = vrot.slane %v987_v50, %v3295_v27 }
 0x384   : > { %v1002_v60 = vrot.slane %v995_v53, %v3295_v27  ;;  %2390 = vmatpush3.bf16.xpose.msra.mxu1 %v1391_v58  ;;  %v1211_v61 = vpack.i.b16 %v1210_v55, %v1209_v54  ;;  %v1180_v6 = vcombine.high %v1179_v33, %v2868_v40  ;;  %v1216_v10 = vshrl.u32 %v1205_v63, 16 }
 0x385   : > { %v1020_v62 = vcombine.low %v969_v52, %v985_v56  ;;  %2401 = vmatprep.subr.bf16.mxu1 %v2855_v0  ;;  %v1019_v3 = vrot.slane %v1012_v57, %v3295_v27 }
 0x386   : > { %v1003_v1 = vcombine.low %v994_v59, %v1002_v60  ;;  %v1437_v2 = vsel %vm792_vm3, %v1211_v61, 0  ;;  %v1214_v13 = vpack.i.b16 %v1205_v63, %v1180_v6  ;;  %v1215_v9 = vshrl.u32 %v1180_v6, 16 }
 0x387   : > { %v1027_v5 = vrot.slane %v1020_v62, %v3295_v27  ;;  %2396 = vmatpush3.bf16.xpose.msra.mxu0 %v1437_v2 }
 0x388   : > { %2407 = vmatprep.subr.bf16.mxu0 %v2855_v0  ;;  %v1010_v8 = vrot.slane %v1003_v1, %v3297_v31  ;;  %v1217_v17 = vpack.i.b16 %v1216_v10, %v1215_v9  ;;  %v1483_v18 = vsel %vm792_vm3, %v1214_v13, 0 }
 0x389   : > { %v1028_v7 = vcombine.low %v1019_v3, %v1027_v5 }
 0x38a   : > { %v1040_v15 = vshrl.u32 %v1010_v8, 16  ;;  %v1529_v11 = vsel %vm792_vm3, %v1217_v17, 0  ;;  %v1011_v21 = vcombine.high %v1010_v8, %v2868_v40 }
 0x38b   : > { %v1035_v12 = vrot.slane %v1028_v7, %v3297_v31 }
 0x38c   : > { %v1046_v24 = vshrl.u32 %v1011_v21, 16 }
 0x38d   : > { %v1039_v14 = vpack.i.b16 %v1035_v12, %v1010_v8  ;;  %v1041_v16 = vshrl.u32 %v1035_v12, 16  ;;  %v1036_v20 = vcombine.high %v1035_v12, %v2868_v40 }
 0x38f   : > { %2392 = vmatmul.mubr.msk.bf16.vlgmr.msra.gmra.mrb[4].mxu1 %vm792_vm3, %v1039_v14  ;;  %v1042_v19 = vpack.i.b16 %v1041_v16, %v1040_v15  ;;  %v1047_v22 = vshrl.u32 %v1036_v20, 16  ;;  %v1045_v23 = vpack.i.b16 %v1036_v20, %v1011_v21 }
 0x390   : > { %2402 = vmatpush3.bf16.xpose.msra.mxu1 %v1483_v18  ;;  %2403 = vmatprep.mubr.msk.bf16.mxu1 %vm2856_vm0, %v2855_v0 }
 0x391   : > { %2398 = vmatmul.mubr.msk.bf16.vlgmr.msra.gmra.mrb[8].mxu0 %vm792_vm3, %v1042_v19  ;;  %2413 = vmatprep.subr.bf16.mxu1 %v2855_v0  ;;  %v1048_v25 = vpack.i.b16 %v1047_v22, %v1046_v24 }
 0x392   : > { %2408 = vmatpush3.bf16.xpose.msra.mxu0 %v1529_v11  ;;  %2409 = vmatprep.mubr.msk.bf16.mxu0 %vm2856_vm0, %v2855_v0 }
 0x393   : > { %2419 = vmatprep.subr.bf16.mxu0 %v2855_v0 }
 0x397   : > { %2404 = vmatmul.mubr.msk.bf16.vlgmr.msra.gmra.mrb[8].mxu1 %vm792_vm3, %v1045_v23 }
 0x398   : > { %2415 = vmatprep.mubr.msk.bf16.mxu1 %vm2856_vm0, %v2855_v0 }
 0x399   : > { %2410 = vmatmul.mubr.msk.bf16.vlgmr.msra.gmra.mrb[12].mxu0 %vm792_vm3, %v1048_v25 }
 0x39a   : > { %2421 = vmatprep.mubr.msk.bf16.mxu0 %vm2856_vm0, %v2855_v0 }
 0x3ce   : > { %v771_v26 = vpop.f32.mrb[4].mxu0 }
 0x3cf   : > { %v2387_v28 = vpop.f32.mrb[5].mxu0  ;;  %v1218_v52 = vpack.c.bf16 %v771_v26, %v771_v26 }
 0x3d0   : > { %v774_v29 = vpop.f32.mrb[6].mxu0 }
 0x3d1   : > { %v2388_v30 = vpop.f32.mrb[7].mxu0  ;;  %v1232_v11 = vrot.slane %v1218_v52, %v3295_v27 }
 0x462   : > { %v1427_v32 = vpop.f32.mrb[4].mxu1 }
 0x463   : > { %v2393_v4 = vpop.f32.mrb[5].mxu1  ;;  %v1572_v33 = vsel %vm1571_vm6, %v1427_v32, -inf }
 0x464   : > { %1573 = vmax.xlane.f32.xlu0 %v1572_v33  ;;  %v1430_v35 = vpop.f32.mrb[6].mxu1  ;;  %v1473_v36 = vpop.f32.mrb[8].mxu0 }
 0x465   : > { %v2394_v37 = vpop.f32.mrb[7].mxu1  ;;  %v2399_v34 = vpop.f32.mrb[9].mxu0  ;;  %v1575_v38 = vsel %vm1571_vm6, %v1473_v36, -inf }
 0x466   : > { %1576 = vmax.xlane.f32.xlu1 %v1575_v38  ;;  %v1476_v39 = vpop.f32.mrb[10].mxu0 }
 0x467   : > { %v2400_v41 = vpop.f32.mrb[11].mxu0 }
 0x46a   : > { %v1519_v42 = vpop.f32.mrb[8].mxu1 }
 0x46b   : > { %v2405_v43 = vpop.f32.mrb[9].mxu1  ;;  %v1578_v44 = vsel %vm1571_vm6, %v1519_v42, -inf }
 0x46c   : > { %1579 = vmax.xlane.f32.xlu0 %v1578_v44  ;;  %v1522_v45 = vpop.f32.mrb[10].mxu1  ;;  %v1565_v46 = vpop.f32.mrb[12].mxu0 }
 0x46d   : > { %v2406_v47 = vpop.f32.mrb[11].mxu1  ;;  %v2411_v48 = vpop.f32.mrb[13].mxu0  ;;  %v1581_v51 = vsel %vm1571_vm6, %v1565_v46, -inf }
 0x46e   : > { %v1568_v49 = vpop.f32.mrb[14].mxu0 }
 0x46f   : > { %v2412_v50 = vpop.f32.mrb[15].mxu0 }
 0x470   : > { %1582 = vmax.xlane.f32.xlu0 %v1581_v51 }
 0x477   : > { %1220 = vrot.lane.b32.xlu1 %v1218_v52, %s2864_s20 }
 0x4f1   : > { %v1574_v53 = vpop.xlane.xlu0 %1573 }
 0x4f2   : > { %v1584_v54 = vsub.f32 %v1427_v32, %v1574_v53 }
 0x4f3   : > { %v1577_v55 = vpop.xlane.xlu1 %1576 }
 0x4f4   : > { %v1588_v56 = vmul.f32 1.442695, %v1584_v54  ;;  %v1585_v57 = vsub.f32 %v1473_v36, %v1577_v55 }
 0x4f6   : > { %2576 = vpow2.f32 %v1588_v56  ;;  %v1590_v58 = vmul.f32 1.442695, %v1585_v57 }
 0x4f7   : > { %v1221_v13 = vpop.permute.xlu1 %1220 }
 0x4f8   : > { %2578 = vpow2.f32 %v1590_v58  ;;  %v1266_v16 = vrot.slane %v1221_v13, %v3295_v27 }
 0x4f9   : > { %v1580_v63 = vpop.xlane.xlu0 %1579 }
 0x4fa   : > { %v1586_v2 = vsub.f32 %v1519_v42, %v1580_v63 }
 0x4fc   : > { %v1592_v5 = vmul.f32 1.442695, %v1586_v2 }
 0x4fd   : > { %v1583_v1 = vpop.xlane.xlu0 %1582 }
 0x4fe   : > { %v1587_v3 = vsub.f32 %v1565_v46, %v1583_v1  ;;  %2580 = vpow2.f32 %v1592_v5 }
 0x500   : > { %v2577_v59 = vpop.eup %2576  ;;  %v1594_v6 = vmul.f32 1.442695, %v1587_v3 }
 0x501   : > { %v1596_v60 = vsel %vm1571_vm6, %v2577_v59, 0.0 }
 0x502   : > { %v2579_v61 = vpop.eup %2578  ;;  %1597 = vadd.xlane.f32.xlu1 %v1596_v60  ;;  %2582 = vpow2.f32 %v1594_v6 }
 0x503   : > { %v1599_v62 = vsel %vm1571_vm6, %v2579_v61, 0.0 }
 0x504   : > { %1600 = vadd.xlane.f32.xlu0 %v1599_v62 }
 0x508   : > { %v3368_v7 = vpop.eup %2580 }
 0x509   : > { %v1602_v10 = vsel %vm1571_vm6, %v3368_v7, 0.0 }
 0x50c   : > { %v3370_v8 = vpop.eup %2582 }
 0x50d   : > { %v1605_v12 = vsel %vm1571_vm6, %v3370_v8, 0.0 }
 0x513   : > { %1224 = vrot.lane.b32.xlu1 %v1218_v52, %s2865_s0  ;;  %s3615_s0 = sld [smem:[#allocation32_spill]] }
 0x51a   : > { %1222 = vrot.lane.b32.xlu0 %v1218_v52, %s2863_s29  ;;  %s2334_s29 = sshll.u32 %s2959_s25, 9 }
 0x537   : > { %1603 = vadd.xlane.f32.xlu1 %v1602_v10 }
 0x539   : > { %1606 = vadd.xlane.f32.xlu0 %v1605_v12 }
 0x58f   : > { %v1598_v9 = vpop.xlane.xlu1 %1597 }
 0x590   : > { %2584 = vrcp.f32 %v1598_v9 }
 0x591   : > { %v1601_v14 = vpop.xlane.xlu0 %1600 }
 0x592   : > { %2586 = vrcp.f32 %v1601_v14 }
 0x593   : > { %v1225_v15 = vpop.permute.xlu1 %1224 }
 0x594   : > { %v1274_v17 = vrot.slane %v1225_v15, %v3295_v27 }
 0x595   : > { %v1223_v18 = vpop.permute.xlu0 %1222 }
 0x596   : > { %v1275_v19 = vcombine.low %v1266_v16, %v1274_v17  ;;  %v1276_v20 = vcombine.high %v1266_v16, %v1274_v17  ;;  %v1240_v21 = vrot.slane %v1223_v18, %v3295_v27 }
 0x598   : > { %v1283_v22 = vrot.slane %v1275_v19, %v3297_v31  ;;  %v1290_v23 = vrot.slane %v1276_v20, %v3297_v31  ;;  %v1241_v24 = vcombine.low %v1232_v11, %v1240_v21  ;;  %v1242_v25 = vcombine.high %v1232_v11, %v1240_v21 }
 0x59a   : > { %v2585_v26 = vpop.eup %2584  ;;  %v1291_v28 = vcombine.high %v1283_v22, %v2868_v40  ;;  %v1292_v29 = vcombine.high %v1290_v23, %v2868_v40  ;;  %v1249_v32 = vrot.slane %v1241_v24, %v3297_v31  ;;  %v1256_v4 = vrot.slane %v1242_v25, %v3297_v31 }
 0x59b   : > { %v1609_v30 = vmul.f32 %v2585_v26, %v2577_v59  ;;  %v1298_v35 = vshrl.u32 %v1283_v22, 16  ;;  %v1314_v37 = vshrl.u32 %v1290_v23, 16 }
 0x59c   : > { %v2587_v33 = vpop.eup %2586  ;;  %v1306_v36 = vshrl.u32 %v1291_v28, 16  ;;  %v1257_v38 = vcombine.high %v1249_v32, %v2868_v40  ;;  %v1258_v39 = vcombine.high %v1256_v4, %v2868_v40  ;;  %v1295_v41 = vpack.i.b16 %v1283_v22, %v1249_v32 }
 0x59d   : > { %1616 = vst.msk [vmem:[%s3387_s15] sm:$0xff] %vm1571_vm6, %v1609_v30  ;;  %v1611_v34 = vmul.f32 %v2587_v33, %v2579_v61  ;;  %v1322_v42 = vshrl.u32 %v1292_v29, 16  ;;  %v1297_v43 = vshrl.u32 %v1249_v32, 16  ;;  %v1311_v44 = vpack.i.b16 %v1290_v23, %v1256_v4 }
 0x59e   : > { %v1313_v45 = vshrl.u32 %v1256_v4, 16  ;;  %v1303_v46 = vpack.i.b16 %v1291_v28, %v1257_v38  ;;  %v1305_v47 = vshrl.u32 %v1257_v38, 16  ;;  %v1319_v48 = vpack.i.b16 %v1292_v29, %v1258_v39 }
 0x59f   : > { %1617 = vst.msk [vmem:[%s3387_s15 + $0x8] sm:$0xff] %vm1571_vm6, %v1611_v34  ;;  %v1321_v49 = vshrl.u32 %v1258_v39, 16  ;;  %v1299_v50 = vpack.i.b16 %v1298_v35, %v1297_v43  ;;  %v1325_v52 = vcombine.low %v1295_v41, %v1311_v44  ;;  %v1620_v18 = vpack.c.bf16 %v1609_v30, %v1609_v30 }
 0x5a0   : > { %v1315_v51 = vpack.i.b16 %v1314_v37, %v1313_v45  ;;  %v1307_v53 = vpack.i.b16 %v1306_v36, %v1305_v47  ;;  %v1333_v55 = vcombine.low %v1303_v46, %v1319_v48  ;;  %v1621_v11 = vpack.c.bf16 %v1611_v34, %v1611_v34 }
 0x5a1   : > { %v1323_v54 = vpack.i.b16 %v1322_v42, %v1321_v49  ;;  %v1332_v57 = vrot.slane %v1325_v52, %v3295_v27 }
 0x5a2   : > { %v1350_v56 = vcombine.low %v1299_v50, %v1315_v51  ;;  %v1340_v59 = vrot.slane %v1333_v55, %v3295_v27 }
 0x5a3   : > { %v1358_v58 = vcombine.low %v1307_v53, %v1323_v54 }
 0x5a4   : > { %v1341_v60 = vcombine.low %v1332_v57, %v1340_v59  ;;  %v1357_v61 = vrot.slane %v1350_v56, %v3295_v27  ;;  %v2574_v59 = vld [vmem:[%s3613_s16 + $0x10] sm:$0xff]  }
 0x5a5   : > { %v1365_v62 = vrot.slane %v1358_v58, %v3295_v27 }
 0x5a6   : > { %v1348_v63 = vrot.slane %v1341_v60, %v3297_v31 }
 0x5a7   : > { %v1366_v1 = vcombine.low %v1357_v61, %v1365_v62 }
 0x5a8   : > { %v1349_v3 = vcombine.high %v1348_v63, %v2868_v40  ;;  %v1378_v6 = vshrl.u32 %v1348_v63, 16 }
 0x5a9   : > { %v1373_v2 = vrot.slane %v1366_v1, %v3297_v31 }
 0x5aa   : > { %v1384_v13 = vshrl.u32 %v1349_v3, 16 }
 0x5ab   : > { %v1377_v5 = vpack.i.b16 %v1373_v2, %v1348_v63  ;;  %v1379_v10 = vshrl.u32 %v1373_v2, 16  ;;  %v1374_v12 = vcombine.high %v1373_v2, %v2868_v40 }
 0x5ad   : > { %v1629_v9 = vsel %vm1627_vm7, %v1377_v5, 0  ;;  %v1380_v14 = vpack.i.b16 %v1379_v10, %v1378_v6  ;;  %v1383_v15 = vpack.i.b16 %v1374_v12, %v1349_v3  ;;  %v1385_v16 = vshrl.u32 %v1374_v12, 16  ;;  %v2575_v6 = vld [vmem:[%s3613_s16 + $0x18] sm:$0xff]  }
 0x5ae   : > { %2414 = vmatpush3.bf16.msra.mxu1 %v1629_v9 }
 0x5af   : > { %v1675_v17 = vsel %vm1627_vm7, %v1380_v14, 0  ;;  %2425 = vmatprep.subr.bf16.mxu1 %v2855_v0  ;;  %v1386_v19 = vpack.i.b16 %v1385_v16, %v1384_v13  ;;  %v1721_v20 = vsel %vm1627_vm7, %v1383_v15, 0 }
 0x5b0   : > { %2420 = vmatpush3.bf16.msra.mxu0 %v1675_v17 }
 0x5b1   : > { %2416 = vmatmul.mubr.msk.bf16.vlgmr.msra.gmra.mrb[12].mxu1 %vm1571_vm6, %v1620_v18  ;;  %2431 = vmatprep.subr.bf16.mxu0 %v2855_v0  ;;  %v1767_v40 = vsel %vm1627_vm7, %v1386_v19, 0 }
 0x5b2   : > { %2426 = vmatpush3.bf16.msra.mxu1 %v1721_v20  ;;  %2427 = vmatprep.mubr.msk.bf16.mxu1 %vm2856_vm0, %v2855_v0 }
 0x5b3   : > { %2422 = vmatmul.mubr.msk.bf16.vlgmr.msra.gmra.mrb[16].mxu0 %vm1571_vm6, %v1621_v11  ;;  %2437 = vmatprep.subr.bf16.mxu1 %v2855_v0 }
 0x5b4   : > { %2432 = vmatpush3.bf16.msra.mxu0 %v1767_v40  ;;  %2433 = vmatprep.mubr.msk.bf16.mxu0 %vm2856_vm0, %v2855_v0 }
 0x5c4   : > { %v1604_v21 = vpop.xlane.xlu1 %1603 }
 0x5c5   : > { %2588 = vrcp.f32 %v1604_v21 }
 0x5c6   : > { %v1607_v22 = vpop.xlane.xlu0 %1606 }
 0x5c7   : > { %2590 = vrcp.f32 %v1607_v22 }
 0x5cf   : > { %v2589_v23 = vpop.eup %2588 }
 0x5d0   : > { %v1613_v24 = vmul.f32 %v2589_v23, %v3368_v7  ;;  %v2572_v7 = vld [vmem:[%s3613_s16] sm:$0xff]  }
 0x5d1   : > { %v2591_v25 = vpop.eup %2590 }
 0x5d2   : > { %1618 = vst.msk [vmem:[%s3387_s15 + $0x10] sm:$0xff] %vm1571_vm6, %v1613_v24  ;;  %v1615_v26 = vmul.f32 %v2591_v25, %v3370_v8  ;;  %v1622_v28 = vpack.c.bf16 %v1613_v24, %v1613_v24  ;;  %v2573_v8 = vld [vmem:[%s3613_s16 + $0x8] sm:$0xff]  }
 0x5d4   : > { %1619 = vst.msk [vmem:[%s3387_s15 + $0x18] sm:$0xff] %vm1571_vm6, %v1615_v26  ;;  %2428 = vmatmul.mubr.msk.bf16.vlgmr.msra.gmra.mrb[16].mxu1 %vm1571_vm6, %v1622_v28  ;;  %v1623_v29 = vpack.c.bf16 %v1615_v26, %v1615_v26 }
 0x5d5   : > { %2445 = vmatprep.mubr.msk.bf16.mxu1 %vm2856_vm0, %v2855_v0  ;;  %2438 = vmatpush3.bf16.msra.mxu1 %v2572_v7 }
 0x5d6   : > { %2434 = vmatmul.mubr.msk.bf16.vlgmr.msra.gmra.mrb[20].mxu0 %vm1571_vm6, %v1623_v29  ;;  %2439 = vmatprep.subr.bf16.mxu1 %v2855_v0 }
 0x5d9   : > { %2440 = vmatpush3.bf16.msra.mxu1 %v2573_v8 }
 0x5da   : > { %2441 = vmatprep.subr.bf16.mxu1 %v2855_v0 }
 0x5dd   : > { %2442 = vmatpush3.bf16.msra.mxu1 %v2574_v59 }
 0x5de   : > { %2443 = vmatprep.subr.bf16.mxu1 %v2855_v0 }
 0x5e1   : > { %2444 = vmatpush3.bf16.msra.mxu1 %v2575_v6 }
 0x684   : > { %v1665_v30 = vpop.f32.mrb[12].mxu1 }
 0x685   : > { %v2417_v32 = vpop.f32.mrb[13].mxu1 }
 0x686   : > { %v1668_v4 = vpop.f32.mrb[14].mxu1  ;;  %v1711_v33 = vpop.f32.mrb[16].mxu0 }
 0x687   : > { %v2418_v35 = vpop.f32.mrb[15].mxu1  ;;  %v2423_v36 = vpop.f32.mrb[17].mxu0 }
 0x688   : > { %v1714_v37 = vpop.f32.mrb[18].mxu0 }
 0x689   : > { %v2424_v34 = vpop.f32.mrb[19].mxu0 }
 0x6a7   : > { %v1757_v38 = vpop.f32.mrb[16].mxu1 }
 0x6a8   : > { %v1809_v39 = vcombine.low %v1665_v30, %v1757_v38  ;;  %v1810_v41 = vcombine.high %v1665_v30, %v1757_v38  ;;  %v2429_v42 = vpop.f32.mrb[17].mxu1 }
 0x6a9   : > { %v1760_v43 = vpop.f32.mrb[18].mxu1  ;;  %v1803_v44 = vpop.f32.mrb[20].mxu0 }
 0x6aa   : > { %v1825_v45 = vcombine.low %v1711_v33, %v1803_v44  ;;  %v1826_v46 = vcombine.high %v1711_v33, %v1803_v44  ;;  %v2430_v47 = vpop.f32.mrb[19].mxu1  ;;  %v2435_v48 = vpop.f32.mrb[21].mxu0  ;;  %v1817_v50 = vrot.slane %v1809_v39, %v3295_v27  ;;  %v1824_v51 = vrot.slane %v1810_v41, %v3295_v27 }
 0x6ab   : > { %v1806_v49 = vpop.f32.mrb[22].mxu0 }
 0x6ac   : > { %v1833_v52 = vrot.slane %v1825_v45, %v3295_v27  ;;  %v1840_v53 = vrot.slane %v1826_v46, %v3295_v27  ;;  %v2436_v54 = vpop.f32.mrb[23].mxu0 }
 0x6ae   : > { %v1841_v55 = vcombine.low %v1817_v50, %v1833_v52  ;;  %v1842_v56 = vcombine.high %v1817_v50, %v1833_v52  ;;  %v1857_v57 = vcombine.low %v1824_v51, %v1840_v53  ;;  %v1858_v58 = vcombine.high %v1824_v51, %v1840_v53 }
 0x6b0   : > { %v1849_v60 = vrot.slane %v1841_v55, %v3297_v31  ;;  %v1856_v61 = vrot.slane %v1842_v56, %v3297_v31  ;;  %v1865_v62 = vrot.slane %v1857_v57, %v3297_v31  ;;  %v1872_v63 = vrot.slane %v1858_v58, %v3297_v31 }
 0x6b2   : > { %v1877_v1 = vcombine.low %v1849_v60, %v1856_v61  ;;  %v2319_v2 = vcombine.high %v1849_v60, %v1856_v61  ;;  %v1893_v3 = vcombine.low %v1865_v62, %v1872_v63  ;;  %v2320_v5 = vcombine.high %v1865_v62, %v1872_v63 }
 0x6b4   : > { %v1884_v10 = vrot.slane %v1877_v1, %v3295_v27  ;;  %v1892_v12 = vrot.slane %v2319_v2, %v3295_v27  ;;  %v1900_v13 = vrot.slane %v1893_v3, %v3295_v27  ;;  %v1908_v9 = vrot.slane %v2320_v5, %v3295_v27 }
 0x6b6   : > { %v1910_v14 = vcombine.high %v1884_v10, %v1892_v12  ;;  %v1926_v15 = vcombine.high %v1900_v13, %v1908_v9  ;;  %v1909_v16 = vcombine.low %v1884_v10, %v1892_v12  ;;  %v1925_v17 = vcombine.low %v1900_v13, %v1908_v9 }
 0x6b8   : > { %v1924_v18 = vrot.slane %v1910_v14, %v3297_v31  ;;  %v1940_v0 = vrot.slane %v1926_v15, %v3297_v31  ;;  %v1917_v19 = vrot.slane %v1909_v16, %v3297_v31  ;;  %v1933_v20 = vrot.slane %v1925_v17, %v3297_v31 }
 0x6ba   : > { %v1943_v11 = vcombine.low %v1924_v18, %v1940_v0  ;;  %v1942_v40 = vcombine.high %v1917_v19, %v1933_v20  ;;  %v1944_v21 = vcombine.high %v1924_v18, %v1940_v0  ;;  %v1941_v22 = vcombine.low %v1917_v19, %v1933_v20 }
 0x6bc   : > { %1950 = vrot.lane.b32.xlu1 %v1943_v11, %s2860_s27  ;;  %1946 = vrot.lane.b32.xlu0 %v1942_v40, %s2858_s18  ;;  %s3467_s18 = scalar_lea.hbm %s3615_s0, %s2334_s29 }
 0x6c0   : > { %1954 = vrot.lane.b32.xlu1 %v1944_v21, %s2859_s10  ;;  %s2077_s10 = sshll.u32 %s3387_s15, 4  ;;  %s3470_s10 = int_to_ptr.vmem [resolvable:$true] %s2077_s10 }
 0x6c1   : > { %s2742_s4 = scalar_lea.vmem %s3470_s10, 512  ;;  %p2749_p4 = scmp.lt.s32.totalorder %s3470_s10, %s2747_s13 }
 0x6c2   : > { %p2743_p13 = scmp.ne.s32.totalorder %s3470_s10, %s2742_s4  ;;  %p2750_p5 = scmp.lt.s32.totalorder %s2748_s12, %s2742_s4 }
 0x6c4   : > { %p2744_p1 = pnand %p2743_p13, %p3616_p11  ;;  %p2751_p6 = por %p2750_p5, %p2749_p4 }
 0x6c6   : > { %p2745_p3 = pneg %p2744_p1 }
 0x6c8   : > { %p2752_p7 = pnand %p2751_p6, %p2745_p3 }
 0x72e   : > { %v1951_v27 = vpop.permute.xlu1 %1950  ;;  %v1947_v23 = vpop.permute.xlu0 %1946 }
 0x72f   : > { %v1957_v24 = vsel %vm792_vm3, %v1941_v22, %v1947_v23 }
 0x730   : > { %v1958_v31 = vsel %vm618_vm1, %v1957_v24, %v1951_v27 }
 0x732   : > { %v1955_v25 = vpop.permute.xlu1 %1954 }
 0x733   : > { %v1959_v26 = vsel %vm795_vm4, %v1958_v31, %v1955_v25 }
 0x734   : > { %v1960_v28 = vpack.c.bf16 %v1959_v26, %v1959_v26 }
 0x736   : > { %2446 = vmatmul.mubr.msk.bf16.vlgmr.msra.gmra.mrb[20].mxu1 %vm2000_vm8, %v1960_v28 }
 0x737   : > { %2755 = shalt.err (!%p2752_p7)
}
 0x738   : > { %s2756_s15 = scalar_lea.hbm %s3467_s18, 512  ;;  %s2760_s28 = scalar_lea.hbm %s3615_s0, 1024 }
 0x739   : > { %p2757_p12 = scmp.ne.s32.totalorder %s3467_s18, %s2756_s15  ;;  %p2761_p10 = scmp.lt.u32.totalorder %s3467_s18, %s3615_s0 }
 0x73a   : > { %p2762_p2 = scmp.lt.u32.totalorder %s2760_s28, %s2756_s15  ;;  %p2764_p13 = scmp.lt.u32.totalorder %s2756_s15, %s3467_s18 }
 0x73b   : > { %p2758_p0 = pnand %p2757_p12, %p3616_p11 }
 0x73c   : > { %p2763_p9 = por %p2762_p2, %p2761_p10 }
 0x73d   : > { %p2759_p8 = pneg %p2758_p0 }
 0x73e   : > { %p2765_p1 = por %p2764_p13, %p2763_p9 }
 0x740   : > { %p2766_p3 = pnand %p2765_p1, %p2759_p8 }
 0x742   : > { %2769 = shalt.err (!%p2766_p3)
}
 0x743   : > { %s2870_s19 = smov 128   ;;  %s2871_s30 = smov 8  }
 0x744   : > { %2460 = dma.vmem_to_hbm [thread:$0]  (%p3616_p11), %s3470_s10, 512, %s3467_s18, %s2051_s23, %s2870_s19, %s2870_s19, %s2871_s30  }
 0x745   : > { %s2299_s9 = sshll.u32 %s3168_s21, 3  ;;  %s3617_s20 = sld [smem:[#allocation30_spill]] }
 0x746   : > { %s2329_s4 = sshll.u32 %s2959_s25, 7  ;;  %s587_s1 = scalar_lea.vmem [#allocation11], %s2299_s9 }
 0x747   : > { %s2064_s13 = sshll.u32 %s587_s1, 4  ;;  %s3618_s26 = sld [smem:[#allocation31_spill]]  ;;  %s3506_s13 = int_to_ptr.vmem [resolvable:$true] %s2064_s13 }
 0x748   : > { %s2046_s25 = scalar_lea.sflag [#allocation4], %s3168_s21  ;;  %s2770_s18 = scalar_lea.vmem %s3506_s13, 128 }
 0x749   : > { %p2771_p4 = scmp.ne.s32.totalorder %s3506_s13, %s2770_s18  ;;  %s2872_s10 = smov [#allocation11]  }
 0x74a   : > { %s2774_s23 = sshll.u32 %s2872_s10, 4  ;;  %s2775_s23 = int_to_ptr.vmem [resolvable:$false] %s2774_s23 }
 0x74b   : > { %v2321_v29 = vld [vmem:[%s3617_s20] ss:$0 sm:$0xff]  ;;  %p2772_p5 = pnand %p2771_p4, %p3616_p11  ;;  %s2776_s28 = scalar_lea.vmem %s2775_s23, 256 }
 0x74c   : > { %p2777_p7 = scmp.lt.s32.totalorder %s3506_s13, %s2775_s23  ;;  %p2778_p12 = scmp.lt.s32.totalorder %s2776_s28, %s2770_s18 }
 0x74d   : > { %s3504_s11 = scalar_lea.hbm %s3618_s26, %s2329_s4  ;;  %p2773_p6 = pneg %p2772_p5 }
 0x74e   : > { %p2779_p0 = por %p2778_p12, %p2777_p7 }
 0x750   : > { %p2780_p8 = pnand %p2779_p0, %p2773_p6 }
 0x809   : > { %v2038_v7 = vpop.f32.mrb[20].mxu1 }
 0x80a   : > { %v2039_v8 = vadd.f32 %v2321_v29, %v2038_v7  ;;  %v2447_v30 = vpop.f32.mrb[21].mxu1 }
 0x80b   : > { %v2041_v32 = vpop.f32.mrb[22].mxu1 }
 0x80c   : > { %v2448_v4 = vpop.f32.mrb[23].mxu1  ;;  %2044 = vst.msk [vmem:[%s587_s1] sm:$0xff] %vm618_vm1, %v2039_v8 }
 0x80d   : > { %2783 = shalt.err (!%p2780_p8)
}
 0x80e   : > { %s2784_s21 = scalar_lea.hbm %s3504_s11, 128  ;;  %s2788_s19 = scalar_lea.hbm %s3618_s26, 256 }
 0x80f   : > { %p2785_p10 = scmp.ne.s32.totalorder %s3504_s11, %s2784_s21  ;;  %p2789_p13 = scmp.lt.u32.totalorder %s3504_s11, %s3618_s26 }
 0x810   : > { %p2790_p1 = scmp.lt.u32.totalorder %s2788_s19, %s2784_s21  ;;  %p2792_p4 = scmp.lt.u32.totalorder %s2784_s21, %s3504_s11 }
 0x811   : > { %p2786_p2 = pnand %p2785_p10, %p3616_p11 }
 0x812   : > { %p2791_p3 = por %p2790_p1, %p2789_p13 }
 0x813   : > { %p2787_p9 = pneg %p2786_p2 }
 0x814   : > { %p2793_p5 = por %p2792_p4, %p2791_p3 }
 0x816   : > { %p2794_p6 = pnand %p2793_p5, %p2787_p9 }
 0x818   : > { %2797 = shalt.err (!%p2794_p6)
}
 0x819   : > { %2459 = dma.vmem_to_hbm [thread:$0]  (%p3616_p11), %s3506_s13, 128, %s3504_s11, %s2046_s25  }
 0x81a PF: > { %s3619_s29 = sld [smem:[#allocation19_spill]]  ;;  %s3620_s27 = sld [smem:[#allocation25_spill]] }
 0x81b   : > { %s3621_s20 = sld [smem:[#allocation21_spill]] }
 0x820   : > { %s2092_s4 = sand.u32 1, %s3619_s29   ;;  %p3622_p7 = scmp.ne.s32.totalorder %s3620_s27, 0 }
 0x821   : > { %p3623_p12 = scmp.ge.s32.totalorder %s3621_s20, 2  ;;  %s2093_s1 = scalar_lea.sflag [#allocation4], %s2092_s4 }
 0x823   : > { %p2480_p0 = pnand %p3623_p12, %p3622_p7 }
 0x825   : > { %2827 = dma.done.wait (!%p2480_p0), %s2093_s1, 128  }
 0x826   : > { %2829 = vsyncadd (!%p2480_p0), %s2093_s1, 4294967168  ;;  %s2102_s12 = scalar_lea.sflag [#allocation13], %s2092_s4 }
 0x827   : > { %2831 = dma.done.wait (!%p2480_p0), %s2102_s12, 512  }
 0x828   : > { %2833 = vsyncadd (!%p2480_p0), %s2102_s12, 4294966784  ;;  %s3624_s24 = sld [smem:[#allocation22_spill]]  ;;  %s3625_s15 = sld [smem:[#allocation20_spill]] }
 0x829   : > { %s3626_s23 = sld [smem:[#allocation23_spill]]  ;;  %s3627_s21 = smov %s2840_s22 }
 0x82e   : > { %p35_p11 = scmp.ge.s32.totalorder %s3624_s24, 4   ;;  %s3628_s22 = smov %s3625_s15 }
 0x830   :  { %37 = sbr.rel (!%p35_p11) target bundleno = 19 (0x13), region = 177 }
 0x837   :  { %2107 = vsyncpa [#allocation3], 1 }
 0x838   :  { %2109 = vsyncpa [#allocation3 + $0x1], 1 }
 0x839   :  { %2110 = vsyncpa [#allocation6], 1 }
 0x83a   :  { %2112 = vsyncpa [#allocation6 + $0x1], 1 }
 0x83b   :  { %2113 = vsyncpa [#allocation9], 1 }
 0x83c   :  { %2115 = vsyncpa [#allocation9 + $0x1], 1 }
 0x83d   :  { %2116 = vsyncpa [#allocation4], 1 }
 0x83e   :  { %2118 = vsyncpa [#allocation4 + $0x1], 1 }
 0x83f   :  { %2119 = vsyncpa [#allocation13], 1 }
 0x840   :  { %2121 = vsyncpa [#allocation13 + $0x1], 1 }

</bundles_post_ra>
